<compile_context>
chip_gen: v7x
topology: tpu7x:2x2x1
jax: 0.10.0
libtpu: 0.0.40
codegen_flags: <defaults>
</compile_context>

<pallas_src>
import functools

import jax
import jax.numpy as jnp
from jax import lax
from jax.experimental import pallas as pl
from jax.experimental.pallas import tpu as pltpu

BN_EPS = 1e-5
LANE = 128


def _round_up(v, m):
    return (v + m - 1) // m * m


def _pad_last(a, target):
    pad = target - a.shape[-1]
    if pad == 0:
        return a
    return jnp.pad(a, [(0, 0)] * (a.ndim - 1) + [(0, pad)])


# ----------------------------- Pallas kernels ------------------------------ #

def _tap_matmul(x_ref, w_ref, taps, m_rows):
    """sum_t  x_flat[off_t : off_t + m_rows, :] @ w[t]   (f32 accumulation)."""
    acc = jnp.dot(x_ref[pl.ds(taps[0], m_rows), :], w_ref[0],
                  preferred_element_type=jnp.float32)
    for t in range(1, len(taps)):                 # static, fully unrolled
        acc = acc + jnp.dot(x_ref[pl.ds(taps[t], m_rows), :], w_ref[t],
                            preferred_element_type=jnp.float32)
    return acc


def _valid_mask(m_rows, w_wide, w_valid):
    col = lax.broadcasted_iota(jnp.int32, (m_rows, 1), 0) % w_wide
    return col < w_valid


def _masked_stats(z, valid, st_ref):
    zm = jnp.where(valid, z, 0.0)
    st_ref[0:1, :] = jnp.sum(zm, axis=0, keepdims=True)
    st_ref[1:2, :] = jnp.sum(zm * zm, axis=0, keepdims=True)


def _conv1_kernel(*refs, taps, proj_off, m_rows, w_wide, w_valid, has_proj):
    """conv1 (3x3) + per-image partial BN stats, with the 1x1 projection
    shortcut conv (+ its stats) fused in when present."""
    if has_proj:
        x_ref, w_ref, wp_ref, z_ref, st_ref, zs_ref, sts_ref = refs
    else:
        x_ref, w_ref, z_ref, st_ref = refs
    valid = _valid_mask(m_rows, w_wide, w_valid)
    z = _tap_matmul(x_ref, w_ref, taps, m_rows)           # f32 accumulator
    z_ref[...] = z.astype(z_ref.dtype)                    # bf16 to HBM
    _masked_stats(z, valid, st_ref)                       # stats from f32
    if has_proj:
        zs = jnp.dot(x_ref[pl.ds(proj_off, m_rows), :], wp_ref[...],
                     preferred_element_type=jnp.float32)
        zs_ref[...] = zs.astype(zs_ref.dtype)
        _masked_stats(zs, valid, sts_ref)


def _conv2_kernel(z1_ref, sc1_ref, sh1_ref, w_ref, z2_ref, st_ref, ypad_ref, *,
                  taps, m_rows, w_wide, w_valid, pad_off):
    """bn1-apply + ReLU (BN pass 2 of conv1) -> conv2 (3x3, stride 1) +
    partial BN2 stats.  The zero-padded y1 tile is built in VMEM scratch."""
    valid = _valid_mask(m_rows, w_wide, w_valid)
    # bf16 * f32 promotes to f32; BN affine + ReLU in f32.
    y1 = jnp.maximum(z1_ref[...] * sc1_ref[...] + sh1_ref[...], 0.0)
    y1 = jnp.where(valid, y1, 0.0)           # zero garbage -> becomes conv pad
    ypad_ref[...] = jnp.zeros(ypad_ref.shape, ypad_ref.dtype)
    ypad_ref[pl.ds(pad_off, m_rows), :] = y1.astype(ypad_ref.dtype)
    z2 = _tap_matmul(ypad_ref, w_ref, taps, m_rows)       # f32 accumulator
    z2_ref[...] = z2.astype(z2_ref.dtype)                 # bf16 to HBM
    _masked_stats(z2, valid, st_ref)


def _final_kernel(*refs, has_proj, res_off, m_rows):
    """bn2-apply + shortcut-BN apply (or identity residual) + add + ReLU."""
    if has_proj:
        z2_ref, sc2_ref, sh2_ref, zs_ref, scs_ref, shs_ref, o_ref = refs
        res = zs_ref[...] * scs_ref[...] + shs_ref[...]           # f32
    else:
        z2_ref, sc2_ref, sh2_ref, xr_ref, o_ref = refs
        res = xr_ref[pl.ds(res_off, m_rows), :]                   # f32 identity
    o_ref[...] = jnp.maximum(z2_ref[...] * sc2_ref[...] + sh2_ref[...] + res,
                             0.0).astype(o_ref.dtype)


# -------------------------------- JAX glue --------------------------------- #

def _fold_bn(stats, count, gamma, beta, cpad):
    """(per-image sum, sumsq) -> per-channel (scale, shift) with
    bn(z) == z*scale + shift (training-mode batch statistics, biased var)."""
    s = jnp.sum(stats[:, 0, :], axis=0)
    ss = jnp.sum(stats[:, 1, :], axis=0)
    mu = s / count
    var = jnp.maximum(ss / count - mu * mu, 0.0)
    scale = _pad_last(gamma, cpad) * lax.rsqrt(var + BN_EPS)
    shift = _pad_last(beta, cpad) - mu * scale
    return scale.reshape(1, cpad), shift.reshape(1, cpad)


@functools.partial(jax.jit, static_argnums=(2,))
def resblock_forward(x_nchw, params, stride):
    """Forward pass of the PyTorch ResBlock.  Input/output are NCHW."""
    x = jnp.transpose(x_nchw, (0, 2, 3, 1)).astype(jnp.float32)        # NHWC
    N, H, W, Cin = x.shape
    Cout = params["w1"].shape[0]
    Cpad = _round_up(Cout, LANE)
    has_proj = (stride != 1) or (Cin != Cout)

    Ho = (H + 2 - 3) // stride + 1
    Wo = (W + 2 - 3) // stride + 1
    Wst = Wo + 2                      # shared "wide" row width of every stage
    Mw = Ho * Wst                     # wide rows per image (garbage cols >= Wo)
    count = N * Ho * Wo               # BN denominator (valid positions only)

    # ---- conv1 operand prep (wrapper-side, ~1x data volume, no im2col) ---- #
    if stride == 1:
        x_ext = jnp.pad(x, ((0, 0), (1, 2), (1, 1), (0, 0)))  # (N, H+3, W+2, C)
        x1_flat = x_ext.reshape(N, (H + 3) * (W + 2), Cin)
        K1 = Cin
        taps1 = tuple(kh * Wst + kw for kh in range(3) for kw in range(3))
        w1 = jnp.transpose(params["w1"], (2, 3, 1, 0)).reshape(9, Cin, Cout)
        proj_off = Wst + 1
        if has_proj:
            wproj = jnp.transpose(params["ws"].reshape(Cout, Cin), (1, 0))
    else:
        if stride != 2 or H % 2 or W % 2:
            raise NotImplementedError("stride must be 1, or 2 with even H/W")
        # space-to-depth: stride-2 3x3 conv -> stride-1 4-tap conv on 4*Cin.
        x_ext = jnp.pad(x, ((0, 0), (1, 3), (1, 3), (0, 0)))  # (N, H+4, W+4, C)
        Hq, Wq = (H + 4) // 2, (W + 4) // 2                   # = Ho+2, Wst
        q = x_ext.reshape(N, Hq, 2, Wq, 2, Cin)
        q = q.transpose(0, 1, 3, 2, 4, 5).reshape(N, Hq, Wq, 4 * Cin)
        x1_flat = q.reshape(N, Hq * Wq, 4 * Cin)
        K1 = 4 * Cin
        taps1 = tuple(ah * Wst + aw for ah in range(2) for aw in range(2))
        wt = jnp.transpose(params["w1"], (2, 3, 1, 0))        # (3,3,Cin,Cout)
        wt = jnp.pad(wt, ((0, 1), (0, 1), (0, 0), (0, 0)))    # (4,4,Cin,Cout)
        wt = wt.reshape(2, 2, 2, 2, Cin, Cout).transpose(0, 2, 1, 3, 4, 5)
        w1 = wt.reshape(4, 4 * Cin, Cout)
        proj_off = 0
        if has_proj:
            ws = jnp.transpose(params["ws"].reshape(Cout, Cin), (1, 0))
            wproj = jnp.zeros((4 * Cin, Cout), ws.dtype).at[3 * Cin:].set(ws)

    L1 = x1_flat.shape[1]
    x1_bf16 = x1_flat.astype(jnp.bfloat16)                    # matmul operands bf16
    w1_p = _pad_last(w1, Cpad).astype(jnp.bfloat16)           # lane-dense Cout

    cparams = pltpu.CompilerParams(dimension_semantics=("parallel",))
    grid = (N,)

    # ---------------- pass 1: conv1 (+ fused projection shortcut) ---------- #
    in_specs = [pl.BlockSpec((None, L1, K1), lambda n: (n, 0, 0)),
                pl.BlockSpec((len(taps1), K1, Cpad), lambda n: (0, 0, 0))]
    inputs = [x1_bf16, w1_p]
    out_shape = [jax.ShapeDtypeStruct((N, Mw, Cpad), jnp.bfloat16),
                 jax.ShapeDtypeStruct((N, 2, Cpad), jnp.float32)]
    out_specs = [pl.BlockSpec((None, Mw, Cpad), lambda n: (n, 0, 0)),
                 pl.BlockSpec((None, 2, Cpad), lambda n: (n, 0, 0))]
    if has_proj:
        in_specs.append(pl.BlockSpec((K1, Cpad), lambda n: (0, 0)))
        inputs.append(_pad_last(wproj, Cpad).astype(jnp.bfloat16))
        out_shape += [jax.ShapeDtypeStruct((N, Mw, Cpad), jnp.bfloat16),
                      jax.ShapeDtypeStruct((N, 2, Cpad), jnp.float32)]
        out_specs += [pl.BlockSpec((None, Mw, Cpad), lambda n: (n, 0, 0)),
                      pl.BlockSpec((None, 2, Cpad), lambda n: (n, 0, 0))]

    res1 = pl.pallas_call(
        functools.partial(_conv1_kernel, taps=taps1, proj_off=proj_off,
                          m_rows=Mw, w_wide=Wst, w_valid=Wo, has_proj=has_proj),
        grid=grid, in_specs=in_specs, out_specs=tuple(out_specs),
        out_shape=tuple(out_shape), compiler_params=cparams,
    )(*inputs)
    if has_proj:
        z1w, st1, zsw, sts = res1
    else:
        z1w, st1 = res1

    scale1, shift1 = _fold_bn(st1, count, params["g1"], params["beta1"], Cpad)

    # ------------- pass 2: bn1+relu -> conv2 (3x3, stride 1) --------------- #
    taps2 = tuple(kh * Wst + kw for kh in range(3) for kw in range(3))
    L2 = (Ho + 3) * Wst
    w2 = jnp.transpose(params["w2"], (2, 3, 1, 0)).reshape(9, Cout, Cout)
    w2_p = _pad_last(jnp.pad(w2, ((0, 0), (0, Cpad - Cout), (0, 0))), Cpad)
    w2_p = w2_p.astype(jnp.bfloat16)

    z2w, st2 = pl.pallas_call(
        functools.partial(_conv2_kernel, taps=taps2, m_rows=Mw, w_wide=Wst,
                          w_valid=Wo, pad_off=Wst + 1),
        grid=grid,
        in_specs=[pl.BlockSpec((None, Mw, Cpad), lambda n: (n, 0, 0)),
                  pl.BlockSpec((1, Cpad), lambda n: (0, 0)),
                  pl.BlockSpec((1, Cpad), lambda n: (0, 0)),
                  pl.BlockSpec((9, Cpad, Cpad), lambda n: (0, 0, 0))],
        out_specs=(pl.BlockSpec((None, Mw, Cpad), lambda n: (n, 0, 0)),
                   pl.BlockSpec((None, 2, Cpad), lambda n: (n, 0, 0))),
        out_shape=(jax.ShapeDtypeStruct((N, Mw, Cpad), jnp.bfloat16),
                   jax.ShapeDtypeStruct((N, 2, Cpad), jnp.float32)),
        scratch_shapes=[pltpu.VMEM((L2, Cpad), jnp.bfloat16)],
        compiler_params=cparams,
    )(z1w, scale1, shift1, w2_p)

    scale2, shift2 = _fold_bn(st2, count, params["g2"], params["beta2"], Cpad)

    # ------------ pass 3: bn2 + shortcut BN / identity + add + relu -------- #
    if has_proj:
        scale_s, shift_s = _fold_bn(sts, count, params["gs"], params["betas"], Cpad)
        in_specs3 = [pl.BlockSpec((None, Mw, Cpad), lambda n: (n, 0, 0)),
                     pl.BlockSpec((1, Cpad), lambda n: (0, 0)),
                     pl.BlockSpec((1, Cpad), lambda n: (0, 0)),
                     pl.BlockSpec((None, Mw, Cpad), lambda n: (n, 0, 0)),
                     pl.BlockSpec((1, Cpad), lambda n: (0, 0)),
                     pl.BlockSpec((1, Cpad), lambda n: (0, 0))]
        inputs3 = [z2w, scale2, shift2, zsw, scale_s, shift_s]
        res_off = 0
    else:
        # identity residual: reuse the padded/flattened input, lane-padded,
        # kept f32 so the identity shortcut is added exactly.
        x_res = _pad_last(x_ext, Cpad).reshape(N, L1, Cpad)
        in_specs3 = [pl.BlockSpec((None, Mw, Cpad), lambda n: (n, 0, 0)),
                     pl.BlockSpec((1, Cpad), lambda n: (0, 0)),
                     pl.BlockSpec((1, Cpad), lambda n: (0, 0)),
                     pl.BlockSpec((None, L1, Cpad), lambda n: (n, 0, 0))]
        inputs3 = [z2w, scale2, shift2, x_res]
        res_off = Wst + 1

    out_wide = pl.pallas_call(
        functools.partial(_final_kernel, has_proj=has_proj, res_off=res_off,
                          m_rows=Mw),
        grid=grid, in_specs=in_specs3,
        out_specs=pl.BlockSpec((None, Mw, Cpad), lambda n: (n, 0, 0)),
        out_shape=jax.ShapeDtypeStruct((N, Mw, Cpad), jnp.float32),
        compiler_params=cparams,
    )(*inputs3)

    out = out_wide.reshape(N, Ho, Wst, Cpad)[:, :, :Wo, :Cout]
    return jnp.transpose(out, (0, 3, 1, 2))                           # NCHW


# ---------------------- params / pure-XLA reference ------------------------ #

def init_resblock_params(key, in_channel, out_channel, stride):
    ks = jax.random.split(key, 9)
    def n(k, shape, s=0.1):
        return (s * jax.random.normal(k, shape)).astype(jnp.float32)
    # Conv biases are omitted: bias before training-mode BN cancels exactly.
    p = {
        "w1": n(ks[0], (out_channel, in_channel, 3, 3)),
        "g1": 1.0 + n(ks[1], (out_channel,)),
        "beta1": n(ks[2], (out_channel,)),
        "w2": n(ks[3], (out_channel, out_channel, 3, 3)),
        "g2": 1.0 + n(ks[4], (out_channel,)),
        "beta2": n(ks[5], (out_channel,)),
    }
    if stride != 1 or in_channel != out_channel:
        p.update({
            "ws": n(ks[6], (out_channel, in_channel, 1, 1)),
            "gs": 1.0 + n(ks[7], (out_channel,)),
            "betas": n(ks[8], (out_channel,)),
        })
    return p


def _reference_forward(x_nchw, params, stride):
    dn = ("NCHW", "OIHW", "NCHW")
    def bn(z, g, b):
        mu = jnp.mean(z, axis=(0, 2, 3), keepdims=True)
        var = jnp.mean((z - mu) ** 2, axis=(0, 2, 3), keepdims=True)
        return (g.reshape(1, -1, 1, 1) * (z - mu) * lax.rsqrt(var + BN_EPS)
                + b.reshape(1, -1, 1, 1))
    y = lax.conv_general_dilated(x_nchw, params["w1"], (stride, stride),
                                 ((1, 1), (1, 1)), dimension_numbers=dn)
    y = jnp.maximum(bn(y, params["g1"], params["beta1"]), 0.0)
    y = lax.conv_general_dilated(y, params["w2"], (1, 1),
                                 ((1, 1), (1, 1)), dimension_numbers=dn)
    y = bn(y, params["g2"], params["beta2"])
    if "ws" in params:
        s = lax.conv_general_dilated(x_nchw, params["ws"], (stride, stride),
                                     ((0, 0), (0, 0)), dimension_numbers=dn)
        s = bn(s, params["gs"], params["betas"])
    else:
        s = x_nchw
    return jnp.maximum(y + s, 0.0)


# ---------------------------------- main ----------------------------------- #

if __name__ == "__main__":
    key = jax.random.PRNGKey(0)
    # (in_channel, out_channel, stride, H=W): downsample-projection block and
    # identity block (both kernel paths exercised).
    for (cin, cout, stride, hw) in [(4, 8, 2, 16), (8, 8, 1, 8)]:
        key, kx, kp = jax.random.split(key, 3)
        x = jax.random.normal(kx, (2, cin, hw, hw), dtype=jnp.float32)  # NCHW
        params = init_resblock_params(kp, cin, cout, stride)

        y = jax.block_until_ready(resblock_forward(x, params, stride))

        ho = (hw + 2 - 3) // stride + 1
        assert y.shape == (2, cout, ho, ho), y.shape
        assert bool(jnp.all(jnp.isfinite(y)))
        assert bool(jnp.all(y >= 0.0))                 # final ReLU
        y_ref = _reference_forward(x, params, stride)
        err = float(jnp.max(jnp.abs(y - y_ref)))
        assert err < 0.1, f"max abs err vs XLA reference: {err}"
    print("KERNEL_OK")
</pallas_src>

<mosaic_0001>
module attributes {stable_mosaic.version = 11 : i64} {
  func.func @_final_kernel(%arg0: i32, %arg1: memref<1x80x128xbf16, #tpu.memory_space<vmem>>, %arg2: memref<1x128xf32, #tpu.memory_space<vmem>>, %arg3: memref<1x128xf32, #tpu.memory_space<vmem>>, %arg4: memref<1x80x128xbf16, #tpu.memory_space<vmem>>, %arg5: memref<1x128xf32, #tpu.memory_space<vmem>>, %arg6: memref<1x128xf32, #tpu.memory_space<vmem>>, %arg7: memref<1x80x128xf32, #tpu.memory_space<vmem>>) attributes {dimension_semantics = [#tpu.dimension_semantics<parallel>], iteration_bounds = array<i64: 2>, scalar_prefetch = 0 : i64, scratch_operands = 0 : i64, tpu.core_type = #tpu.core_type<tc>, window_params = [{transform_indices = @transform_0, window_bounds = array<i64: 1, 80, 128>}, {pipeline_mode = #tpu.pipeline_mode<synchronous>, transform_indices = @transform_1, window_bounds = array<i64: 1, 128>}, {pipeline_mode = #tpu.pipeline_mode<synchronous>, transform_indices = @transform_2, window_bounds = array<i64: 1, 128>}, {transform_indices = @transform_3, window_bounds = array<i64: 1, 80, 128>}, {pipeline_mode = #tpu.pipeline_mode<synchronous>, transform_indices = @transform_4, window_bounds = array<i64: 1, 128>}, {pipeline_mode = #tpu.pipeline_mode<synchronous>, transform_indices = @transform_5, window_bounds = array<i64: 1, 128>}, {transform_indices = @transform_6, window_bounds = array<i64: 1, 80, 128>}]} {
    %c0 = arith.constant 0 : index
    %c0_0 = arith.constant 0 : index
    %c0_1 = arith.constant 0 : index
    %0 = vector.load %arg4[%c0, %c0_0, %c0_1] : memref<1x80x128xbf16, #tpu.memory_space<vmem>>, vector<1x80x128xbf16>
    %1 = vector.shape_cast %0 : vector<1x80x128xbf16> to vector<80x128xbf16>
    %c0_2 = arith.constant 0 : index
    %c0_3 = arith.constant 0 : index
    %2 = vector.load %arg5[%c0_2, %c0_3] : memref<1x128xf32, #tpu.memory_space<vmem>>, vector<1x128xf32>
    %3 = arith.extf %1 : vector<80x128xbf16> to vector<80x128xf32>
    %4 = vector.broadcast %2 : vector<1x128xf32> to vector<80x128xf32>
    %5 = arith.mulf %3, %4 : vector<80x128xf32>
    %c0_4 = arith.constant 0 : index
    %c0_5 = arith.constant 0 : index
    %6 = vector.load %arg6[%c0_4, %c0_5] : memref<1x128xf32, #tpu.memory_space<vmem>>, vector<1x128xf32>
    %7 = vector.broadcast %6 : vector<1x128xf32> to vector<80x128xf32>
    %8 = arith.addf %5, %7 : vector<80x128xf32>
    %c0_6 = arith.constant 0 : index
    %c0_7 = arith.constant 0 : index
    %c0_8 = arith.constant 0 : index
    %9 = vector.load %arg1[%c0_6, %c0_7, %c0_8] : memref<1x80x128xbf16, #tpu.memory_space<vmem>>, vector<1x80x128xbf16>
    %10 = vector.shape_cast %9 : vector<1x80x128xbf16> to vector<80x128xbf16>
    %c0_9 = arith.constant 0 : index
    %c0_10 = arith.constant 0 : index
    %11 = vector.load %arg2[%c0_9, %c0_10] : memref<1x128xf32, #tpu.memory_space<vmem>>, vector<1x128xf32>
    %12 = arith.extf %10 : vector<80x128xbf16> to vector<80x128xf32>
    %13 = vector.broadcast %11 : vector<1x128xf32> to vector<80x128xf32>
    %14 = arith.mulf %12, %13 : vector<80x128xf32>
    %c0_11 = arith.constant 0 : index
    %c0_12 = arith.constant 0 : index
    %15 = vector.load %arg3[%c0_11, %c0_12] : memref<1x128xf32, #tpu.memory_space<vmem>>, vector<1x128xf32>
    %16 = vector.broadcast %15 : vector<1x128xf32> to vector<80x128xf32>
    %17 = arith.addf %14, %16 : vector<80x128xf32>
    %18 = arith.addf %17, %8 : vector<80x128xf32>
    %cst = arith.constant 0.000000e+00 : f32
    %19 = vector.broadcast %cst : f32 to vector<80x128xf32>
    %20 = arith.maximumf %18, %19 : vector<80x128xf32>
    %c0_13 = arith.constant 0 : index
    %c0_14 = arith.constant 0 : index
    %c0_15 = arith.constant 0 : index
    %21 = vector.load %arg7[%c0_13, %c0_14, %c0_15] : memref<1x80x128xf32, #tpu.memory_space<vmem>>, vector<1x80x128xf32>
    %22 = vector.shape_cast %21 : vector<1x80x128xf32> to vector<80x128xf32>
    %23 = vector.shape_cast %20 : vector<80x128xf32> to vector<1x80x128xf32>
    tpu.vector_store %arg7[%c0_13, %c0_14, %c0_15], %23 {strides = array<i32>} : memref<1x80x128xf32, #tpu.memory_space<vmem>>, vector<1x80x128xf32>,
    return
  }
  func.func @transform_0(%arg0: i32) -> (i32, i32, i32) {
    %c0_i32 = arith.constant 0 : i32
    %c0_i32_0 = arith.constant 0 : i32
    %c0_i32_1 = arith.constant 0 : i32
    return %arg0, %c0_i32, %c0_i32_0 : i32, i32, i32
  }
  func.func @transform_1(%arg0: i32) -> (i32, i32) {
    %c0_i32 = arith.constant 0 : i32
    %c0_i32_0 = arith.constant 0 : i32
    %c0_i32_1 = arith.constant 0 : i32
    return %c0_i32, %c0_i32_0 : i32, i32
  }
  func.func @transform_2(%arg0: i32) -> (i32, i32) {
    %c0_i32 = arith.constant 0 : i32
    %c0_i32_0 = arith.constant 0 : i32
    %c0_i32_1 = arith.constant 0 : i32
    return %c0_i32, %c0_i32_0 : i32, i32
  }
  func.func @transform_3(%arg0: i32) -> (i32, i32, i32) {
    %c0_i32 = arith.constant 0 : i32
    %c0_i32_0 = arith.constant 0 : i32
    %c0_i32_1 = arith.constant 0 : i32
    return %arg0, %c0_i32, %c0_i32_0 : i32, i32, i32
  }
  func.func @transform_4(%arg0: i32) -> (i32, i32) {
    %c0_i32 = arith.constant 0 : i32
    %c0_i32_0 = arith.constant 0 : i32
    %c0_i32_1 = arith.constant 0 : i32
    return %c0_i32, %c0_i32_0 : i32, i32
  }
  func.func @transform_5(%arg0: i32) -> (i32, i32) {
    %c0_i32 = arith.constant 0 : i32
    %c0_i32_0 = arith.constant 0 : i32
    %c0_i32_1 = arith.constant 0 : i32
    return %c0_i32, %c0_i32_0 : i32, i32
  }
  func.func @transform_6(%arg0: i32) -> (i32, i32, i32) {
    %c0_i32 = arith.constant 0 : i32
    %c0_i32_0 = arith.constant 0 : i32
    %c0_i32_1 = arith.constant 0 : i32
    return %arg0, %c0_i32, %c0_i32_0 : i32, i32, i32
  }
}

module attributes {stable_mosaic.version = 11 : i64} {
  func.func @_conv1_kernel(%arg0: i32, %arg1: memref<1x100x16xbf16, #tpu.memory_space<vmem>>, %arg2: memref<4x16x128xbf16, #tpu.memory_space<vmem>>, %arg3: memref<16x128xbf16, #tpu.memory_space<vmem>>, %arg4: memref<1x80x128xbf16, #tpu.memory_space<vmem>>, %arg5: memref<1x2x128xf32, #tpu.memory_space<vmem>>, %arg6: memref<1x80x128xbf16, #tpu.memory_space<vmem>>, %arg7: memref<1x2x128xf32, #tpu.memory_space<vmem>>) attributes {dimension_semantics = [#tpu.dimension_semantics<parallel>], iteration_bounds = array<i64: 2>, scalar_prefetch = 0 : i64, scratch_operands = 0 : i64, tpu.core_type = #tpu.core_type<tc>, window_params = [{transform_indices = @transform_0, window_bounds = array<i64: 1, 100, 16>}, {pipeline_mode = #tpu.pipeline_mode<synchronous>, transform_indices = @transform_1, window_bounds = array<i64: 4, 16, 128>}, {pipeline_mode = #tpu.pipeline_mode<synchronous>, transform_indices = @transform_2, window_bounds = array<i64: 16, 128>}, {transform_indices = @transform_3, window_bounds = array<i64: 1, 80, 128>}, {transform_indices = @transform_4, window_bounds = array<i64: 1, 2, 128>}, {transform_indices = @transform_5, window_bounds = array<i64: 1, 80, 128>}, {transform_indices = @transform_6, window_bounds = array<i64: 1, 2, 128>}]} {
    %0 = tpu.iota {dimensions = array<i32: 0>} : vector<80x1xi32>
    %c10_i32 = arith.constant 10 : i32
    %c0_i32 = arith.constant 0 : i32
    %1 = arith.cmpi eq, %c10_i32, %c0_i32 : i32
    %c1_i32 = arith.constant 1 : i32
    %2 = arith.select %1, %c1_i32, %c10_i32 : i32
    %3 = vector.broadcast %2 : i32 to vector<80x1xi32>
    %4 = arith.remsi %0, %3 : vector<80x1xi32>
    %c0_i32_0 = arith.constant 0 : i32
    %5 = vector.broadcast %c0_i32_0 : i32 to vector<80x1xi32>
    %6 = arith.cmpi ne, %4, %5 : vector<80x1xi32>
    %c0_i32_1 = arith.constant 0 : i32
    %7 = vector.broadcast %c0_i32_1 : i32 to vector<80x1xi32>
    %8 = arith.cmpi slt, %4, %7 : vector<80x1xi32>
    %c0_i32_2 = arith.constant 0 : i32
    %9 = arith.cmpi slt, %2, %c0_i32_2 : i32
    %10 = vector.broadcast %9 : i1 to vector<80x1xi1>
    %11 = vector.broadcast %10 : vector<80x1xi1> to vector<80x1xi1>
    %12 = arith.xori %8, %11 : vector<80x1xi1>
    %13 = arith.andi %12, %6 : vector<80x1xi1>
    %14 = vector.broadcast %2 : i32 to vector<80x1xi32>
    %15 = arith.addi %4, %14 : vector<80x1xi32>
    %16 = arith.select %13, %15, %4 : vector<80x1xi1>, vector<80x1xi32>
    %c8_i32 = arith.constant 8 : i32
    %17 = vector.broadcast %c8_i32 : i32 to vector<80x1xi32>
    %18 = arith.cmpi slt, %16, %17 : vector<80x1xi32>
    %c0 = arith.constant 0 : index
    %c0_3 = arith.constant 0 : index
    %c0_4 = arith.constant 0 : index
    %19 = vector.load %arg1[%c0, %c0_3, %c0_4] : memref<1x100x16xbf16, #tpu.memory_space<vmem>>, vector<1x80x16xbf16>
    %20 = vector.shape_cast %19 : vector<1x80x16xbf16> to vector<80x16xbf16>
    %c0_5 = arith.constant 0 : index
    %c0_6 = arith.constant 0 : index
    %c0_7 = arith.constant 0 : index
    %21 = vector.load %arg2[%c0_5, %c0_6, %c0_7] : memref<4x16x128xbf16, #tpu.memory_space<vmem>>, vector<1x16x128xbf16>
    %22 = vector.shape_cast %21 : vector<1x16x128xbf16> to vector<16x128xbf16>
    %cst = arith.constant dense<0.000000e+00> : vector<80x128xf32>
    %23 = tpu.matmul %20, %22, %cst {dimension_numbers = #tpu.dot_dimension_numbers<[1], [0], [0], [1], [0, 0, 1, 1], [], []>} : vector<80x16xbf16>, vector<16x128xbf16>, vector<80x128xf32> -> vector<80x128xf32>
    %c0_8 = arith.constant 0 : index
    %c1 = arith.constant 1 : index
    %c0_9 = arith.constant 0 : index
    %24 = vector.load %arg1[%c0_8, %c1, %c0_9] : memref<1x100x16xbf16, #tpu.memory_space<vmem>>, vector<1x80x16xbf16>
    %25 = vector.shape_cast %24 : vector<1x80x16xbf16> to vector<80x16xbf16>
    %c1_10 = arith.constant 1 : index
    %c0_11 = arith.constant 0 : index
    %c0_12 = arith.constant 0 : index
    %26 = vector.load %arg2[%c1_10, %c0_11, %c0_12] : memref<4x16x128xbf16, #tpu.memory_space<vmem>>, vector<1x16x128xbf16>
    %27 = vector.shape_cast %26 : vector<1x16x128xbf16> to vector<16x128xbf16>
    %cst_13 = arith.constant dense<0.000000e+00> : vector<80x128xf32>
    %28 = tpu.matmul %25, %27, %cst_13 {dimension_numbers = #tpu.dot_dimension_numbers<[1], [0], [0], [1], [0, 0, 1, 1], [], []>} : vector<80x16xbf16>, vector<16x128xbf16>, vector<80x128xf32> -> vector<80x128xf32>
    %29 = arith.addf %23, %28 : vector<80x128xf32>
    %c0_14 = arith.constant 0 : index
    %c10 = arith.constant 10 : index
    %c0_15 = arith.constant 0 : index
    %30 = vector.load %arg1[%c0_14, %c10, %c0_15] : memref<1x100x16xbf16, #tpu.memory_space<vmem>>, vector<1x80x16xbf16>
    %31 = vector.shape_cast %30 : vector<1x80x16xbf16> to vector<80x16xbf16>
    %c2 = arith.constant 2 : index
    %c0_16 = arith.constant 0 : index
    %c0_17 = arith.constant 0 : index
    %32 = vector.load %arg2[%c2, %c0_16, %c0_17] : memref<4x16x128xbf16, #tpu.memory_space<vmem>>, vector<1x16x128xbf16>
    %33 = vector.shape_cast %32 : vector<1x16x128xbf16> to vector<16x128xbf16>
    %cst_18 = arith.constant dense<0.000000e+00> : vector<80x128xf32>
    %34 = tpu.matmul %31, %33, %cst_18 {dimension_numbers = #tpu.dot_dimension_numbers<[1], [0], [0], [1], [0, 0, 1, 1], [], []>} : vector<80x16xbf16>, vector<16x128xbf16>, vector<80x128xf32> -> vector<80x128xf32>
    %35 = arith.addf %29, %34 : vector<80x128xf32>
    %c0_19 = arith.constant 0 : index
    %c11 = arith.constant 11 : index
    %c0_20 = arith.constant 0 : index
    %36 = vector.load %arg1[%c0_19, %c11, %c0_20] : memref<1x100x16xbf16, #tpu.memory_space<vmem>>, vector<1x80x16xbf16>
    %37 = vector.shape_cast %36 : vector<1x80x16xbf16> to vector<80x16xbf16>
    %c3 = arith.constant 3 : index
    %c0_21 = arith.constant 0 : index
    %c0_22 = arith.constant 0 : index
    %38 = vector.load %arg2[%c3, %c0_21, %c0_22] : memref<4x16x128xbf16, #tpu.memory_space<vmem>>, vector<1x16x128xbf16>
    %39 = vector.shape_cast %38 : vector<1x16x128xbf16> to vector<16x128xbf16>
    %cst_23 = arith.constant dense<0.000000e+00> : vector<80x128xf32>
    %40 = tpu.matmul %37, %39, %cst_23 {dimension_numbers = #tpu.dot_dimension_numbers<[1], [0], [0], [1], [0, 0, 1, 1], [], []>} : vector<80x16xbf16>, vector<16x128xbf16>, vector<80x128xf32> -> vector<80x128xf32>
    %41 = arith.addf %35, %40 : vector<80x128xf32>
    %42 = arith.truncf %41 : vector<80x128xf32> to vector<80x128xbf16>
    %c0_24 = arith.constant 0 : index
    %c0_25 = arith.constant 0 : index
    %c0_26 = arith.constant 0 : index
    %43 = vector.load %arg4[%c0_24, %c0_25, %c0_26] : memref<1x80x128xbf16, #tpu.memory_space<vmem>>, vector<1x80x128xbf16>
    %44 = vector.shape_cast %43 : vector<1x80x128xbf16> to vector<80x128xbf16>
    %45 = vector.shape_cast %42 : vector<80x128xbf16> to vector<1x80x128xbf16>
    tpu.vector_store %arg4[%c0_24, %c0_25, %c0_26], %45 {strides = array<i32>} : memref<1x80x128xbf16, #tpu.memory_space<vmem>>, vector<1x80x128xbf16>,
    %cst_27 = arith.constant 0.000000e+00 : f32
    %46 = vector.shape_cast %18 : vector<80x1xi1> to vector<80x1xi1>
    %47 = vector.broadcast %46 : vector<80x1xi1> to vector<80x128xi1>
    %48 = vector.broadcast %cst_27 : f32 to vector<80x128xf32>
    %49 = arith.select %47, %41, %48 : vector<80x128xi1>, vector<80x128xf32>
    %cst_28 = arith.constant dense<0.000000e+00> : vector<128xf32>
    %50 = vector.multi_reduction <add>, %49, %cst_28 [0] : vector<80x128xf32> to vector<128xf32>
    %51 = vector.shape_cast %50 : vector<128xf32> to vector<1x128xf32>
    %c0_29 = arith.constant 0 : index
    %c0_30 = arith.constant 0 : index
    %c0_31 = arith.constant 0 : index
    %52 = vector.load %arg5[%c0_29, %c0_30, %c0_31] : memref<1x2x128xf32, #tpu.memory_space<vmem>>, vector<1x1x128xf32>
    %53 = vector.shape_cast %52 : vector<1x1x128xf32> to vector<1x128xf32>
    %54 = vector.shape_cast %51 : vector<1x128xf32> to vector<1x1x128xf32>
    tpu.vector_store %arg5[%c0_29, %c0_30, %c0_31], %54 {strides = array<i32>} : memref<1x2x128xf32, #tpu.memory_space<vmem>>, vector<1x1x128xf32>,
    %55 = arith.mulf %49, %49 : vector<80x128xf32>
    %cst_32 = arith.constant dense<0.000000e+00> : vector<128xf32>
    %56 = vector.multi_reduction <add>, %55, %cst_32 [0] : vector<80x128xf32> to vector<128xf32>
    %57 = vector.shape_cast %56 : vector<128xf32> to vector<1x128xf32>
    %c0_33 = arith.constant 0 : index
    %c1_34 = arith.constant 1 : index
    %c0_35 = arith.constant 0 : index
    %58 = vector.load %arg5[%c0_33, %c1_34, %c0_35] : memref<1x2x128xf32, #tpu.memory_space<vmem>>, vector<1x1x128xf32>
    %59 = vector.shape_cast %58 : vector<1x1x128xf32> to vector<1x128xf32>
    %60 = vector.shape_cast %57 : vector<1x128xf32> to vector<1x1x128xf32>
    tpu.vector_store %arg5[%c0_33, %c1_34, %c0_35], %60 {strides = array<i32>} : memref<1x2x128xf32, #tpu.memory_space<vmem>>, vector<1x1x128xf32>,
    %c0_36 = arith.constant 0 : index
    %c0_37 = arith.constant 0 : index
    %c0_38 = arith.constant 0 : index
    %61 = vector.load %arg1[%c0_36, %c0_37, %c0_38] : memref<1x100x16xbf16, #tpu.memory_space<vmem>>, vector<1x80x16xbf16>
    %62 = vector.shape_cast %61 : vector<1x80x16xbf16> to vector<80x16xbf16>
    %c0_39 = arith.constant 0 : index
    %c0_40 = arith.constant 0 : index
    %63 = vector.load %arg3[%c0_39, %c0_40] : memref<16x128xbf16, #tpu.memory_space<vmem>>, vector<16x128xbf16>
    %cst_41 = arith.constant dense<0.000000e+00> : vector<80x128xf32>
    %64 = tpu.matmul %62, %63, %cst_41 {dimension_numbers = #tpu.dot_dimension_numbers<[1], [0], [0], [1], [0, 0, 1, 1], [], []>} : vector<80x16xbf16>, vector<16x128xbf16>, vector<80x128xf32> -> vector<80x128xf32>
    %65 = arith.truncf %64 : vector<80x128xf32> to vector<80x128xbf16>
    %c0_42 = arith.constant 0 : index
    %c0_43 = arith.constant 0 : index
    %c0_44 = arith.constant 0 : index
    %66 = vector.load %arg6[%c0_42, %c0_43, %c0_44] : memref<1x80x128xbf16, #tpu.memory_space<vmem>>, vector<1x80x128xbf16>
    %67 = vector.shape_cast %66 : vector<1x80x128xbf16> to vector<80x128xbf16>
    %68 = vector.shape_cast %65 : vector<80x128xbf16> to vector<1x80x128xbf16>
    tpu.vector_store %arg6[%c0_42, %c0_43, %c0_44], %68 {strides = array<i32>} : memref<1x80x128xbf16, #tpu.memory_space<vmem>>, vector<1x80x128xbf16>,
    %cst_45 = arith.constant 0.000000e+00 : f32
    %69 = vector.shape_cast %18 : vector<80x1xi1> to vector<80x1xi1>
    %70 = vector.broadcast %69 : vector<80x1xi1> to vector<80x128xi1>
    %71 = vector.broadcast %cst_45 : f32 to vector<80x128xf32>
    %72 = arith.select %70, %64, %71 : vector<80x128xi1>, vector<80x128xf32>
    %cst_46 = arith.constant dense<0.000000e+00> : vector<128xf32>
    %73 = vector.multi_reduction <add>, %72, %cst_46 [0] : vector<80x128xf32> to vector<128xf32>
    %74 = vector.shape_cast %73 : vector<128xf32> to vector<1x128xf32>
    %c0_47 = arith.constant 0 : index
    %c0_48 = arith.constant 0 : index
    %c0_49 = arith.constant 0 : index
    %75 = vector.load %arg7[%c0_47, %c0_48, %c0_49] : memref<1x2x128xf32, #tpu.memory_space<vmem>>, vector<1x1x128xf32>
    %76 = vector.shape_cast %75 : vector<1x1x128xf32> to vector<1x128xf32>
    %77 = vector.shape_cast %74 : vector<1x128xf32> to vector<1x1x128xf32>
    tpu.vector_store %arg7[%c0_47, %c0_48, %c0_49], %77 {strides = array<i32>} : memref<1x2x128xf32, #tpu.memory_space<vmem>>, vector<1x1x128xf32>,
    %78 = arith.mulf %72, %72 : vector<80x128xf32>
    %cst_50 = arith.constant dense<0.000000e+00> : vector<128xf32>
    %79 = vector.multi_reduction <add>, %78, %cst_50 [0] : vector<80x128xf32> to vector<128xf32>
    %80 = vector.shape_cast %79 : vector<128xf32> to vector<1x128xf32>
    %c0_51 = arith.constant 0 : index
    %c1_52 = arith.constant 1 : index
    %c0_53 = arith.constant 0 : index
    %81 = vector.load %arg7[%c0_51, %c1_52, %c0_53] : memref<1x2x128xf32, #tpu.memory_space<vmem>>, vector<1x1x128xf32>
    %82 = vector.shape_cast %81 : vector<1x1x128xf32> to vector<1x128xf32>
    %83 = vector.shape_cast %80 : vector<1x128xf32> to vector<1x1x128xf32>
    tpu.vector_store %arg7[%c0_51, %c1_52, %c0_53], %83 {strides = array<i32>} : memref<1x2x128xf32, #tpu.memory_space<vmem>>, vector<1x1x128xf32>,
    return
  }
  func.func @transform_0(%arg0: i32) -> (i32, i32, i32) {
    %c0_i32 = arith.constant 0 : i32
    %c0_i32_0 = arith.constant 0 : i32
    %c0_i32_1 = arith.constant 0 : i32
    return %arg0, %c0_i32, %c0_i32_0 : i32, i32, i32
  }
  func.func @transform_1(%arg0: i32) -> (i32, i32, i32) {
    %c0_i32 = arith.constant 0 : i32
    %c0_i32_0 = arith.constant 0 : i32
    %c0_i32_1 = arith.constant 0 : i32
    %c0_i32_2 = arith.constant 0 : i32
    return %c0_i32, %c0_i32_0, %c0_i32_1 : i32, i32, i32
  }
  func.func @transform_2(%arg0: i32) -> (i32, i32) {
    %c0_i32 = arith.constant 0 : i32
    %c0_i32_0 = arith.constant 0 : i32
    %c0_i32_1 = arith.constant 0 : i32
    return %c0_i32, %c0_i32_0 : i32, i32
  }
  func.func @transform_3(%arg0: i32) -> (i32, i32, i32) {
    %c0_i32 = arith.constant 0 : i32
    %c0_i32_0 = arith.constant 0 : i32
    %c0_i32_1 = arith.constant 0 : i32
    return %arg0, %c0_i32, %c0_i32_0 : i32, i32, i32
  }
  func.func @transform_4(%arg0: i32) -> (i32, i32, i32) {
    %c0_i32 = arith.constant 0 : i32
    %c0_i32_0 = arith.constant 0 : i32
    %c0_i32_1 = arith.constant 0 : i32
    return %arg0, %c0_i32, %c0_i32_0 : i32, i32, i32
  }
  func.func @transform_5(%arg0: i32) -> (i32, i32, i32) {
    %c0_i32 = arith.constant 0 : i32
    %c0_i32_0 = arith.constant 0 : i32
    %c0_i32_1 = arith.constant 0 : i32
    return %arg0, %c0_i32, %c0_i32_0 : i32, i32, i32
  }
  func.func @transform_6(%arg0: i32) -> (i32, i32, i32) {
    %c0_i32 = arith.constant 0 : i32
    %c0_i32_0 = arith.constant 0 : i32
    %c0_i32_1 = arith.constant 0 : i32
    return %arg0, %c0_i32, %c0_i32_0 : i32, i32, i32
  }
}

module attributes {stable_mosaic.version = 11 : i64} {
  func.func @_conv2_kernel(%arg0: i32, %arg1: memref<1x80x128xbf16, #tpu.memory_space<vmem>>, %arg2: memref<1x128xf32, #tpu.memory_space<vmem>>, %arg3: memref<1x128xf32, #tpu.memory_space<vmem>>, %arg4: memref<9x128x128xbf16, #tpu.memory_space<vmem>>, %arg5: memref<1x80x128xbf16, #tpu.memory_space<vmem>>, %arg6: memref<1x2x128xf32, #tpu.memory_space<vmem>>, %arg7: memref<110x128xbf16, #tpu.memory_space<vmem>>) attributes {dimension_semantics = [#tpu.dimension_semantics<parallel>], iteration_bounds = array<i64: 2>, scalar_prefetch = 0 : i64, scratch_operands = 1 : i64, tpu.core_type = #tpu.core_type<tc>, window_params = [{transform_indices = @transform_0, window_bounds = array<i64: 1, 80, 128>}, {pipeline_mode = #tpu.pipeline_mode<synchronous>, transform_indices = @transform_1, window_bounds = array<i64: 1, 128>}, {pipeline_mode = #tpu.pipeline_mode<synchronous>, transform_indices = @transform_2, window_bounds = array<i64: 1, 128>}, {pipeline_mode = #tpu.pipeline_mode<synchronous>, transform_indices = @transform_3, window_bounds = array<i64: 9, 128, 128>}, {transform_indices = @transform_4, window_bounds = array<i64: 1, 80, 128>}, {transform_indices = @transform_5, window_bounds = array<i64: 1, 2, 128>}]} {
    %0 = tpu.iota {dimensions = array<i32: 0>} : vector<80x1xi32>
    %c10_i32 = arith.constant 10 : i32
    %c0_i32 = arith.constant 0 : i32
    %1 = arith.cmpi eq, %c10_i32, %c0_i32 : i32
    %c1_i32 = arith.constant 1 : i32
    %2 = arith.select %1, %c1_i32, %c10_i32 : i32
    %3 = vector.broadcast %2 : i32 to vector<80x1xi32>
    %4 = arith.remsi %0, %3 : vector<80x1xi32>
    %c0_i32_0 = arith.constant 0 : i32
    %5 = vector.broadcast %c0_i32_0 : i32 to vector<80x1xi32>
    %6 = arith.cmpi ne, %4, %5 : vector<80x1xi32>
    %c0_i32_1 = arith.constant 0 : i32
    %7 = vector.broadcast %c0_i32_1 : i32 to vector<80x1xi32>
    %8 = arith.cmpi slt, %4, %7 : vector<80x1xi32>
    %c0_i32_2 = arith.constant 0 : i32
    %9 = arith.cmpi slt, %2, %c0_i32_2 : i32
    %10 = vector.broadcast %9 : i1 to vector<80x1xi1>
    %11 = vector.broadcast %10 : vector<80x1xi1> to vector<80x1xi1>
    %12 = arith.xori %8, %11 : vector<80x1xi1>
    %13 = arith.andi %12, %6 : vector<80x1xi1>
    %14 = vector.broadcast %2 : i32 to vector<80x1xi32>
    %15 = arith.addi %4, %14 : vector<80x1xi32>
    %16 = arith.select %13, %15, %4 : vector<80x1xi1>, vector<80x1xi32>
    %c8_i32 = arith.constant 8 : i32
    %17 = vector.broadcast %c8_i32 : i32 to vector<80x1xi32>
    %18 = arith.cmpi slt, %16, %17 : vector<80x1xi32>
    %c0 = arith.constant 0 : index
    %c0_3 = arith.constant 0 : index
    %c0_4 = arith.constant 0 : index
    %19 = vector.load %arg1[%c0, %c0_3, %c0_4] : memref<1x80x128xbf16, #tpu.memory_space<vmem>>, vector<1x80x128xbf16>
    %20 = vector.shape_cast %19 : vector<1x80x128xbf16> to vector<80x128xbf16>
    %c0_5 = arith.constant 0 : index
    %c0_6 = arith.constant 0 : index
    %21 = vector.load %arg2[%c0_5, %c0_6] : memref<1x128xf32, #tpu.memory_space<vmem>>, vector<1x128xf32>
    %22 = arith.extf %20 : vector<80x128xbf16> to vector<80x128xf32>
    %23 = vector.broadcast %21 : vector<1x128xf32> to vector<80x128xf32>
    %24 = arith.mulf %22, %23 : vector<80x128xf32>
    %c0_7 = arith.constant 0 : index
    %c0_8 = arith.constant 0 : index
    %25 = vector.load %arg3[%c0_7, %c0_8] : memref<1x128xf32, #tpu.memory_space<vmem>>, vector<1x128xf32>
    %26 = vector.broadcast %25 : vector<1x128xf32> to vector<80x128xf32>
    %27 = arith.addf %24, %26 : vector<80x128xf32>
    %cst = arith.constant 0.000000e+00 : f32
    %28 = vector.broadcast %cst : f32 to vector<80x128xf32>
    %29 = arith.maximumf %27, %28 : vector<80x128xf32>
    %cst_9 = arith.constant 0.000000e+00 : f32
    %30 = vector.shape_cast %18 : vector<80x1xi1> to vector<80x1xi1>
    %31 = vector.broadcast %30 : vector<80x1xi1> to vector<80x128xi1>
    %32 = vector.broadcast %cst_9 : f32 to vector<80x128xf32>
    %33 = arith.select %31, %29, %32 : vector<80x128xi1>, vector<80x128xf32>
    %cst_10 = arith.constant 0.000000e+00 : bf16
    %34 = vector.broadcast %cst_10 : bf16 to vector<110x128xbf16>
    %c0_11 = arith.constant 0 : index
    %c0_12 = arith.constant 0 : index
    %35 = vector.load %arg7[%c0_11, %c0_12] : memref<110x128xbf16, #tpu.memory_space<vmem>>, vector<110x128xbf16>
    tpu.vector_store %arg7[%c0_11, %c0_12], %34 {strides = array<i32>} : memref<110x128xbf16, #tpu.memory_space<vmem>>, vector<110x128xbf16>,
    %36 = arith.truncf %33 : vector<80x128xf32> to vector<80x128xbf16>
    %c11 = arith.constant 11 : index
    %c0_13 = arith.constant 0 : index
    %37 = vector.load %arg7[%c11, %c0_13] : memref<110x128xbf16, #tpu.memory_space<vmem>>, vector<80x128xbf16>
    tpu.vector_store %arg7[%c11, %c0_13], %36 {strides = array<i32>} : memref<110x128xbf16, #tpu.memory_space<vmem>>, vector<80x128xbf16>,
    %c0_14 = arith.constant 0 : index
    %c0_15 = arith.constant 0 : index
    %38 = vector.load %arg7[%c0_14, %c0_15] : memref<110x128xbf16, #tpu.memory_space<vmem>>, vector<80x128xbf16>
    %c0_16 = arith.constant 0 : index
    %c0_17 = arith.constant 0 : index
    %c0_18 = arith.constant 0 : index
    %39 = vector.load %arg4[%c0_16, %c0_17, %c0_18] : memref<9x128x128xbf16, #tpu.memory_space<vmem>>, vector<1x128x128xbf16>
    %40 = vector.shape_cast %39 : vector<1x128x128xbf16> to vector<128x128xbf16>
    %cst_19 = arith.constant dense<0.000000e+00> : vector<80x128xf32>
    %41 = tpu.matmul %38, %40, %cst_19 {dimension_numbers = #tpu.dot_dimension_numbers<[1], [0], [0], [1], [0, 0, 1, 1], [], []>} : vector<80x128xbf16>, vector<128x128xbf16>, vector<80x128xf32> -> vector<80x128xf32>
    %c1 = arith.constant 1 : index
    %c0_20 = arith.constant 0 : index
    %42 = vector.load %arg7[%c1, %c0_20] : memref<110x128xbf16, #tpu.memory_space<vmem>>, vector<80x128xbf16>
    %c1_21 = arith.constant 1 : index
    %c0_22 = arith.constant 0 : index
    %c0_23 = arith.constant 0 : index
    %43 = vector.load %arg4[%c1_21, %c0_22, %c0_23] : memref<9x128x128xbf16, #tpu.memory_space<vmem>>, vector<1x128x128xbf16>
    %44 = vector.shape_cast %43 : vector<1x128x128xbf16> to vector<128x128xbf16>
    %cst_24 = arith.constant dense<0.000000e+00> : vector<80x128xf32>
    %45 = tpu.matmul %42, %44, %cst_24 {dimension_numbers = #tpu.dot_dimension_numbers<[1], [0], [0], [1], [0, 0, 1, 1], [], []>} : vector<80x128xbf16>, vector<128x128xbf16>, vector<80x128xf32> -> vector<80x128xf32>
    %46 = arith.addf %41, %45 : vector<80x128xf32>
    %c2 = arith.constant 2 : index
    %c0_25 = arith.constant 0 : index
    %47 = vector.load %arg7[%c2, %c0_25] : memref<110x128xbf16, #tpu.memory_space<vmem>>, vector<80x128xbf16>
    %c2_26 = arith.constant 2 : index
    %c0_27 = arith.constant 0 : index
    %c0_28 = arith.constant 0 : index
    %48 = vector.load %arg4[%c2_26, %c0_27, %c0_28] : memref<9x128x128xbf16, #tpu.memory_space<vmem>>, vector<1x128x128xbf16>
    %49 = vector.shape_cast %48 : vector<1x128x128xbf16> to vector<128x128xbf16>
    %cst_29 = arith.constant dense<0.000000e+00> : vector<80x128xf32>
    %50 = tpu.matmul %47, %49, %cst_29 {dimension_numbers = #tpu.dot_dimension_numbers<[1], [0], [0], [1], [0, 0, 1, 1], [], []>} : vector<80x128xbf16>, vector<128x128xbf16>, vector<80x128xf32> -> vector<80x128xf32>
    %51 = arith.addf %46, %50 : vector<80x128xf32>
    %c10 = arith.constant 10 : index
    %c0_30 = arith.constant 0 : index
    %52 = vector.load %arg7[%c10, %c0_30] : memref<110x128xbf16, #tpu.memory_space<vmem>>, vector<80x128xbf16>
    %c3 = arith.constant 3 : index
    %c0_31 = arith.constant 0 : index
    %c0_32 = arith.constant 0 : index
    %53 = vector.load %arg4[%c3, %c0_31, %c0_32] : memref<9x128x128xbf16, #tpu.memory_space<vmem>>, vector<1x128x128xbf16>
    %54 = vector.shape_cast %53 : vector<1x128x128xbf16> to vector<128x128xbf16>
    %cst_33 = arith.constant dense<0.000000e+00> : vector<80x128xf32>
    %55 = tpu.matmul %52, %54, %cst_33 {dimension_numbers = #tpu.dot_dimension_numbers<[1], [0], [0], [1], [0, 0, 1, 1], [], []>} : vector<80x128xbf16>, vector<128x128xbf16>, vector<80x128xf32> -> vector<80x128xf32>
    %56 = arith.addf %51, %55 : vector<80x128xf32>
    %c11_34 = arith.constant 11 : index
    %c0_35 = arith.constant 0 : index
    %57 = vector.load %arg7[%c11_34, %c0_35] : memref<110x128xbf16, #tpu.memory_space<vmem>>, vector<80x128xbf16>
    %c4 = arith.constant 4 : index
    %c0_36 = arith.constant 0 : index
    %c0_37 = arith.constant 0 : index
    %58 = vector.load %arg4[%c4, %c0_36, %c0_37] : memref<9x128x128xbf16, #tpu.memory_space<vmem>>, vector<1x128x128xbf16>
    %59 = vector.shape_cast %58 : vector<1x128x128xbf16> to vector<128x128xbf16>
    %cst_38 = arith.constant dense<0.000000e+00> : vector<80x128xf32>
    %60 = tpu.matmul %57, %59, %cst_38 {dimension_numbers = #tpu.dot_dimension_numbers<[1], [0], [0], [1], [0, 0, 1, 1], [], []>} : vector<80x128xbf16>, vector<128x128xbf16>, vector<80x128xf32> -> vector<80x128xf32>
    %61 = arith.addf %56, %60 : vector<80x128xf32>
    %c12 = arith.constant 12 : index
    %c0_39 = arith.constant 0 : index
    %62 = vector.load %arg7[%c12, %c0_39] : memref<110x128xbf16, #tpu.memory_space<vmem>>, vector<80x128xbf16>
    %c5 = arith.constant 5 : index
    %c0_40 = arith.constant 0 : index
    %c0_41 = arith.constant 0 : index
    %63 = vector.load %arg4[%c5, %c0_40, %c0_41] : memref<9x128x128xbf16, #tpu.memory_space<vmem>>, vector<1x128x128xbf16>
    %64 = vector.shape_cast %63 : vector<1x128x128xbf16> to vector<128x128xbf16>
    %cst_42 = arith.constant dense<0.000000e+00> : vector<80x128xf32>
    %65 = tpu.matmul %62, %64, %cst_42 {dimension_numbers = #tpu.dot_dimension_numbers<[1], [0], [0], [1], [0, 0, 1, 1], [], []>} : vector<80x128xbf16>, vector<128x128xbf16>, vector<80x128xf32> -> vector<80x128xf32>
    %66 = arith.addf %61, %65 : vector<80x128xf32>
    %c20 = arith.constant 20 : index
    %c0_43 = arith.constant 0 : index
    %67 = vector.load %arg7[%c20, %c0_43] : memref<110x128xbf16, #tpu.memory_space<vmem>>, vector<80x128xbf16>
    %c6 = arith.constant 6 : index
    %c0_44 = arith.constant 0 : index
    %c0_45 = arith.constant 0 : index
    %68 = vector.load %arg4[%c6, %c0_44, %c0_45] : memref<9x128x128xbf16, #tpu.memory_space<vmem>>, vector<1x128x128xbf16>
    %69 = vector.shape_cast %68 : vector<1x128x128xbf16> to vector<128x128xbf16>
    %cst_46 = arith.constant dense<0.000000e+00> : vector<80x128xf32>
    %70 = tpu.matmul %67, %69, %cst_46 {dimension_numbers = #tpu.dot_dimension_numbers<[1], [0], [0], [1], [0, 0, 1, 1], [], []>} : vector<80x128xbf16>, vector<128x128xbf16>, vector<80x128xf32> -> vector<80x128xf32>
    %71 = arith.addf %66, %70 : vector<80x128xf32>
    %c21 = arith.constant 21 : index
    %c0_47 = arith.constant 0 : index
    %72 = vector.load %arg7[%c21, %c0_47] : memref<110x128xbf16, #tpu.memory_space<vmem>>, vector<80x128xbf16>
    %c7 = arith.constant 7 : index
    %c0_48 = arith.constant 0 : index
    %c0_49 = arith.constant 0 : index
    %73 = vector.load %arg4[%c7, %c0_48, %c0_49] : memref<9x128x128xbf16, #tpu.memory_space<vmem>>, vector<1x128x128xbf16>
    %74 = vector.shape_cast %73 : vector<1x128x128xbf16> to vector<128x128xbf16>
    %cst_50 = arith.constant dense<0.000000e+00> : vector<80x128xf32>
    %75 = tpu.matmul %72, %74, %cst_50 {dimension_numbers = #tpu.dot_dimension_numbers<[1], [0], [0], [1], [0, 0, 1, 1], [], []>} : vector<80x128xbf16>, vector<128x128xbf16>, vector<80x128xf32> -> vector<80x128xf32>
    %76 = arith.addf %71, %75 : vector<80x128xf32>
    %c22 = arith.constant 22 : index
    %c0_51 = arith.constant 0 : index
    %77 = vector.load %arg7[%c22, %c0_51] : memref<110x128xbf16, #tpu.memory_space<vmem>>, vector<80x128xbf16>
    %c8 = arith.constant 8 : index
    %c0_52 = arith.constant 0 : index
    %c0_53 = arith.constant 0 : index
    %78 = vector.load %arg4[%c8, %c0_52, %c0_53] : memref<9x128x128xbf16, #tpu.memory_space<vmem>>, vector<1x128x128xbf16>
    %79 = vector.shape_cast %78 : vector<1x128x128xbf16> to vector<128x128xbf16>
    %cst_54 = arith.constant dense<0.000000e+00> : vector<80x128xf32>
    %80 = tpu.matmul %77, %79, %cst_54 {dimension_numbers = #tpu.dot_dimension_numbers<[1], [0], [0], [1], [0, 0, 1, 1], [], []>} : vector<80x128xbf16>, vector<128x128xbf16>, vector<80x128xf32> -> vector<80x128xf32>
    %81 = arith.addf %76, %80 : vector<80x128xf32>
    %82 = arith.truncf %81 : vector<80x128xf32> to vector<80x128xbf16>
    %c0_55 = arith.constant 0 : index
    %c0_56 = arith.constant 0 : index
    %c0_57 = arith.constant 0 : index
    %83 = vector.load %arg5[%c0_55, %c0_56, %c0_57] : memref<1x80x128xbf16, #tpu.memory_space<vmem>>, vector<1x80x128xbf16>
    %84 = vector.shape_cast %83 : vector<1x80x128xbf16> to vector<80x128xbf16>
    %85 = vector.shape_cast %82 : vector<80x128xbf16> to vector<1x80x128xbf16>
    tpu.vector_store %arg5[%c0_55, %c0_56, %c0_57], %85 {strides = array<i32>} : memref<1x80x128xbf16, #tpu.memory_space<vmem>>, vector<1x80x128xbf16>,
    %cst_58 = arith.constant 0.000000e+00 : f32
    %86 = vector.shape_cast %18 : vector<80x1xi1> to vector<80x1xi1>
    %87 = vector.broadcast %86 : vector<80x1xi1> to vector<80x128xi1>
    %88 = vector.broadcast %cst_58 : f32 to vector<80x128xf32>
    %89 = arith.select %87, %81, %88 : vector<80x128xi1>, vector<80x128xf32>
    %cst_59 = arith.constant dense<0.000000e+00> : vector<128xf32>
    %90 = vector.multi_reduction <add>, %89, %cst_59 [0] : vector<80x128xf32> to vector<128xf32>
    %91 = vector.shape_cast %90 : vector<128xf32> to vector<1x128xf32>
    %c0_60 = arith.constant 0 : index
    %c0_61 = arith.constant 0 : index
    %c0_62 = arith.constant 0 : index
    %92 = vector.load %arg6[%c0_60, %c0_61, %c0_62] : memref<1x2x128xf32, #tpu.memory_space<vmem>>, vector<1x1x128xf32>
    %93 = vector.shape_cast %92 : vector<1x1x128xf32> to vector<1x128xf32>
    %94 = vector.shape_cast %91 : vector<1x128xf32> to vector<1x1x128xf32>
    tpu.vector_store %arg6[%c0_60, %c0_61, %c0_62], %94 {strides = array<i32>} : memref<1x2x128xf32, #tpu.memory_space<vmem>>, vector<1x1x128xf32>,
    %95 = arith.mulf %89, %89 : vector<80x128xf32>
    %cst_63 = arith.constant dense<0.000000e+00> : vector<128xf32>
    %96 = vector.multi_reduction <add>, %95, %cst_63 [0] : vector<80x128xf32> to vector<128xf32>
    %97 = vector.shape_cast %96 : vector<128xf32> to vector<1x128xf32>
    %c0_64 = arith.constant 0 : index
    %c1_65 = arith.constant 1 : index
    %c0_66 = arith.constant 0 : index
    %98 = vector.load %arg6[%c0_64, %c1_65, %c0_66] : memref<1x2x128xf32, #tpu.memory_space<vmem>>, vector<1x1x128xf32>
    %99 = vector.shape_cast %98 : vector<1x1x128xf32> to vector<1x128xf32>
    %100 = vector.shape_cast %97 : vector<1x128xf32> to vector<1x1x128xf32>
    tpu.vector_store %arg6[%c0_64, %c1_65, %c0_66], %100 {strides = array<i32>} : memref<1x2x128xf32, #tpu.memory_space<vmem>>, vector<1x1x128xf32>,
    return
  }
  func.func @transform_0(%arg0: i32) -> (i32, i32, i32) {
    %c0_i32 = arith.constant 0 : i32
    %c0_i32_0 = arith.constant 0 : i32
    %c0_i32_1 = arith.constant 0 : i32
    return %arg0, %c0_i32, %c0_i32_0 : i32, i32, i32
  }
  func.func @transform_1(%arg0: i32) -> (i32, i32) {
    %c0_i32 = arith.constant 0 : i32
    %c0_i32_0 = arith.constant 0 : i32
    %c0_i32_1 = arith.constant 0 : i32
    return %c0_i32, %c0_i32_0 : i32, i32
  }
  func.func @transform_2(%arg0: i32) -> (i32, i32) {
    %c0_i32 = arith.constant 0 : i32
    %c0_i32_0 = arith.constant 0 : i32
    %c0_i32_1 = arith.constant 0 : i32
    return %c0_i32, %c0_i32_0 : i32, i32
  }
  func.func @transform_3(%arg0: i32) -> (i32, i32, i32) {
    %c0_i32 = arith.constant 0 : i32
    %c0_i32_0 = arith.constant 0 : i32
    %c0_i32_1 = arith.constant 0 : i32
    %c0_i32_2 = arith.constant 0 : i32
    return %c0_i32, %c0_i32_0, %c0_i32_1 : i32, i32, i32
  }
  func.func @transform_4(%arg0: i32) -> (i32, i32, i32) {
    %c0_i32 = arith.constant 0 : i32
    %c0_i32_0 = arith.constant 0 : i32
    %c0_i32_1 = arith.constant 0 : i32
    return %arg0, %c0_i32, %c0_i32_0 : i32, i32, i32
  }
  func.func @transform_5(%arg0: i32) -> (i32, i32, i32) {
    %c0_i32 = arith.constant 0 : i32
    %c0_i32_0 = arith.constant 0 : i32
    %c0_i32_1 = arith.constant 0 : i32
    return %arg0, %c0_i32, %c0_i32_0 : i32, i32, i32
  }
}

</mosaic_0001>

<bundles_post_ra>
// kernel: resblock_forward.5
= control target key start
LH: loop header
LB: loop body
LE: loop exit
PB: predicated region body
PF: predicated region fallthrough
CT: control target
= control target key end

     0   :  { %s592_s21 = smov 0   ;;  %s702_s0 = inlined_call_operand.vmem [shape: bf16[2,80,128], index: 0, kind: input, shape index: {}]   ;;  %s703_s1 = inlined_call_operand.vmem [shape: f32[1,128], index: 1, kind: input, shape index: {}]   ;;  %s704_s2 = inlined_call_operand.vmem [shape: f32[1,128], index: 2, kind: input, shape index: {}]   ;;  %s705_s3 = inlined_call_operand.vmem [shape: bf16[2,80,128], index: 3, kind: input, shape index: {}]   ;;  %s706_s4 = inlined_call_operand.vmem [shape: f32[1,128], index: 4, kind: input, shape index: {}]   ;;  %s707_s5 = inlined_call_operand.vmem [shape: f32[1,128], index: 5, kind: input, shape index: {}]   ;;  %s708_s6 = inlined_call_operand.vmem [shape: f32[2,80,128], index: 6, kind: output, shape index: {}]  }
   0x1 LB: > { %s477_s22 = sadd.s32 4294967295, %s555_s21   ;;  %p481_p0 = scmp.ge.s32.totalorder %s555_s21, 1  ;;  %s555_s21 = sphi %s592_s21, %s16_s21  }
   0x2   : > { %p222_p1 = scmp.lt.s32.totalorder %s555_s21, 3 }
   0x4   : > { %p223_p2 = pnand %p481_p0, %p222_p1 }
   0x5   : > { %p257_p3 = scmp.lt.s32.totalorder (!%p223_p2), %s477_s22, 1  ;;  %v616_v0 = vld [vmem:[%s706_s4] ss:$0 sm:$0xff] (!%p223_p2) }
   0x6   : > { %226 = sbr.rel (%p223_p2) target bundleno = 45 (0x2d), region = 44  ;;  %v621_v1 = vld [vmem:[%s703_s1] ss:$0 sm:$0xff] (!%p223_p2) }
   0x7   : > { %v630_v10 = vld [vmem:[%s707_s5] ss:$0 sm:$0xff] (!%p223_p2) }
   0x8   : > { %v635_v11 = vld [vmem:[%s704_s2] ss:$0 sm:$0xff] (!%p223_p2) }
   0xd   : > { %s710_s22 = smov (!%p257_p3, %s477_s22), 1 }
   0xe   : > { %s539_s23 = smul.u32 40, %s710_s22 }
   0xf   : > { %s540_s14 = smul.u32 80, %s710_s22 }
  0x10   : > { %s606_s26 = scalar_lea.vmem %s702_s0, %s539_s23  ;;  %s611_s29 = scalar_lea.vmem %s705_s3, %s539_s23 }
  0x11   : > { %v492_v2 = vld [vmem:[%s611_s29] sm:$0xff]   ;;  %v531_v4 = vld [vmem:[%s611_s29 + $0x8] sm:$0xff]   ;;  %v532_v24 = vld [vmem:[%s611_s29 + $0x10] sm:$0xff]   ;;  %s659_s17 = scalar_lea.vmem %s708_s6, %s540_s14 }
  0x12   : > { %v512_v3 = vld [vmem:[%s606_s26] sm:$0xff]   ;;  %v493_v5 = vunpack.c.l.bf16 %v492_v2  ;;  %v494_v7 = vunpack.c.h.bf16 %v492_v2  ;;  %v535_v9 = vld [vmem:[%s606_s26 + $0x8] sm:$0xff]   ;;  %v497_v12 = vunpack.c.l.bf16 %v531_v4  ;;  %v498_v14 = vunpack.c.h.bf16 %v531_v4  ;;  %v536_v25 = vld [vmem:[%s606_s26 + $0x10] sm:$0xff]  }
  0x13   : > { %v513_v6 = vunpack.c.l.bf16 %v512_v3  ;;  %v514_v8 = vunpack.c.h.bf16 %v512_v3  ;;  %v517_v13 = vunpack.c.l.bf16 %v535_v9  ;;  %v518_v15 = vunpack.c.h.bf16 %v535_v9  ;;  %v533_v42 = vld [vmem:[%s611_s29 + $0x18] sm:$0xff]   ;;  %v534_v52 = vld [vmem:[%s611_s29 + $0x20] sm:$0xff]  }
  0x14   : > { %v299_v16 = vmul.f32 %v493_v5, %v616_v0  ;;  %v300_v18 = vmul.f32 %v494_v7, %v616_v0  ;;  %v301_v20 = vmul.f32 %v497_v12, %v616_v0  ;;  %v302_v22 = vmul.f32 %v498_v14, %v616_v0  ;;  %v537_v43 = vld [vmem:[%s606_s26 + $0x18] sm:$0xff]   ;;  %v538_v57 = vld [vmem:[%s606_s26 + $0x20] sm:$0xff]  }
  0x15   : > { %v353_v17 = vmul.f32 %v513_v6, %v621_v1  ;;  %v354_v19 = vmul.f32 %v514_v8, %v621_v1  ;;  %v355_v21 = vmul.f32 %v517_v13, %v621_v1  ;;  %v356_v23 = vmul.f32 %v518_v15, %v621_v1 }
  0x16   : > { %v316_v26 = vadd.f32 %v630_v10, %v299_v16  ;;  %v317_v28 = vadd.f32 %v630_v10, %v300_v18  ;;  %v318_v30 = vadd.f32 %v630_v10, %v301_v20  ;;  %v319_v32 = vadd.f32 %v630_v10, %v302_v22 }
  0x17   : > { %v370_v27 = vadd.f32 %v635_v11, %v353_v17  ;;  %v371_v29 = vadd.f32 %v635_v11, %v354_v19  ;;  %v372_v31 = vadd.f32 %v635_v11, %v355_v21  ;;  %v373_v33 = vadd.f32 %v635_v11, %v356_v23 }
  0x18   : > { %v501_v36 = vunpack.c.l.bf16 %v532_v24  ;;  %v521_v37 = vunpack.c.l.bf16 %v536_v25  ;;  %v502_v40 = vunpack.c.h.bf16 %v532_v24  ;;  %v522_v41 = vunpack.c.h.bf16 %v536_v25 }
  0x19   : > { %v380_v34 = vadd.f32 %v370_v27, %v316_v26  ;;  %v381_v35 = vadd.f32 %v371_v29, %v317_v28  ;;  %v382_v38 = vadd.f32 %v372_v31, %v318_v30  ;;  %v383_v39 = vadd.f32 %v373_v33, %v319_v32 }
  0x1a   : > { %v303_v46 = vmul.f32 %v501_v36, %v616_v0  ;;  %v357_v47 = vmul.f32 %v521_v37, %v621_v1  ;;  %v304_v50 = vmul.f32 %v502_v40, %v616_v0  ;;  %v358_v51 = vmul.f32 %v522_v41, %v621_v1 }
  0x1b   : > { %v390_v44 = vmax.f32 %v380_v34, 0.0  ;;  %v391_v45 = vmax.f32 %v381_v35, 0.0  ;;  %v392_v48 = vmax.f32 %v382_v38, 0.0  ;;  %v393_v49 = vmax.f32 %v383_v39, 0.0 }
  0x1c   : > { %v320_v53 = vadd.f32 %v630_v10, %v303_v46  ;;  %v374_v54 = vadd.f32 %v635_v11, %v357_v47  ;;  %v505_v55 = vunpack.c.l.bf16 %v533_v42  ;;  %v525_v56 = vunpack.c.l.bf16 %v537_v43 }
  0x1d   : > { %400 = vst [vmem:[%s659_s17] sm:$0xff] %v390_v44  ;;  %401 = vst [vmem:[%s659_s17 + $0x8] sm:$0xff] %v391_v45  ;;  %v321_v58 = vadd.f32 %v630_v10, %v304_v50  ;;  %v375_v59 = vadd.f32 %v635_v11, %v358_v51  ;;  %v506_v60 = vunpack.c.h.bf16 %v533_v42  ;;  %v526_v61 = vunpack.c.h.bf16 %v537_v43 }
  0x1e   : > { %402 = vst [vmem:[%s659_s17 + $0x10] sm:$0xff] %v392_v48  ;;  %403 = vst [vmem:[%s659_s17 + $0x18] sm:$0xff] %v393_v49  ;;  %v384_v62 = vadd.f32 %v374_v54, %v320_v53  ;;  %v305_v63 = vmul.f32 %v505_v55, %v616_v0  ;;  %v359_v2 = vmul.f32 %v525_v56, %v621_v1  ;;  %v509_v3 = vunpack.c.l.bf16 %v534_v52 }
  0x1f   : > { %v385_v4 = vadd.f32 %v375_v59, %v321_v58  ;;  %v306_v5 = vmul.f32 %v506_v60, %v616_v0  ;;  %v360_v6 = vmul.f32 %v526_v61, %v621_v1  ;;  %v529_v7 = vunpack.c.l.bf16 %v538_v57 }
  0x20   : > { %v394_v8 = vmax.f32 %v384_v62, 0.0  ;;  %v322_v9 = vadd.f32 %v630_v10, %v305_v63  ;;  %v376_v12 = vadd.f32 %v635_v11, %v359_v2  ;;  %v307_v13 = vmul.f32 %v509_v3, %v616_v0 }
  0x21   : > { %v395_v14 = vmax.f32 %v385_v4, 0.0  ;;  %v323_v15 = vadd.f32 %v630_v10, %v306_v5  ;;  %v377_v16 = vadd.f32 %v635_v11, %v360_v6  ;;  %v361_v17 = vmul.f32 %v529_v7, %v621_v1 }
  0x22   : > { %404 = vst [vmem:[%s659_s17 + $0x20] sm:$0xff] %v394_v8  ;;  %v386_v18 = vadd.f32 %v376_v12, %v322_v9  ;;  %v324_v19 = vadd.f32 %v630_v10, %v307_v13  ;;  %v510_v20 = vunpack.c.h.bf16 %v534_v52  ;;  %v530_v21 = vunpack.c.h.bf16 %v538_v57 }
  0x23   : > { %405 = vst [vmem:[%s659_s17 + $0x28] sm:$0xff] %v395_v14  ;;  %v387_v22 = vadd.f32 %v377_v16, %v323_v15  ;;  %v378_v23 = vadd.f32 %v635_v11, %v361_v17 }
  0x24   : > { %v396_v24 = vmax.f32 %v386_v18, 0.0  ;;  %v308_v25 = vmul.f32 %v510_v20, %v616_v0  ;;  %v362_v26 = vmul.f32 %v530_v21, %v621_v1 }
  0x25   : > { %v397_v27 = vmax.f32 %v387_v22, 0.0  ;;  %v388_v28 = vadd.f32 %v378_v23, %v324_v19 }
  0x26   : > { %406 = vst [vmem:[%s659_s17 + $0x30] sm:$0xff] %v396_v24  ;;  %v325_v29 = vadd.f32 %v630_v10, %v308_v25  ;;  %v379_v30 = vadd.f32 %v635_v11, %v362_v26 }
  0x27   : > { %407 = vst [vmem:[%s659_s17 + $0x38] sm:$0xff] %v397_v27  ;;  %v398_v31 = vmax.f32 %v388_v28, 0.0 }
  0x28   : > { %v389_v32 = vadd.f32 %v379_v30, %v325_v29 }
  0x29   : > { %408 = vst [vmem:[%s659_s17 + $0x40] sm:$0xff] %v398_v31 }
  0x2a   : > { %v399_v33 = vmax.f32 %v389_v32, 0.0 }
  0x2c   : > { %409 = vst [vmem:[%s659_s17 + $0x48] sm:$0xff] %v399_v33 }
  0x2d PF: > { %s16_s21 = sadd.s32 1, %s555_s21  }
  0x2e   : > { %p13_p4 = scmp.ge.s32.totalorder %s16_s21, 4  }
  0x30   :  { %15 = sbr.rel (!%p13_p4) target bundleno = 1 (0x1), region = 77 }

// kernel: resblock_forward.3
= control target key start
LH: loop header
LB: loop body
LE: loop exit
PB: predicated region body
PF: predicated region fallthrough
CT: control target
= control target key end

     0   :  { %s2024_s21 = smov 0   ;;  %s2527_s0 = inlined_call_operand.vmem [shape: bf16[2,100,16], index: 0, kind: input, shape index: {}]   ;;  %s2528_s1 = inlined_call_operand.vmem [shape: bf16[4,16,128], index: 1, kind: input, shape index: {}]   ;;  %s2529_s2 = inlined_call_operand.vmem [shape: bf16[16,128], index: 2, kind: input, shape index: {}]   ;;  %s2530_s3 = inlined_call_operand.vmem [shape: bf16[2,80,128], index: 3, kind: output, shape index: {0}]   ;;  %s2531_s4 = inlined_call_operand.vmem [shape: f32[2,2,128], index: 4, kind: output, shape index: {1}]   ;;  %s2532_s5 = inlined_call_operand.vmem [shape: bf16[2,80,128], index: 5, kind: output, shape index: {2}]   ;;  %s2533_s6 = inlined_call_operand.vmem [shape: f32[2,2,128], index: 6, kind: output, shape index: {3}]  }
   0x1 LB: > { %s1568_s22 = sadd.s32 4294967295, %s1985_s21   ;;  %p1572_p0 = scmp.ge.s32.totalorder %s1985_s21, 1  ;;  %s1985_s21 = sphi %s2024_s21, %s17_s21  }
   0x2   : > { %p219_p1 = scmp.lt.s32.totalorder %s1985_s21, 3 }
   0x4   : > { %p220_p2 = pnand %p1572_p0, %p219_p1 }
   0x5   : > { %v1956_v0 = vld [vmem:[%s2528_s1] sm:$0xff] (!%p220_p2)   ;;  %v1987_v1 = vmov (!%p220_p2), 0.0   ;;  %p262_p3 = scmp.lt.s32.totalorder (!%p220_p2), %s1568_s22, 1  ;;  %vm1988_vm0 = vmmov (!%p220_p2), 0   ;;  %v1959_v2 = vld [vmem:[%s2528_s1 + $0x8] sm:$0xff] (!%p220_p2)   ;;  %vm562_vm1 = vcmask (!%p220_p2), 130048  }
   0x6   : > { %223 = sbr.rel (%p220_p2) target bundleno = 349 (0x15d), region = 32  ;;  %1784 = vmatprep.subr.bf16.mxu0 (!%p220_p2), %v1987_v1  ;;  %1762 = vmatprep.subr.bf16.mxu1 (!%p220_p2), %v1987_v1  ;;  %v1958_v3 = vld [vmem:[%s2528_s1 + $0x10] sm:$0xff] (!%p220_p2)   ;;  %vm511_vm2 = vsmask.f32 (!%p220_p2), 7424  ;;  %vm782_vm3 = vcmask (!%p220_p2), 1046528   ;;  %v1965_v33 = vld [vmem:[%s2528_s1 + $0x18] sm:$0xff] (!%p220_p2)  }
   0x7   : > { %1785 = vmatpush3.bf16.msra.mxu0 (!%p220_p2), %v1956_v0  ;;  %1786 = vmatprep.mubr.msk.bf16.mxu0 (!%p220_p2), %vm1988_vm0, %v1987_v1  ;;  %v1971_v51 = vld [vmem:[%s2529_s2] sm:$0xff] (!%p220_p2)   ;;  %vm905_vm4 = vsmask.f32 (!%p220_p2), 6400 }
   0x8   : > { %1806 = vmatprep.subr.bf16.mxu0 (!%p220_p2), %v1987_v1  ;;  %1764 = vmatprep.mubr.msk.bf16.mxu1 (!%p220_p2), %vm1988_vm0, %v1987_v1 }
   0x9   : > { %1763 = vmatpush3.bf16.msra.mxu1 (!%p220_p2), %v1959_v2 }
   0xa   : > { %1872 = vmatprep.subr.bf16.mxu1 (!%p220_p2), %v1987_v1 }
   0xd   : > { %s2575_s22 = smov (!%p262_p3, %s1568_s22), 1 }
   0xe   : > { %s1924_s27 = smul.u32 52, %s2575_s22  ;;  %s1575_s20 = sshll.u32 %s2575_s22, 1 }
   0xf   : > { %s1925_s13 = smul.u32 40, %s2575_s22  ;;  %s284_s25 = scalar_lea.vmem %s2533_s6, %s1575_s20 }
  0x10   : > { %s2052_s30 = scalar_lea.vmem %s2527_s0, %s1924_s27  ;;  %s275_s27 = scalar_lea.vmem %s2531_s4, %s1575_s20 }
  0x11   : > { %v1957_v4 = vld [vmem:[%s2052_s30] sm:$0xff]   ;;  %v1960_v5 = vld [vmem:[%s2052_s30 + $0x8] sm:$0xff]   ;;  %v1961_v9 = vld [vmem:[%s2052_s30 + $0x10] sm:$0xff]   ;;  %s2320_s16 = scalar_lea.vmem %s2532_s5, %s1925_s13  ;;  %s2348_s19 = scalar_lea.vmem %s2530_s3, %s1925_s13 }
  0x12   : > { %1787 = vmatmul.mubr.msk.bf16.vlgmr.msra.gmra.mrb[0].mxu0 %vm562_vm1, %v1957_v4  ;;  %v513_v6 = vshrl.u32 %v1957_v4, 16  ;;  %v515_v7 = vshll.u32 %v1957_v4, 16  ;;  %v520_v8 = vshll.u32 %v1960_v5, 16  ;;  %v524_v13 = vshrl.u32 %v1960_v5, 16  ;;  %v1962_v18 = vld [vmem:[%s2052_s30 + $0x18] sm:$0xff]   ;;  %v2076_v23 = vld [vmem:[%s2052_s30 + $0xc] sm:$0xff]  }
  0x13   : > { %1807 = vmatpush3.bf16.msra.mxu0 %v1958_v3  ;;  %1790 = vmatprep.mubr.msk.bf16.mxu0 %vm1988_vm0, %v1987_v1  ;;  %v528_v14 = vshll.u32 %v1961_v9, 16  ;;  %v532_v20 = vshrl.u32 %v1961_v9, 16  ;;  %v536_v21 = vshll.u32 %v1962_v18, 16  ;;  %v1963_v22 = vld [vmem:[%s2052_s30 + $0x4] sm:$0xfe]   ;;  %v784_v28 = vrot.slane %v2076_v23, 1 }
  0x14   : > { %v517_v10 = vrot.slane %v515_v7, 1  ;;  %1828 = vmatprep.subr.bf16.mxu0 %v1987_v1  ;;  %v522_v11 = vrot.slane %v520_v8, 1  ;;  %v1966_v26 = vld [vmem:[%s2052_s30 + $0x20] sm:$0xff]   ;;  %v783_v27 = vrot.slane %v1963_v22, 1  ;;  %v540_v30 = vshrl.u32 %v1962_v18, 16  ;;  %v1967_v34 = vld [vmem:[%s2052_s30 + $0x14] sm:$0xff]  }
  0x15   : > { %v530_v17 = vrot.slane %v528_v14, 1  ;;  %v538_v25 = vrot.slane %v536_v21, 1  ;;  %v544_v31 = vshll.u32 %v1966_v26, 16  ;;  %v1968_v37 = vld [vmem:[%s2052_s30 + $0x28] ss:$0 sps:$4 sm:$0x11]  }
  0x16   : > { %v518_v12 = vor.u32 %v517_v10, %v513_v6  ;;  %v526_v16 = vor.u32 %v524_v13, %v522_v11  ;;  %v785_v32 = vsel %vm782_vm3, %v783_v27, %v784_v28  ;;  %v786_v38 = vrot.slane %v1967_v34, 1  ;;  %v1969_v43 = vld [vmem:[%s2052_s30 + $0x1c] sm:$0xff]   ;;  %v1970_v49 = vld [vmem:[%s2052_s30 + $0x24] sm:$0xff]   ;;  %v1972_v52 = vld [vmem:[%s2052_s30 + $0x2c] ss:$0 sps:$4 sm:$0x11]  }
  0x17   : > { %v534_v24 = vor.u32 %v532_v20, %v530_v17  ;;  %v542_v35 = vor.u32 %v540_v30, %v538_v25  ;;  %v546_v36 = vrot.slane %v544_v31, 1  ;;  %v548_v40 = vshrl.u32 %v1966_v26, 16  ;;  %v1976_v27 = vld [vmem:[%s2052_s30 + $0x18] sm:$0xff]  }
  0x18   : > { %v523_v15 = vsel %vm511_vm2, %v518_v12, %v522_v11  ;;  %v531_v19 = vsel %vm511_vm2, %v526_v16, %v530_v17  ;;  %v552_v41 = vshll.u32 %v1968_v37, 16  ;;  %v787_v42 = vsel %vm782_vm3, %v784_v28, %v786_v38  ;;  %v1974_v12 = vld [vmem:[%s2052_s30 + $0x8] sm:$0xff]  }
  0x19   : > { %1765 = vmatmul.mubr.msk.bf16.vlgmr.msra.gmra.mrb[0].mxu1 %vm562_vm1, %v523_v15  ;;  %v539_v29 = vsel %vm511_vm2, %v534_v24, %v538_v25  ;;  %v547_v39 = vsel %vm511_vm2, %v542_v35, %v546_v36  ;;  %v550_v44 = vor.u32 %v548_v40, %v546_v36  ;;  %v788_v46 = vrot.slane %v1969_v43, 1 }
  0x1a   : > { %1791 = vmatmul.mubr.msk.bf16.gmra.mrb[4].mxu0 %vm562_vm1, %v1960_v5  ;;  %1873 = vmatpush3.bf16.msra.mxu1 %v1956_v0  ;;  %v554_v45 = vrot.slane %v552_v41, 1  ;;  %v790_v50 = vrot.slane %v1970_v49, 1  ;;  %v792_v54 = vrot.slane %v1972_v52, 1  ;;  %v907_v55 = vshrl.u32 %v1963_v22, 16  ;;  %v1973_v5 = vld [vmem:[%s2052_s30] sm:$0xff]  }
  0x1b   : > { %1768 = vmatprep.mubr.msk.bf16.mxu1 %vm1988_vm0, %v1987_v1  ;;  %1794 = vmatprep.mubr.msk.bf16.mxu0 %vm1988_vm0, %v1987_v1  ;;  %v789_v48 = vsel %vm782_vm3, %v786_v38, %v788_v46  ;;  %v910_v56 = vshll.u32 %v1963_v22, 16  ;;  %v915_v57 = vshrl.u32 %v2076_v23, 16  ;;  %v918_v58 = vshll.u32 %v2076_v23, 16  ;;  %v1978_v23 = vld [vmem:[%s2052_s30 + $0x2c] ss:$0 sps:$4 sm:$0x33]  }
  0x1c   : > { %1850 = vmatprep.subr.bf16.mxu1 %v1987_v1  ;;  %v555_v47 = vsel %vm511_vm2, %v550_v44, %v554_v45  ;;  %v791_v53 = vsel %vm782_vm3, %v788_v46, %v790_v50  ;;  %v793_v59 = vsel %vm782_vm3, %v790_v50, %v792_v54  ;;  %v909_v60 = vrot.slane %v907_v55, 1 }
  0x1d   : > { %v912_v61 = vrot.slane %v910_v56, 2  ;;  %v917_v62 = vrot.slane %v915_v57, 1  ;;  %v920_v63 = vrot.slane %v918_v58, 2  ;;  %v924_v3 = vshrl.u32 %v1967_v34, 16 }
  0x1e   : > { %v927_v4 = vshll.u32 %v1967_v34, 16  ;;  %v933_v10 = vshrl.u32 %v1969_v43, 16  ;;  %v936_v11 = vshll.u32 %v1969_v43, 16  ;;  %v942_v17 = vshrl.u32 %v1970_v49, 16 }
  0x1f   : > { %v913_v0 = vor.u32 %v912_v61, %v909_v60  ;;  %v921_v2 = vor.u32 %v920_v63, %v917_v62  ;;  %v926_v7 = vrot.slane %v924_v3, 1  ;;  %v951_v25 = vshrl.u32 %v1978_v23, 16 }
  0x20   : > { %v929_v8 = vrot.slane %v927_v4, 2  ;;  %v935_v14 = vrot.slane %v933_v10, 1  ;;  %v938_v15 = vrot.slane %v936_v11, 2  ;;  %v944_v21 = vrot.slane %v942_v17, 1 }
  0x21   : > { %1769 = vmatmul.mubr.msk.bf16.gmra.mrb[4].mxu1 %vm562_vm1, %v531_v19  ;;  %v922_v6 = vsel %vm905_vm4, %v913_v0, %v921_v2  ;;  %v1975_v19 = vld [vmem:[%s2052_s30 + $0x10] sm:$0xff]   ;;  %v286_v41 = vlaneseq }
  0x22   : > { %1795 = vmatmul.mubr.msk.bf16.gmra.mrb[8].mxu0 %vm562_vm1, %v1961_v9  ;;  %1772 = vmatprep.mubr.msk.bf16.mxu1 %vm1988_vm0, %v1987_v1  ;;  %v930_v9 = vor.u32 %v929_v8, %v926_v7  ;;  %v939_v16 = vor.u32 %v938_v15, %v935_v14 }
  0x23   : > { %1808 = vmatprep.mubr.msk.bf16.mxu0 %vm1988_vm0, %v1987_v1  ;;  %v2184_v44 = vshrl.u32 %v286_v41, 7 }
  0x24   : > { %v931_v13 = vsel %vm905_vm4, %v921_v2, %v930_v9  ;;  %v940_v20 = vsel %vm905_vm4, %v930_v9, %v939_v16 }
  0x25   : > { %v289_v52 = vadd.s32 16, %v2184_v44  ;;  %v292_v61 = vadd.s32 40, %v2184_v44  ;;  %v2217_v7 = vadd.s32 48, %v2184_v44  ;;  %v2225_v15 = vadd.s32 56, %v2184_v44 }
  0x27   : > { %v2198_v54 = vmul.u32.u64.low 3435973837, %v289_v52  ;;  %v2199_v55 = vmul.u32.u64.high 3435973837, %v289_v52, %v2198_v54 }
  0x29   : > { %1773 = vmatmul.mubr.msk.bf16.gmra.mrb[8].mxu1 %vm562_vm1, %v539_v29  ;;  %v953_v29 = vrot.slane %v951_v25, 1  ;;  %v325_v3 = vshrl.u32 %v2199_v55, 3 }
  0x2a   : > { %1809 = vmatmul.mubr.msk.bf16.vlgmr.msra.gmra.mrb[0].mxu0 %vm562_vm1, %v785_v32  ;;  %1776 = vmatprep.mubr.msk.bf16.mxu1 %vm1988_vm0, %v1987_v1  ;;  %v1977_v32 = vld [vmem:[%s2052_s30 + $0x20] sm:$0xff]  }
  0x2b   : > { %1829 = vmatpush3.bf16.msra.mxu0 %v1965_v33  ;;  %1812 = vmatprep.mubr.msk.bf16.mxu0 %vm1988_vm0, %v1987_v1 }
  0x31   : > { %1777 = vmatmul.mubr.msk.bf16.gmra.mrb[12].mxu1 %vm562_vm1, %v547_v39 }
  0x32   : > { %1813 = vmatmul.mubr.msk.bf16.gmra.mrb[4].mxu0 %vm562_vm1, %v787_v42  ;;  %1780 = vmatprep.mubr.msk.bf16.mxu1 %vm1988_vm0, %v1987_v1 }
  0x33   : > { %1816 = vmatprep.mubr.msk.bf16.mxu0 %vm1988_vm0, %v1987_v1 }
  0x39   : > { %1781 = vmatmul.mubr.msk.bf16.gmra.mrb[16].mxu1 %vm562_vm1, %v555_v47  ;;  %v288_v47 = vadd.s32 8, %v2184_v44 }
  0x3a   : > { %1817 = vmatmul.mubr.msk.bf16.gmra.mrb[8].mxu0 %vm562_vm1, %v789_v48  ;;  %1798 = vmatprep.mubr.msk.bf16.mxu1 %vm1988_vm0, %v1987_v1 }
  0x3b   : > { %1820 = vmatprep.mubr.msk.bf16.mxu0 %vm1988_vm0, %v1987_v1 }
  0x41   : > { %1799 = vmatmul.mubr.msk.bf16.vlgmr.msra.gmra.mrb[12].mxu1 %vm562_vm1, %v1962_v18  ;;  %v945_v18 = vshll.u32 %v1970_v49, 16  ;;  %v2190_v48 = vmul.u32.u64.low 3435973837, %v2184_v44  ;;  %v2191_v49 = vmul.u32.u64.high 3435973837, %v2184_v44, %v2190_v48 }
  0x42   : > { %1821 = vmatmul.mubr.msk.bf16.gmra.mrb[12].mxu0 %vm562_vm1, %v791_v53  ;;  %1851 = vmatpush3.bf16.msra.mxu1 %v1971_v51  ;;  %v2193_v50 = vmul.u32.u64.low 3435973837, %v288_v47  ;;  %v2194_v51 = vmul.u32.u64.high 3435973837, %v288_v47, %v2193_v50  ;;  %v290_v53 = vadd.s32 24, %v2184_v44 }
  0x43   : > { %1802 = vmatprep.mubr.msk.bf16.mxu1 %vm1988_vm0, %v1987_v1  ;;  %1824 = vmatprep.mubr.msk.bf16.mxu0 %vm1988_vm0, %v1987_v1  ;;  %v947_v22 = vrot.slane %v945_v18, 2  ;;  %v303_v58 = vshrl.u32 %v2191_v49, 3  ;;  %v2228_v17 = vmul.u32.u64.low 3435973837, %v2217_v7  ;;  %v2229_v18 = vmul.u32.u64.high 3435973837, %v2217_v7, %v2228_v17 }
  0x44   : > { %v2201_v56 = vmul.u32.u64.low 3435973837, %v290_v53  ;;  %v2202_v57 = vmul.u32.u64.high 3435973837, %v290_v53, %v2201_v56  ;;  %v314_v60 = vshrl.u32 %v2194_v51, 3  ;;  %v2280_v51 = vadd.s32 72, %v2184_v44 }
  0x45   : > { %v948_v24 = vor.u32 %v947_v22, %v944_v21  ;;  %v304_v62 = vmul.u32 10, %v303_v58  ;;  %v369_v41 = vshrl.u32 %v2229_v18, 3 }
  0x46   : > { %v315_v2 = vmul.u32 10, %v314_v60 }
  0x47   : > { %v949_v28 = vsel %vm905_vm4, %v939_v16, %v948_v24  ;;  %v305_v9 = vsub.s32 %v2184_v44, %v304_v62  ;;  %v370_v56 = vmul.u32 10, %v369_v41 }
  0x48   : > { %v316_v11 = vsub.s32 %v288_v47, %v315_v2 }
  0x49   : > { %1803 = vmatmul.mubr.msk.bf16.gmra.mrb[16].mxu1 %vm562_vm1, %v1966_v26  ;;  %v954_v26 = vshll.u32 %v1978_v23, 16  ;;  %vm407_vm5 = vcmp.ne.s32.totalorder %v305_v9, 0  ;;  %vm417_vm6 = vcmp.lt.s32.totalorder %v305_v9, 0  ;;  %v437_v22 = vadd.s32 10, %v305_v9 }
  0x4a   : > { %1825 = vmatmul.mubr.msk.bf16.gmra.mrb[16].mxu0 %vm562_vm1, %v793_v59  ;;  %1852 = vmatprep.mubr.msk.bf16.mxu1 %vm1988_vm0, %v1987_v1  ;;  %v291_v59 = vadd.s32 32, %v2184_v44  ;;  %vm408_vm7 = vcmp.ne.s32.totalorder %v316_v11, 0  ;;  %vm418_vm8 = vcmp.lt.s32.totalorder %v316_v11, 0  ;;  %vm2241_vm9 = vmand %vm417_vm6, %vm407_vm5 }
  0x4b   : > { %1830 = vmatprep.mubr.msk.bf16.mxu0 %vm1988_vm0, %v1987_v1  ;;  %v956_v30 = vrot.slane %v954_v26, 2  ;;  %vm2247_vm10 = vmand %vm418_vm8, %vm408_vm7 }
  0x4c   : > { %v2208_v63 = vmul.u32.u64.low 3435973837, %v291_v59  ;;  %v2209_v0 = vmul.u32.u64.high 3435973837, %v291_v59, %v2208_v63 }
  0x4d   : > { %v957_v31 = vor.u32 %v956_v30, %v953_v29 }
  0x4f   : > { %v958_v33 = vsel %vm905_vm4, %v948_v24, %v957_v31  ;;  %v2238_v24 = vmul.u32.u64.low 3435973837, %v2225_v15  ;;  %v2239_v25 = vmul.u32.u64.high 3435973837, %v2225_v15, %v2238_v24 }
  0x51   : > { %1853 = vmatmul.mubr.msk.bf16.vlgmr.msra.gmra.mrb[20].mxu1 %vm562_vm1, %v1973_v5  ;;  %v2212_v4 = vmul.u32.u64.low 3435973837, %v292_v61  ;;  %v2213_v5 = vmul.u32.u64.high 3435973837, %v292_v61, %v2212_v4  ;;  %v380_v54 = vshrl.u32 %v2239_v25, 3 }
  0x52   : > { %1831 = vmatmul.mubr.msk.bf16.vlgmr.msra.gmra.mrb[0].mxu0 %vm562_vm1, %v922_v6  ;;  %1856 = vmatprep.mubr.msk.bf16.mxu1 %vm1988_vm0, %v1987_v1  ;;  %v336_v6 = vshrl.u32 %v2202_v57, 3 }
  0x53   : > { %1834 = vmatprep.mubr.msk.bf16.mxu0 %vm1988_vm0, %v1987_v1  ;;  %v358_v21 = vshrl.u32 %v2213_v5, 3 }
  0x54   : > { %v337_v14 = vmul.u32 10, %v336_v6 }
  0x56   : > { %v2235_v23 = vsub.s32 %v290_v53, %v337_v14 }
  0x58   : > { %vm410_vm13 = vcmp.ne.s32.totalorder %v2235_v23, 0  ;;  %vm420_vm14 = vcmp.lt.s32.totalorder %v2235_v23, 0  ;;  %v440_v47 = vadd.s32 10, %v2235_v23 }
  0x59   : > { %1857 = vmatmul.mubr.msk.bf16.gmra.mrb[24].mxu1 %vm562_vm1, %v1974_v12  ;;  %v326_v12 = vmul.u32 10, %v325_v3 }
  0x5a   : > { %1835 = vmatmul.mubr.msk.bf16.gmra.mrb[4].mxu0 %vm562_vm1, %v931_v13  ;;  %1860 = vmatprep.mubr.msk.bf16.mxu1 %vm1988_vm0, %v1987_v1 }
  0x5b   : > { %1838 = vmatprep.mubr.msk.bf16.mxu0 %vm1988_vm0, %v1987_v1 }
  0x61   : > { %1861 = vmatmul.mubr.msk.bf16.gmra.mrb[28].mxu1 %vm562_vm1, %v1975_v19  ;;  %v347_v19 = vshrl.u32 %v2209_v0, 3  ;;  %v2311_v0 = vmul.u32.u64.low 3435973837, %v2280_v51  ;;  %v2312_v2 = vmul.u32.u64.high 3435973837, %v2280_v51, %v2311_v0 }
  0x62   : > { %1839 = vmatmul.mubr.msk.bf16.gmra.mrb[8].mxu0 %vm562_vm1, %v940_v20  ;;  %1864 = vmatprep.mubr.msk.bf16.mxu1 %vm1988_vm0, %v1987_v1  ;;  %v2232_v20 = vsub.s32 %v289_v52, %v326_v12 }
  0x63   : > { %1842 = vmatprep.mubr.msk.bf16.mxu0 %vm1988_vm0, %v1987_v1  ;;  %v348_v30 = vmul.u32 10, %v347_v19 }
  0x64   : > { %vm409_vm11 = vcmp.ne.s32.totalorder %v2232_v20, 0  ;;  %vm419_vm12 = vcmp.lt.s32.totalorder %v2232_v20, 0 }
  0x65   : > { %vm2266_vm15 = vmand %vm419_vm12, %vm409_vm11  ;;  %v2271_v48 = vsub.s32 %v291_v59, %v348_v30 }
  0x67   : > { %vm411_vm3 = vcmp.ne.s32.totalorder %v2271_v48, 0  ;;  %vm421_vm4 = vcmp.lt.s32.totalorder %v2271_v48, 0  ;;  %v2305_v60 = vadd.s32 10, %v2271_v48 }
  0x68   : > { %vm2338_vm7 = vmand %vm421_vm4, %vm411_vm3 }
  0x69   : > { %1865 = vmatmul.mubr.msk.bf16.gmra.mrb[32].mxu1 %vm562_vm1, %v1976_v27  ;;  %v438_v27 = vadd.s32 10, %v316_v11 }
  0x6a   : > { %1843 = vmatmul.mubr.msk.bf16.gmra.mrb[12].mxu0 %vm562_vm1, %v949_v28  ;;  %1868 = vmatprep.mubr.msk.bf16.mxu1 %vm1988_vm0, %v1987_v1 }
  0x6b   : > { %1846 = vmatprep.mubr.msk.bf16.mxu0 %vm1988_vm0, %v1987_v1  ;;  %vm2273_vm0 = vmand %vm420_vm14, %vm410_vm13 }
  0x6c   : > { %v450_v59 = vsel %vm2273_vm0, %v440_v47, %v2235_v23 }
  0x71   : > { %1869 = vmatmul.mubr.msk.bf16.gmra.mrb[36].mxu1 %vm562_vm1, %v1977_v32  ;;  %v359_v32 = vmul.u32 10, %v358_v21 }
  0x72   : > { %1847 = vmatmul.mubr.msk.bf16.gmra.mrb[16].mxu0 %vm562_vm1, %v958_v33 }
  0x73   : > { %v2277_v50 = vsub.s32 %v292_v61, %v359_v32 }
  0x75   : > { %vm412_vm5 = vcmp.ne.s32.totalorder %v2277_v50, 0  ;;  %vm422_vm6 = vcmp.lt.s32.totalorder %v2277_v50, 0 }
  0xec   : > { %v2174_v34 = vpop.f32.mrb[0].mxu1 }
  0xed   : > { %v1766_v35 = vpop.f32.mrb[1].mxu1 }
  0xee   : > { %v2176_v36 = vpop.f32.mrb[2].mxu1  ;;  %v447_v35 = vsel %vm2241_vm9, %v437_v22, %v305_v9  ;;  %v381_v9 = vmul.u32 10, %v380_v54  ;;  %vm2354_vm9 = vcmp.lt.s32.totalorder %v450_v59, 8 }
  0xef   : > { %v1767_v37 = vpop.f32.mrb[3].mxu1  ;;  %vm2282_vm1 = vcmp.lt.s32.totalorder %v447_v35, 8 }
  0xf4   : > { %v2178_v38 = vpop.f32.mrb[4].mxu1 }
  0xf5   : > { %v1770_v39 = vpop.f32.mrb[5].mxu1 }
  0xf6   : > { %v2180_v40 = vpop.f32.mrb[6].mxu1  ;;  %v448_v39 = vsel %vm2247_vm10, %v438_v27, %v316_v11  ;;  %vm2362_vm10 = vmand %vm422_vm6, %vm412_vm5  ;;  %v2369_v27 = vsub.s32 %v2225_v15, %v381_v9 }
  0xf7   : > { %v1771_v1 = vpop.f32.mrb[7].mxu1  ;;  %vm2287_vm2 = vcmp.lt.s32.totalorder %v448_v39, 8 }
  0xf8   : > { %v439_v1 = vadd.s32 10, %v2232_v20  ;;  %vm414_vm13 = vcmp.ne.s32.totalorder %v2369_v27, 0  ;;  %vm424_vm14 = vcmp.lt.s32.totalorder %v2369_v27, 0  ;;  %v444_v9 = vadd.s32 10, %v2369_v27 }
  0xfa   : > { %v449_v55 = vsel %vm2266_vm15, %v439_v1, %v2232_v20 }
  0xfb   : > { %vm2350_vm8 = vcmp.lt.s32.totalorder %v449_v55, 8 }
  0xfc   : > { %v2182_v42 = vpop.f32.mrb[8].mxu1 }
  0xfd   : > { %v1774_v43 = vpop.f32.mrb[9].mxu1 }
  0xfe   : > { %v2186_v45 = vpop.f32.mrb[10].mxu1  ;;  %v2264_v43 = vadd.s32 64, %v2184_v44 }
  0xff   : > { %v1775_v46 = vpop.f32.mrb[11].mxu1 }
 0x100   : > { %v2296_v44 = vmul.u32.u64.low 3435973837, %v2264_v43  ;;  %v2297_v57 = vmul.u32.u64.high 3435973837, %v2264_v43, %v2296_v44 }
 0x102   : > { %v391_v32 = vshrl.u32 %v2297_v57, 3 }
 0x114   : > { %v2219_v8 = vpop.f32.mrb[12].mxu1 }
 0x115   : > { %v1800_v10 = vpop.f32.mrb[13].mxu1 }
 0x116   : > { %v2222_v13 = vpop.f32.mrb[14].mxu1 }
 0x117   : > { %v1801_v16 = vpop.f32.mrb[15].mxu1 }
 0x118   : > { %v2329_v16 = vsub.s32 %v2217_v7, %v370_v56 }
 0x11a   : > { %vm413_vm11 = vcmp.ne.s32.totalorder %v2329_v16, 0  ;;  %vm423_vm12 = vcmp.lt.s32.totalorder %v2329_v16, 0  ;;  %v2386_v47 = vadd.s32 10, %v2329_v16 }
 0x11b   : > { %vm2406_vm0 = vmand %vm423_vm12, %vm413_vm11 }
 0x11c   : > { %v2245_v28 = vpop.f32.mrb[16].mxu1  ;;  %v453_v22 = vsel %vm2406_vm0, %v2386_v47, %v2329_v16 }
 0x11d   : > { %v1804_v31 = vpop.f32.mrb[17].mxu1  ;;  %vm2450_vm5 = vcmp.lt.s32.totalorder %v453_v22, 8 }
 0x11e   : > { %v2253_v33 = vpop.f32.mrb[18].mxu1 }
 0x11f   : > { %v1805_v37 = vpop.f32.mrb[19].mxu1 }
 0x120   : > { %v451_v37 = vsel %vm2338_vm7, %v2305_v60, %v2271_v48  ;;  %v402_v48 = vshrl.u32 %v2312_v2, 3 }
 0x121   : > { %vm2398_vm15 = vcmp.lt.s32.totalorder %v451_v37, 8 }
 0x124   : > { %v1277_v58 = vpop.f32.mrb[20].mxu1 }
 0x125   : > { %v1366_v61 = vsel %vm2282_vm1, %v1277_v58, 0.0  ;;  %v1014_v62 = vpop.f32.mrb[0].mxu0  ;;  %v1854_v63 = vpop.f32.mrb[21].mxu1 }
 0x126   : > { %v1392_v3 = vmul.f32 %v1366_v61, %v1366_v61  ;;  %v1874_v4 = vadd.f32 %v1014_v62, %v2174_v34  ;;  %v1832_v5 = vpop.f32.mrb[1].mxu0  ;;  %v1280_v6 = vpop.f32.mrb[22].mxu1  ;;  %v2326_v34 = vadd.s32 10, %v2277_v50 }
 0x127   : > { %v1702_v10 = vpack.c.bf16 %v1280_v6, %v1277_v58  ;;  %v1367_v11 = vsel %vm2287_vm2, %v1280_v6, 0.0  ;;  %v1017_v12 = vpop.f32.mrb[2].mxu0  ;;  %v1855_v14 = vpop.f32.mrb[23].mxu1  ;;  %v392_v58 = vmul.u32 10, %v391_v32 }
 0x128   : > { %v1133_v17 = vsel %vm2282_vm1, %v1874_v4, 0.0  ;;  %v1376_v18 = vadd.f32 %v1367_v11, %v1366_v61  ;;  %v1393_v19 = vmul.f32 %v1367_v11, %v1367_v11  ;;  %v1875_v20 = vadd.f32 %v1017_v12, %v2176_v36  ;;  %v1833_v21 = vpop.f32.mrb[3].mxu0 }
 0x129   : > { %1703 = vst [vmem:[%s2320_s16] sm:$0xff] %v1702_v10   ;;  %v1159_v29 = vmul.f32 %v1133_v17, %v1133_v17  ;;  %v452_v39 = vsel %vm2362_vm10, %v2326_v34, %v2277_v50  ;;  %v2414_v12 = vsub.s32 %v2264_v43, %v392_v58 }
 0x12a   : > { %v1402_v24 = vadd.f32 %v1393_v19, %v1392_v3  ;;  %v1677_v25 = vpack.c.bf16 %v1875_v20, %v1874_v4  ;;  %v1134_v26 = vsel %vm2287_vm2, %v1875_v20, 0.0  ;;  %v403_v3 = vmul.u32 10, %v402_v48  ;;  %vm2424_vm2 = vmand %vm424_vm14, %vm414_vm13 }
 0x12b   : > { %v1143_v30 = vadd.f32 %v1134_v26, %v1133_v17  ;;  %v1160_v31 = vmul.f32 %v1134_v26, %v1134_v26  ;;  %vm2416_vm1 = vcmp.lt.s32.totalorder %v452_v39, 8  ;;  %v454_v16 = vsel %vm2424_vm2, %v444_v9, %v2369_v27 }
 0x12c   : > { %1678 = vst [vmem:[%s2348_s19] sm:$0xff] %v1677_v25   ;;  %v1285_v35 = vpop.f32.mrb[24].mxu1  ;;  %v2436_v7 = vsub.s32 %v2280_v51, %v403_v3  ;;  %vm415_vm3 = vcmp.ne.s32.totalorder %v2414_v12, 0  ;;  %vm425_vm4 = vcmp.lt.s32.totalorder %v2414_v12, 0  ;;  %v445_v48 = vadd.s32 10, %v2414_v12 }
 0x12d   : > { %v1169_v15 = vadd.f32 %v1160_v31, %v1159_v29  ;;  %v1368_v1 = vsel %vm2350_vm8, %v1285_v35, 0.0  ;;  %v1022_v41 = vpop.f32.mrb[4].mxu0  ;;  %v1858_v46 = vpop.f32.mrb[25].mxu1 }
 0x12e   : > { %v1377_v49 = vadd.f32 %v1376_v18, %v1368_v1  ;;  %v1394_v52 = vmul.f32 %v1368_v1, %v1368_v1  ;;  %v1876_v53 = vadd.f32 %v1022_v41, %v2178_v38  ;;  %v1836_v50 = vpop.f32.mrb[5].mxu0  ;;  %v1288_v54 = vpop.f32.mrb[26].mxu1  ;;  %vm416_vm6 = vcmp.ne.s32.totalorder %v2436_v7, 0 }
 0x12f   : > { %v1707_v55 = vpack.c.bf16 %v1288_v54, %v1285_v35  ;;  %v1369_v56 = vsel %vm2354_vm9, %v1288_v54, 0.0  ;;  %v1025_v44 = vpop.f32.mrb[6].mxu0  ;;  %v1859_v57 = vpop.f32.mrb[27].mxu1  ;;  %vm426_vm7 = vcmp.lt.s32.totalorder %v2436_v7, 0 }
 0x130   : > { %v1403_v59 = vadd.f32 %v1402_v24, %v1394_v52  ;;  %v1135_v60 = vsel %vm2350_vm8, %v1876_v53, 0.0  ;;  %v1378_v61 = vadd.f32 %v1377_v49, %v1369_v56  ;;  %v1395_v38 = vmul.f32 %v1369_v56, %v1369_v56  ;;  %v1837_v62 = vpop.f32.mrb[7].mxu0  ;;  %vm2478_vm10 = vmand %vm426_vm7, %vm416_vm6 }
 0x131   : > { %v1144_v63 = vadd.f32 %v1143_v30, %v1135_v60  ;;  %v1161_v0 = vmul.f32 %v1135_v60, %v1135_v60  ;;  %1728 = vst [vmem:[%s2320_s16 + $0x8] sm:$0xff] %v1707_v55   ;;  %v1877_v2 = vadd.f32 %v1025_v44, %v2180_v40  ;;  %vm2459_vm8 = vcmp.lt.s32.totalorder %v454_v16, 8 }
 0x132   : > { %v1404_v4 = vadd.f32 %v1403_v59, %v1395_v38  ;;  %v446_v59 = vadd.s32 10, %v2436_v7 }
 0x133   : > { %v1170_v10 = vadd.f32 %v1169_v15, %v1161_v0  ;;  %v1682_v11 = vpack.c.bf16 %v1877_v2, %v1876_v53  ;;  %v1136_v40 = vsel %vm2354_vm9, %v1877_v2, 0.0  ;;  %vm2465_vm9 = vmand %vm425_vm4, %vm415_vm3 }
 0x134   : > { %v1145_v14 = vadd.f32 %v1144_v63, %v1136_v40  ;;  %v1162_v34 = vmul.f32 %v1136_v40, %v1136_v40  ;;  %v1293_v17 = vpop.f32.mrb[28].mxu1  ;;  %v456_v19 = vsel %vm2478_vm10, %v446_v59, %v2436_v7 }
 0x135   : > { %1724 = vst [vmem:[%s2348_s19 + $0x8] sm:$0xff] %v1682_v11   ;;  %v1370_v43 = vsel %vm2398_vm15, %v1293_v17, 0.0  ;;  %v1030_v20 = vpop.f32.mrb[8].mxu0  ;;  %v1862_v21 = vpop.f32.mrb[29].mxu1  ;;  %vm2500_vm12 = vcmp.lt.s32.totalorder %v456_v19, 8 }
 0x136   : > { %v1171_v36 = vadd.f32 %v1170_v10, %v1162_v34  ;;  %v1379_v23 = vadd.f32 %v1378_v61, %v1370_v43  ;;  %v1396_v24 = vmul.f32 %v1370_v43, %v1370_v43  ;;  %v1878_v25 = vadd.f32 %v1030_v20, %v2182_v42  ;;  %v1840_v26 = vpop.f32.mrb[9].mxu0  ;;  %v1296_v29 = vpop.f32.mrb[30].mxu1 }
 0x137   : > { %v1712_v30 = vpack.c.bf16 %v1296_v29, %v1293_v17  ;;  %v1371_v31 = vsel %vm2416_vm1, %v1296_v29, 0.0  ;;  %v1033_v32 = vpop.f32.mrb[10].mxu0  ;;  %v1863_v35 = vpop.f32.mrb[31].mxu1 }
 0x138   : > { %v1405_v51 = vadd.f32 %v1404_v4, %v1396_v24  ;;  %v1137_v37 = vsel %vm2398_vm15, %v1878_v25, 0.0  ;;  %v1380_v42 = vadd.f32 %v1379_v23, %v1371_v31  ;;  %v1397_v39 = vmul.f32 %v1371_v31, %v1371_v31  ;;  %v1841_v15 = vpop.f32.mrb[11].mxu0 }
 0x139   : > { %v1146_v1 = vadd.f32 %v1145_v14, %v1137_v37  ;;  %v1163_v41 = vmul.f32 %v1137_v37, %v1137_v37  ;;  %1729 = vst [vmem:[%s2320_s16 + $0x10] sm:$0xff] %v1712_v30   ;;  %v1879_v46 = vadd.f32 %v1033_v32, %v2186_v45 }
 0x13a   : > { %v1406_v47 = vadd.f32 %v1405_v51, %v1397_v39 }
 0x13b   : > { %v1172_v49 = vadd.f32 %v1171_v36, %v1163_v41  ;;  %v1687_v52 = vpack.c.bf16 %v1879_v46, %v1878_v25  ;;  %v1138_v53 = vsel %vm2416_vm1, %v1879_v46, 0.0 }
 0x13c   : > { %v1147_v50 = vadd.f32 %v1146_v1, %v1138_v53  ;;  %v1164_v45 = vmul.f32 %v1138_v53, %v1138_v53  ;;  %v1301_v54 = vpop.f32.mrb[32].mxu1 }
 0x13d   : > { %1725 = vst [vmem:[%s2348_s19 + $0x10] sm:$0xff] %v1687_v52   ;;  %v1372_v44 = vsel %vm2450_vm5, %v1301_v54, 0.0  ;;  %v1038_v57 = vpop.f32.mrb[12].mxu0  ;;  %v1866_v58 = vpop.f32.mrb[33].mxu1 }
 0x13e   : > { %v1173_v60 = vadd.f32 %v1172_v49, %v1164_v45  ;;  %v1381_v61 = vadd.f32 %v1380_v42, %v1372_v44  ;;  %v1398_v38 = vmul.f32 %v1372_v44, %v1372_v44  ;;  %v1880_v62 = vadd.f32 %v1038_v57, %v2219_v8  ;;  %v1844_v63 = vpop.f32.mrb[13].mxu0  ;;  %v1304_v0 = vpop.f32.mrb[34].mxu1 }
 0x13f   : > { %v1717_v3 = vpack.c.bf16 %v1304_v0, %v1301_v54  ;;  %v1373_v4 = vsel %vm2459_vm8, %v1304_v0, 0.0  ;;  %v1041_v5 = vpop.f32.mrb[14].mxu0  ;;  %v1867_v6 = vpop.f32.mrb[35].mxu1  ;;  %v455_v8 = vsel %vm2465_vm9, %v445_v48, %v2414_v12 }
 0x140   : > { %v1407_v9 = vadd.f32 %v1406_v47, %v1398_v38  ;;  %v1139_v10 = vsel %vm2450_vm5, %v1880_v62, 0.0  ;;  %v1382_v11 = vadd.f32 %v1381_v61, %v1373_v4  ;;  %v1399_v40 = vmul.f32 %v1373_v4, %v1373_v4  ;;  %v1845_v14 = vpop.f32.mrb[15].mxu0 }
 0x141   : > { %v1148_v34 = vadd.f32 %v1147_v50, %v1139_v10  ;;  %v1165_v17 = vmul.f32 %v1139_v10, %v1139_v10  ;;  %1730 = vst [vmem:[%s2320_s16 + $0x18] sm:$0xff] %v1717_v3   ;;  %v1881_v18 = vadd.f32 %v1041_v5, %v2222_v13  ;;  %vm2494_vm11 = vcmp.lt.s32.totalorder %v455_v8, 8 }
 0x142   : > { %v1408_v43 = vadd.f32 %v1407_v9, %v1399_v40 }
 0x143   : > { %v1174_v20 = vadd.f32 %v1173_v60, %v1165_v17  ;;  %v1692_v21 = vpack.c.bf16 %v1881_v18, %v1880_v62  ;;  %v1140_v22 = vsel %vm2459_vm8, %v1881_v18, 0.0 }
 0x144   : > { %v1149_v36 = vadd.f32 %v1148_v34, %v1140_v22  ;;  %v1166_v23 = vmul.f32 %v1140_v22, %v1140_v22  ;;  %v1309_v24 = vpop.f32.mrb[36].mxu1 }
 0x145   : > { %1726 = vst [vmem:[%s2348_s19 + $0x18] sm:$0xff] %v1692_v21   ;;  %v1374_v13 = vsel %vm2494_vm11, %v1309_v24, 0.0  ;;  %v1046_v7 = vpop.f32.mrb[16].mxu0  ;;  %v1870_v26 = vpop.f32.mrb[37].mxu1 }
 0x146   : > { %v1175_v29 = vadd.f32 %v1174_v20, %v1166_v23  ;;  %v1383_v30 = vadd.f32 %v1382_v11, %v1374_v13  ;;  %v1400_v31 = vmul.f32 %v1374_v13, %v1374_v13  ;;  %v1882_v32 = vadd.f32 %v1046_v7, %v2245_v28  ;;  %v1848_v35 = vpop.f32.mrb[17].mxu0  ;;  %v1312_v16 = vpop.f32.mrb[38].mxu1 }
 0x147   : > { %v1722_v51 = vpack.c.bf16 %v1312_v16, %v1309_v24  ;;  %v1375_v37 = vsel %vm2500_vm12, %v1312_v16, 0.0  ;;  %v1049_v42 = vpop.f32.mrb[18].mxu0  ;;  %v1871_v39 = vpop.f32.mrb[39].mxu1 }
 0x148   : > { %v1409_v15 = vadd.f32 %v1408_v43, %v1400_v31  ;;  %v1141_v1 = vsel %vm2494_vm11, %v1882_v32, 0.0  ;;  %v1384_v41 = vadd.f32 %v1383_v30, %v1375_v37  ;;  %v1401_v46 = vmul.f32 %v1375_v37, %v1375_v37  ;;  %v1849_v47 = vpop.f32.mrb[19].mxu0 }
 0x149   : > { %v1150_v27 = vadd.f32 %v1149_v36, %v1141_v1  ;;  %v1167_v48 = vmul.f32 %v1141_v1, %v1141_v1  ;;  %1731 = vst [vmem:[%s2320_s16 + $0x20] sm:$0xff] %v1722_v51   ;;  %v1883_v28 = vadd.f32 %v1049_v42, %v2253_v33 }
 0x14a   : > { %v1385_v49 = vrot.slane %v1384_v41, 4  ;;  %v1410_v52 = vadd.f32 %v1409_v15, %v1401_v46 }
 0x14b   : > { %v1176_v53 = vadd.f32 %v1175_v29, %v1167_v48  ;;  %v1697_v50 = vpack.c.bf16 %v1883_v28, %v1882_v32  ;;  %v1142_v45 = vsel %vm2500_vm12, %v1883_v28, 0.0 }
 0x14c   : > { %v1386_v54 = vadd.f32 %v1385_v49, %v1384_v41  ;;  %v1411_v55 = vrot.slane %v1410_v52, 4  ;;  %v1151_v56 = vadd.f32 %v1150_v27, %v1142_v45  ;;  %v1168_v44 = vmul.f32 %v1142_v45, %v1142_v45 }
 0x14d   : > { %1727 = vst [vmem:[%s2348_s19 + $0x20] sm:$0xff] %v1697_v50  }
 0x14e   : > { %v1387_v57 = vrot.slane %v1386_v54, 2  ;;  %v1412_v58 = vadd.f32 %v1411_v55, %v1410_v52  ;;  %v1152_v59 = vrot.slane %v1151_v56, 4  ;;  %v1177_v60 = vadd.f32 %v1176_v53, %v1168_v44 }
 0x150   : > { %v1388_v61 = vadd.f32 %v1387_v57, %v1386_v54  ;;  %v1413_v38 = vrot.slane %v1412_v58, 2  ;;  %v1153_v33 = vadd.f32 %v1152_v59, %v1151_v56  ;;  %v1178_v62 = vrot.slane %v1177_v60, 4 }
 0x152   : > { %v1389_v63 = vrot.slane %v1388_v61, 1  ;;  %v1414_v0 = vadd.f32 %v1413_v38, %v1412_v58  ;;  %v1154_v2 = vrot.slane %v1153_v33, 2  ;;  %v1179_v3 = vadd.f32 %v1178_v62, %v1177_v60 }
 0x154   : > { %v1390_v4 = vadd.f32 %v1389_v63, %v1388_v61  ;;  %v1415_v5 = vrot.slane %v1414_v0, 1  ;;  %v1155_v6 = vadd.f32 %v1154_v2, %v1153_v33  ;;  %v1180_v8 = vrot.slane %v1179_v3, 2 }
 0x156   : > { %1391 = vst [vmem:[%s284_s25] sm:$0x1] %v1390_v4  ;;  %v1416_v9 = vadd.f32 %v1415_v5, %v1414_v0  ;;  %v1156_v10 = vrot.slane %v1155_v6, 1  ;;  %v1181_v11 = vadd.f32 %v1180_v8, %v1179_v3 }
 0x158   : > { %1417 = vst [vmem:[%s284_s25 + $0x1] sm:$0x1] %v1416_v9  ;;  %v1157_v40 = vadd.f32 %v1156_v10, %v1155_v6  ;;  %v1182_v14 = vrot.slane %v1181_v11, 1 }
 0x15a   : > { %1158 = vst [vmem:[%s275_s27] sm:$0x1] %v1157_v40  ;;  %v1183_v34 = vadd.f32 %v1182_v14, %v1181_v11 }
 0x15c   : > { %1184 = vst [vmem:[%s275_s27 + $0x1] sm:$0x1] %v1183_v34 }
 0x15d PF: > { %s17_s21 = sadd.s32 1, %s1985_s21  }
 0x15e   : > { %p14_p4 = scmp.ge.s32.totalorder %s17_s21, 4  }
 0x160   :  { %16 = sbr.rel (!%p14_p4) target bundleno = 1 (0x1), region = 101 }

// kernel: resblock_forward.4
= control target key start
LH: loop header
LB: loop body
LE: loop exit
PB: predicated region body
PF: predicated region fallthrough
CT: control target
= control target key end

     0   :  { %s3680_s18 = smov 0   ;;  %s4587_s0 = inlined_call_operand.vmem [shape: bf16[2,80,128], index: 0, kind: input, shape index: {}]   ;;  %s4588_s1 = inlined_call_operand.vmem [shape: f32[1,128], index: 1, kind: input, shape index: {}]   ;;  %s4589_s2 = inlined_call_operand.vmem [shape: f32[1,128], index: 2, kind: input, shape index: {}]   ;;  %s4590_s3 = inlined_call_operand.vmem [shape: bf16[9,128,128], index: 3, kind: input, shape index: {}]   ;;  %s4591_s4 = inlined_call_operand.vmem [shape: bf16[2,80,128], index: 4, kind: output, shape index: {0}]   ;;  %s4592_s5 = inlined_call_operand.vmem [shape: f32[2,2,128], index: 5, kind: output, shape index: {1}]  }
   0x1 LB: > { %s2581_s19 = sadd.s32 4294967295, %s3645_s18   ;;  %p2585_p0 = scmp.ge.s32.totalorder %s3645_s18, 1  ;;  %s3645_s18 = sphi %s3680_s18, %s16_s18  }
   0x2   : > { %p190_p1 = scmp.lt.s32.totalorder %s3645_s18, 3 }
   0x4   : > { %p191_p2 = pnand %p2585_p0, %p190_p1 }
   0x5   : > { %v3544_v0 = vld [vmem:[%s4590_s3 + $0x40] sm:$0xff] (!%p191_p2)   ;;  %v3647_v1 = vmov (!%p191_p2), 0.0   ;;  %v3546_v3 = vld [vmem:[%s4590_s3 + $0x48] sm:$0xff] (!%p191_p2)   ;;  %vm4596_vm0 = vmmov (!%p191_p2), 0   ;;  %p222_p3 = scmp.lt.s32.totalorder (!%p191_p2), %s2581_s19, 1  ;;  %v237_v5 = vlaneseq (!%p191_p2)  ;;  %v3548_v6 = vld [vmem:[%s4590_s3 + $0x50] sm:$0xff] (!%p191_p2)  }
   0x6   : > { %194 = sbr.rel (%p191_p2) target bundleno = 502 (0x1f6), region = 36  ;;  %3026 = vmatprep.subr.bf16.mxu1 (!%p191_p2), %v3647_v1  ;;  %3170 = vmatprep.subr.bf16.mxu0 (!%p191_p2), %v3647_v1  ;;  %v3545_v2 = vld [vmem:[%s4590_s3 + $0x100] sm:$0xff] (!%p191_p2)   ;;  %v3547_v4 = vld [vmem:[%s4590_s3 + $0x108] sm:$0xff] (!%p191_p2)   ;;  %v3549_v7 = vld [vmem:[%s4590_s3 + $0x110] sm:$0xff] (!%p191_p2)   ;;  %v3649_v9 = vmov (!%p191_p2), 0   ;;  %vm669_vm5 = vcmask (!%p191_p2), 1043457  }
   0x7   : > { %3027 = vmatpush3.bf16.msra.mxu1 (!%p191_p2), %v3544_v0  ;;  %3042 = vmatprep.mubr.msk.bf16.mxu1 (!%p191_p2), %vm4596_vm0, %v3647_v1  ;;  %v3718_v8 = vshrl.u32 (!%p191_p2), %v237_v5, 7  ;;  %512 = vst [vmem:[#allocation2] sm:$0xf] (!%p191_p2), %v3649_v9  ;;  %513 = vst [vmem:[#allocation2 + $0x4] sm:$0xf] (!%p191_p2), %v3649_v9  ;;  %v3550_v10 = vld [vmem:[%s4590_s3 + $0x58] sm:$0xff] (!%p191_p2)  }
   0x8   : > { %3171 = vmatpush3.bf16.msra.mxu0 (!%p191_p2), %v3545_v2  ;;  %3028 = vmatprep.subr.bf16.mxu1 (!%p191_p2), %v3647_v1  ;;  %514 = vst [vmem:[#allocation2 + $0x8] sm:$0xf] (!%p191_p2), %v3649_v9  ;;  %515 = vst [vmem:[#allocation2 + $0xc] sm:$0xf] (!%p191_p2), %v3649_v9  ;;  %v3551_v11 = vld [vmem:[%s4590_s3 + $0x118] sm:$0xff] (!%p191_p2)   ;;  %v3552_v14 = vld [vmem:[%s4590_s3 + $0x60] sm:$0xff] (!%p191_p2)  }
   0x9   : > { %3172 = vmatprep.subr.bf16.mxu0 (!%p191_p2), %v3647_v1  ;;  %3186 = vmatprep.mubr.msk.bf16.mxu0 (!%p191_p2), %vm4596_vm0, %v3647_v1  ;;  %516 = vst [vmem:[#allocation2 + $0x10] sm:$0xf] (!%p191_p2), %v3649_v9  ;;  %517 = vst [vmem:[#allocation2 + $0x14] sm:$0xf] (!%p191_p2), %v3649_v9  ;;  %v239_v12 = vadd.s32 (!%p191_p2), 8, %v3718_v8  ;;  %v240_v13 = vadd.s32 (!%p191_p2), 16, %v3718_v8 }
   0xa   : > { %518 = vst [vmem:[#allocation2 + $0x18] sm:$0xf] (!%p191_p2), %v3649_v9  ;;  %519 = vst [vmem:[#allocation2 + $0x1c] sm:$0xf] (!%p191_p2), %v3649_v9  ;;  %v3553_v15 = vld [vmem:[%s4590_s3 + $0x120] sm:$0xff] (!%p191_p2)   ;;  %v3554_v27 = vld [vmem:[%s4590_s3 + $0x68] sm:$0xff] (!%p191_p2)  }
   0xb   : > { %3029 = vmatpush3.bf16.msra.mxu1 (!%p191_p2), %v3546_v3  ;;  %520 = vst [vmem:[#allocation2 + $0x20] sm:$0xf] (!%p191_p2), %v3649_v9  ;;  %521 = vst [vmem:[#allocation2 + $0x24] sm:$0xf] (!%p191_p2), %v3649_v9  ;;  %v3747_v16 = vmul.u32.u64.low (!%p191_p2), 3435973837, %v3718_v8  ;;  %v3748_v17 = vmul.u32.u64.high 3435973837, %v3718_v8, %v3747_v16 }
   0xc   : > { %3173 = vmatpush3.bf16.msra.mxu0 (!%p191_p2), %v3547_v4  ;;  %3030 = vmatprep.subr.bf16.mxu1 (!%p191_p2), %v3647_v1  ;;  %522 = vst [vmem:[#allocation2 + $0x28] sm:$0xf] (!%p191_p2), %v3649_v9  ;;  %523 = vst [vmem:[#allocation2 + $0x2c] sm:$0xf] (!%p191_p2), %v3649_v9  ;;  %v3750_v18 = vmul.u32.u64.low (!%p191_p2), 3435973837, %v239_v12  ;;  %v3751_v19 = vmul.u32.u64.high 3435973837, %v239_v12, %v3750_v18 }
   0xd   : > { %s4639_s19 = smov (!%p222_p3, %s2581_s19), 1  ;;  %3174 = vmatprep.subr.bf16.mxu0 %v3647_v1  ;;  %524 = vst [vmem:[#allocation2 + $0x30] sm:$0xf] %v3649_v9  ;;  %v3755_v22 = vmul.u32.u64.low 3435973837, %v240_v13  ;;  %v3756_v23 = vmul.u32.u64.high 3435973837, %v240_v13, %v3755_v22  ;;  %v3772_v30 = vadd.s32 24, %v3718_v8 }
   0xe   : > { %s3512_s7 = smul.u32 40, %s4639_s19  ;;  %v3761_v26 = vld [vmem:[%s4588_s1] ss:$0 sm:$0xff]  ;;  %v3775_v31 = vadd.s32 32, %v3718_v8  ;;  %v3778_v32 = vadd.s32 40, %v3718_v8  ;;  %v3555_v33 = vld [vmem:[%s4590_s3 + $0x128] sm:$0xff]  }
   0xf   : > { %3031 = vmatpush3.bf16.msra.mxu1 %v3548_v6  ;;  %v3769_v29 = vld [vmem:[%s4589_s2] ss:$0 sm:$0xff]  ;;  %v3787_v37 = vadd.s32 48, %v3718_v8  ;;  %v254_v38 = vshrl.u32 %v3748_v17, 3  ;;  %v265_v39 = vshrl.u32 %v3751_v19, 3  ;;  %v3794_v41 = vadd.s32 56, %v3718_v8 }
  0x10   : > { %3175 = vmatpush3.bf16.msra.mxu0 %v3549_v7  ;;  %3032 = vmatprep.subr.bf16.mxu1 %v3647_v1  ;;  %s3735_s14 = scalar_lea.vmem %s4587_s0, %s3512_s7  ;;  %v3556_v42 = vld [vmem:[%s4590_s3 + $0x70] sm:$0xff]   ;;  %v276_v43 = vshrl.u32 %v3756_v23, 3  ;;  %v3808_v51 = vadd.s32 64, %v3718_v8  ;;  %v3558_v57 = vld [vmem:[%s4590_s3 + $0x78] sm:$0xff]   ;;  %v3827_v0 = vmul.u32.u64.low 3435973837, %v3772_v30  ;;  %v3828_v2 = vmul.u32.u64.high 3435973837, %v3772_v30, %v3827_v0  ;;  %s4551_s17 = scalar_lea.vmem %s4591_s4, %s3512_s7 }
  0x11   : > { %3176 = vmatprep.subr.bf16.mxu0 %v3647_v1  ;;  %v2857_v20 = vld [vmem:[%s3735_s14] sm:$0xff]   ;;  %v2901_v21 = vld [vmem:[%s3735_s14 + $0x8] sm:$0xff]   ;;  %v255_v47 = vmul.u32 10, %v254_v38  ;;  %v266_v48 = vmul.u32 10, %v265_v39  ;;  %v3805_v50 = vld [vmem:[%s3735_s14 + $0x10] sm:$0xff]   ;;  %s2588_s7 = sshll.u32 %s4639_s19, 1 }
  0x12   : > { %v2858_v24 = vunpack.c.l.bf16 %v2857_v20  ;;  %v2859_v25 = vunpack.c.h.bf16 %v2857_v20  ;;  %v2862_v28 = vunpack.c.l.bf16 %v2901_v21  ;;  %v2863_v36 = vunpack.c.h.bf16 %v2901_v21  ;;  %v3557_v52 = vld [vmem:[%s4590_s3 + $0x130] sm:$0xff]   ;;  %v3559_v62 = vld [vmem:[%s4590_s3 + $0x138] sm:$0xff]   ;;  %s235_s22 = scalar_lea.vmem %s4592_s5, %s2588_s7 }
  0x13   : > { %3033 = vmatpush3.bf16.msra.mxu1 %v3550_v10  ;;  %v277_v53 = vmul.u32 10, %v276_v43  ;;  %v256_v58 = vsub.s32 %v3718_v8, %v255_v47  ;;  %v267_v59 = vsub.s32 %v239_v12, %v266_v48  ;;  %v2866_v61 = vunpack.c.l.bf16 %v3805_v50 }
  0x14   : > { %3177 = vmatpush3.bf16.msra.mxu0 %v3551_v11  ;;  %3034 = vmatprep.subr.bf16.mxu1 %v3647_v1  ;;  %v445_v34 = vmul.f32 %v2858_v24, %v3761_v26  ;;  %v446_v35 = vmul.f32 %v2859_v25, %v3761_v26  ;;  %v447_v40 = vmul.f32 %v2862_v28, %v3761_v26  ;;  %vm670_vm6 = vsmask.f32 7942 }
  0x15   : > { %3178 = vmatprep.subr.bf16.mxu0 %v3647_v1  ;;  %v448_v46 = vmul.f32 %v2863_v36, %v3761_v26  ;;  %v278_v63 = vsub.s32 %v240_v13, %v277_v53  ;;  %vm358_vm1 = vcmp.ne.s32.totalorder %v256_v58, 0  ;;  %vm359_vm2 = vcmp.ne.s32.totalorder %v267_v59, 0 }
  0x16   : > { %v462_v44 = vadd.f32 %v3769_v29, %v445_v34  ;;  %v463_v45 = vadd.f32 %v3769_v29, %v446_v35  ;;  %v464_v49 = vadd.f32 %v3769_v29, %v447_v40  ;;  %vm368_vm3 = vcmp.lt.s32.totalorder %v256_v58, 0 }
  0x17   : > { %3035 = vmatpush3.bf16.msra.mxu1 %v3552_v14  ;;  %v3815_v56 = vadd.f32 %v3769_v29, %v448_v46  ;;  %vm369_vm4 = vcmp.lt.s32.totalorder %v267_v59, 0  ;;  %vm360_vm7 = vcmp.ne.s32.totalorder %v278_v63, 0  ;;  %vm370_vm8 = vcmp.lt.s32.totalorder %v278_v63, 0  ;;  %vm3832_vm9 = vmand %vm368_vm3, %vm358_vm1 }
  0x18   : > { %3179 = vmatpush3.bf16.msra.mxu0 %v3553_v15  ;;  %3036 = vmatprep.subr.bf16.mxu1 %v3647_v1  ;;  %v472_v54 = vmax.f32 %v462_v44, 0.0  ;;  %v473_v55 = vmax.f32 %v463_v45, 0.0  ;;  %v474_v60 = vmax.f32 %v464_v49, 0.0  ;;  %v388_v5 = vadd.s32 10, %v256_v58  ;;  %vm379_vm12 = vmand %vm369_vm4, %vm359_vm2  ;;  %v672_v45 = vld [vmem:[#allocation2 + $0x4] sm:$0xe] }
  0x19   : > { %3180 = vmatprep.subr.bf16.mxu0 %v3647_v1  ;;  %v475_v3 = vmax.f32 %v3815_v56, 0.0  ;;  %v389_v6 = vadd.s32 10, %v267_v59  ;;  %vm4593_vm10 = vsmask.f32 1280  ;;  %vm557_vm11 = vsmask.f32 5392  ;;  %vm380_vm13 = vmand %vm370_vm8, %vm360_vm7 }
  0x1a   : > { %v390_v7 = vadd.s32 10, %v278_v63  ;;  %v3839_v9 = vmul.u32.u64.low 3435973837, %v3775_v31  ;;  %v3840_v10 = vmul.u32.u64.high 3435973837, %v3775_v31, %v3839_v9  ;;  %v449_v11 = vmul.f32 %v2866_v61, %v3761_v26  ;;  %vm671_vm7 = vmand %vm669_vm5, %vm670_vm6 }
  0x1b   : > { %3037 = vmatpush3.bf16.msra.mxu1 %v3554_v27  ;;  %v398_v12 = vsel %vm3832_vm9, %v388_v5, %v256_v58  ;;  %v399_v13 = vsel %vm379_vm12, %v389_v6, %v267_v59  ;;  %v287_v14 = vshrl.u32 %v3828_v2, 3  ;;  %v2867_v15 = vunpack.c.h.bf16 %v3805_v50  ;;  %vm3882_vm8 = vmor %vm4593_vm10, %vm557_vm11  ;;  %v2903_v9 = vld [vmem:[%s3735_s14 + $0x18] sm:$0xff]  }
  0x1c   : > { %3181 = vmatpush3.bf16.msra.mxu0 %v3555_v33  ;;  %3038 = vmatprep.subr.bf16.mxu1 %v3647_v1  ;;  %v400_v16 = vsel %vm380_vm13, %v390_v7, %v278_v63  ;;  %vm3847_vm14 = vcmp.lt.s32.totalorder %v398_v12, 8  ;;  %vm3851_vm15 = vcmp.lt.s32.totalorder %v399_v13, 8  ;;  %v3856_v19 = vadd.f32 %v3769_v29, %v449_v11 }
  0x1d   : > { %3182 = vmatprep.subr.bf16.mxu0 %v3647_v1  ;;  %vm3858_vm1 = vcmp.lt.s32.totalorder %v400_v16, 8  ;;  %v502_v21 = vsel %vm3847_vm14, %v472_v54, 0.0  ;;  %v503_v22 = vsel %vm3851_vm15, %v473_v55, 0.0  ;;  %v288_v23 = vmul.u32 10, %v287_v14 }
  0x1e   : > { %v504_v24 = vsel %vm3858_vm1, %v474_v60, 0.0  ;;  %v2836_v25 = vpack.c.bf16 %v502_v21, %v502_v21  ;;  %v2837_v27 = vpack.c.bf16 %v503_v22, %v503_v22  ;;  %v298_v28 = vshrl.u32 %v3840_v10, 3  ;;  %v689_v22 = vld [vmem:[#allocation2] sm:$0xf] }
  0x1f   : > { %3039 = vmatpush3.bf16.msra.mxu1 %v3556_v42  ;;  %v2838_v33 = vpack.c.bf16 %v504_v24, %v504_v24  ;;  %v289_v34 = vsub.s32 %v3772_v30, %v288_v23  ;;  %v476_v35 = vmax.f32 %v3856_v19, 0.0  ;;  %v450_v36 = vmul.f32 %v2867_v15, %v3761_v26 }
  0x20   : > { %3183 = vmatpush3.bf16.msra.mxu0 %v3557_v52  ;;  %3040 = vmatprep.subr.bf16.mxu1 %v3647_v1  ;;  %v560_v38 = vshrl.u32 %v2836_v25, 16  ;;  %v563_v39 = vshll.u32 %v2836_v25, 16  ;;  %v569_v40 = vshrl.u32 %v2837_v27, 16  ;;  %v572_v42 = vshll.u32 %v2837_v27, 16 }
  0x21   : > { %3184 = vmatprep.subr.bf16.mxu0 %v3647_v1  ;;  %v579_v43 = vshrl.u32 %v2838_v33, 16  ;;  %v582_v44 = vshll.u32 %v2838_v33, 16  ;;  %vm361_vm2 = vcmp.ne.s32.totalorder %v289_v34, 0  ;;  %vm371_vm3 = vcmp.lt.s32.totalorder %v289_v34, 0 }
  0x22   : > { %v562_v46 = vrot.slane %v560_v38, 6  ;;  %v565_v47 = vrot.slane %v563_v39, 7  ;;  %v571_v48 = vrot.slane %v569_v40, 6  ;;  %v574_v49 = vrot.slane %v572_v42, 7  ;;  %vm3874_vm4 = vmand %vm371_vm3, %vm361_vm2 }
  0x23   : > { %3041 = vmatpush3.bf16.msra.mxu1 %v3558_v57  ;;  %v581_v30 = vrot.slane %v579_v43, 6  ;;  %v584_v52 = vrot.slane %v582_v44, 7  ;;  %v391_v53 = vadd.s32 10, %v289_v34  ;;  %v299_v54 = vmul.u32 10, %v298_v28 }
  0x24   : > { %3185 = vmatpush3.bf16.msra.mxu0 %v3559_v62  ;;  %3062 = vmatprep.subr.bf16.mxu1 %v3647_v1  ;;  %v566_v57 = vor.u32 %v565_v47, %v562_v46  ;;  %v575_v58 = vor.u32 %v574_v49, %v571_v48  ;;  %v3887_v59 = vmul.u32.u64.low 3435973837, %v3778_v32  ;;  %v3888_v60 = vmul.u32.u64.high 3435973837, %v3778_v32, %v3887_v59  ;;  %v3935_v48 = vld [vmem:[%s3735_s14 + $0x20] sm:$0xff]  }
  0x25   : > { %3206 = vmatprep.subr.bf16.mxu0 %v3647_v1  ;;  %v585_v61 = vor.u32 %v584_v52, %v581_v30  ;;  %v401_v62 = vsel %vm3874_vm4, %v391_v53, %v289_v34  ;;  %v300_v63 = vsub.s32 %v3775_v31, %v299_v54  ;;  %v3902_v7 = vadd.f32 %v3769_v29, %v450_v36 }
  0x26   : > { %v567_v0 = vrot.slane %v566_v57, 4  ;;  %v577_v2 = vrot.slane %v575_v58, 4  ;;  %v673_v4 = vsel %vm671_vm7, %v566_v57, %v672_v45  ;;  %vm3893_vm5 = vcmp.lt.s32.totalorder %v401_v62, 8 }
  0x27   : > { %674 = vst [vmem:[#allocation2 + $0x4] sm:$0xe] %v673_v4  ;;  %v505_v6 = vsel %vm3893_vm5, %v475_v3, 0.0  ;;  %vm362_vm6 = vcmp.ne.s32.totalorder %v300_v63, 0  ;;  %vm372_vm9 = vcmp.lt.s32.totalorder %v300_v63, 0  ;;  %v392_v12 = vadd.s32 10, %v300_v63 }
  0x28   : > { %v576_v31 = vsel %vm3882_vm8, %v567_v0, %v575_v58  ;;  %v586_v10 = vsel %vm3882_vm8, %v577_v2, %v585_v61  ;;  %v2839_v11 = vpack.c.bf16 %v505_v6, %v505_v6  ;;  %vm382_vm11 = vmand %vm372_vm9, %vm362_vm6  ;;  %v587_v56 = vrot.slane %v585_v61, 4 }
  0x29   : > { %675 = vst [vmem:[#allocation2 + $0x8] sm:$0xf] %v576_v31  ;;  %676 = vst [vmem:[#allocation2 + $0xc] sm:$0xf] %v586_v10  ;;  %v309_v3 = vshrl.u32 %v3888_v60, 3  ;;  %v402_v19 = vsel %vm382_vm11, %v392_v12, %v300_v63  ;;  %v2870_v21 = vunpack.c.l.bf16 %v2903_v9  ;;  %v477_v40 = vmax.f32 %v3902_v7, 0.0 }
  0x2a   : > { %v3911_v13 = vmul.u32.u64.low 3435973837, %v3787_v37  ;;  %v3912_v14 = vmul.u32.u64.high 3435973837, %v3787_v37, %v3911_v13  ;;  %v589_v15 = vshrl.u32 %v2839_v11, 16  ;;  %v592_v16 = vshll.u32 %v2839_v11, 16  ;;  %v3567_v12 = vld [vmem:[%s4590_s3] sm:$0xff]  }
  0x2b   : > { %vm3914_vm12 = vcmp.lt.s32.totalorder %v402_v19, 8  ;;  %v310_v24 = vmul.u32 10, %v309_v3  ;;  %v3919_v25 = vmul.u32.u64.low 3435973837, %v3794_v41  ;;  %v3920_v27 = vmul.u32.u64.high 3435973837, %v3794_v41, %v3919_v25 }
  0x2c   : > { %vm4594_vm13 = vsmask.f32 7424  ;;  %v591_v28 = vrot.slane %v589_v15, 6  ;;  %v594_v33 = vrot.slane %v592_v16, 7  ;;  %v506_v34 = vsel %vm3914_vm12, %v476_v35, 0.0 }
  0x2d   : > { %v451_v36 = vmul.f32 %v2870_v21, %v3761_v26  ;;  %v2840_v38 = vpack.c.bf16 %v506_v34, %v506_v34  ;;  %v311_v39 = vsub.s32 %v3778_v32, %v310_v24  ;;  %v2871_v42 = vunpack.c.h.bf16 %v2903_v9 }
  0x2e   : > { %v3927_v43 = vld [vmem:[#allocation2 + $0x4] sm:$0xf]  ;;  %v595_v44 = vor.u32 %v594_v33, %v591_v28  ;;  %v320_v45 = vshrl.u32 %v3912_v14, 3  ;;  %v3931_v46 = vmul.u32.u64.low 3435973837, %v3808_v51  ;;  %v3932_v47 = vmul.u32.u64.high 3435973837, %v3808_v51, %v3931_v46 }
  0x2f   : > { %v3938_v35 = vcombine.low %v689_v22, %v3927_v43  ;;  %v1227_v49 = vld [vmem:[#allocation2 + $0x4] sm:$0xe]  ;;  %v599_v50 = vshrl.u32 %v2840_v38, 16  ;;  %v602_v32 = vshll.u32 %v2840_v38, 16  ;;  %vm363_vm2 = vcmp.ne.s32.totalorder %v311_v39, 0 }
  0x30   : > { %v3940_v30 = vld [vmem:[#allocation2 + $0x8] sm:$0xff]   ;;  %v596_v52 = vsel %vm3882_vm8, %v587_v56, %v595_v44  ;;  %v597_v53 = vrot.slane %v595_v44, 4  ;;  %v3945_v54 = vadd.f32 %v3769_v29, %v451_v36  ;;  %v452_v60 = vmul.f32 %v2871_v42, %v3761_v26 }
  0x31   : > { %v763_v57 = vshrl.u32 %v3938_v35, 16  ;;  %v765_v58 = vshll.u32 %v3938_v35, 16  ;;  %677 = vst [vmem:[#allocation2 + $0x10] sm:$0xf] %v596_v52  ;;  %v3949_v59 = vld [vmem:[#allocation2 + $0x8] sm:$0xf]  ;;  %v2874_v61 = vunpack.c.l.bf16 %v3935_v48  ;;  %v2875_v21 = vunpack.c.h.bf16 %v3935_v48 }
  0x32   : > { %v770_v62 = vshll.u32 %v3940_v30, 16  ;;  %v3955_v63 = vcombine.low %v1227_v49, %v3949_v59  ;;  %v601_v0 = vrot.slane %v599_v50, 6  ;;  %v604_v2 = vrot.slane %v602_v32, 7  ;;  %v3572_v52 = vld [vmem:[%s4590_s3 + $0x10] sm:$0xff]  }
  0x33   : > { %v767_v4 = vrot.slane %v765_v58, 1  ;;  %v774_v6 = vshrl.u32 %v3940_v30, 16  ;;  %vm373_vm3 = vcmp.lt.s32.totalorder %v311_v39, 0  ;;  %v393_v7 = vadd.s32 10, %v311_v39  ;;  %v3564_v58 = vld [vmem:[%s4590_s3 + $0x140] sm:$0xff]  }
  0x34   : > { %v772_v9 = vrot.slane %v770_v62, 1  ;;  %v1453_v31 = vshrl.u32 %v3955_v63, 16  ;;  %v1456_v10 = vshll.u32 %v3955_v63, 16  ;;  %v3960_v11 = vor.u32 %v604_v2, %v601_v0  ;;  %vm383_vm4 = vmand %vm373_vm3, %vm363_vm2 }
  0x35   : > { %v768_v56 = vor.u32 %v767_v4, %v763_v57  ;;  %vm1451_vm7 = vsmask.f32 6400  ;;  %v403_v3 = vsel %vm383_vm4, %v393_v7, %v311_v39  ;;  %v321_v13 = vmul.u32 10, %v320_v45 }
  0x36   : > { %v478_v14 = vmax.f32 %v3945_v54, 0.0  ;;  %v1455_v15 = vrot.slane %v1453_v31, 1  ;;  %v1458_v16 = vrot.slane %v1456_v10, 2  ;;  %v606_v19 = vsel %vm3882_vm8, %v597_v53, %v3960_v11 }
  0x37   : > { %v773_v22 = vsel %vm4594_vm13, %v768_v56, %v772_v9  ;;  %678 = vst [vmem:[#allocation2 + $0x14] sm:$0xf] %v606_v19  ;;  %vm3972_vm6 = vcmp.lt.s32.totalorder %v403_v3, 8  ;;  %v607_v25 = vrot.slane %v3960_v11, 4  ;;  %v322_v28 = vsub.s32 %v3787_v37, %v321_v13  ;;  %v3570_v37 = vld [vmem:[%s4590_s3 + $0x8] sm:$0xff]  }
  0x38   : > { %3043 = vmatmul.mubr.bf16.vlgmr.msra.gmra.mrb[0].mxu1 %v773_v22  ;;  %v3978_v33 = vld [vmem:[#allocation2 + $0xc] sm:$0xff]   ;;  %v1459_v34 = vor.u32 %v1458_v16, %v1455_v15  ;;  %v3980_v36 = vor.u32 %v774_v6, %v772_v9  ;;  %v507_v38 = vsel %vm3972_vm6, %v477_v40, 0.0  ;;  %v3985_v39 = vadd.f32 %v3769_v29, %v452_v60 }
  0x39   : > { %3046 = vmatprep.mubr.msk.bf16.mxu1 %vm4596_vm0, %v3647_v1  ;;  %3063 = vmatpush3.bf16.msra.mxu1 %v3567_v12  ;;  %v2841_v42 = vpack.c.bf16 %v507_v38, %v507_v38  ;;  %vm364_vm9 = vcmp.ne.s32.totalorder %v322_v28, 0  ;;  %vm374_vm11 = vcmp.lt.s32.totalorder %v322_v28, 0  ;;  %v394_v44 = vadd.s32 10, %v322_v28  ;;  %v3569_v38 = vld [vmem:[%s4590_s3 + $0x150] sm:$0xff]  }
  0x3a   : > { %v1461_v45 = vshrl.u32 %v3978_v33, 16  ;;  %v1464_v46 = vshll.u32 %v3978_v33, 16  ;;  %3064 = vmatprep.subr.bf16.mxu1 %v3647_v1  ;;  %vm384_vm2 = vmand %vm374_vm11, %vm364_vm9  ;;  %v331_v40 = vshrl.u32 %v3920_v27, 3  ;;  %v453_v48 = vmul.f32 %v2874_v61, %v3761_v26 }
  0x3b   : > { %v609_v49 = vshrl.u32 %v2841_v42, 16  ;;  %v612_v50 = vshll.u32 %v2841_v42, 16  ;;  %v404_v32 = vsel %vm384_vm2, %v394_v44, %v322_v28  ;;  %v342_v53 = vshrl.u32 %v3932_v47, 3 }
  0x3c   : > { %v1463_v54 = vrot.slane %v1461_v45, 1  ;;  %v1466_v57 = vrot.slane %v1464_v46, 2  ;;  %vm4004_vm3 = vcmp.lt.s32.totalorder %v404_v32, 8  ;;  %v332_v27 = vmul.u32 10, %v331_v40 }
  0x3d   : > { %v611_v61 = vrot.slane %v609_v49, 6  ;;  %v614_v62 = vrot.slane %v612_v50, 7  ;;  %3065 = vmatpush3.bf16.msra.mxu1 %v3570_v37  ;;  %v508_v0 = vsel %vm4004_vm3, %v478_v14, 0.0  ;;  %v343_v2 = vmul.u32 10, %v342_v53  ;;  %v1641_v49 = vld [vmem:[#allocation2 + $0x4] sm:$0xc] }
  0x3e   : > { %v4010_v4 = vor.u32 %v1466_v57, %v1463_v54  ;;  %v4012_v47 = vld [vmem:[#allocation2 + $0x10] sm:$0xff]   ;;  %v2842_v6 = vpack.c.bf16 %v508_v0, %v508_v0  ;;  %3066 = vmatprep.subr.bf16.mxu1 %v3647_v1  ;;  %v333_v7 = vsub.s32 %v3794_v41, %v332_v27  ;;  %v479_v9 = vmax.f32 %v3985_v39, 0.0  ;;  %v3565_v41 = vld [vmem:[%s4590_s3 + $0x148] sm:$0xff]   ;;  %v3578_v53 = vld [vmem:[%s4590_s3 + $0x20] sm:$0xff]  }
  0x3f   : > { %v615_v31 = vor.u32 %v614_v62, %v611_v61  ;;  %v344_v10 = vsub.s32 %v3808_v51, %v343_v2  ;;  %v470_v11 = vadd.f32 %v3769_v29, %v453_v48  ;;  %v4020_v12 = vadd.s32 72, %v3718_v8  ;;  %v3575_v8 = vld [vmem:[%s4590_s3 + $0x18] sm:$0xff]  }
  0x40   : > { %v1468_v56 = vsel %vm1451_vm7, %v1459_v34, %v4010_v4  ;;  %v778_v3 = vshll.u32 %v4012_v47, 16  ;;  %v619_v13 = vshrl.u32 %v2842_v6, 16  ;;  %v622_v14 = vshll.u32 %v2842_v6, 16  ;;  %v3573_v2 = vld [vmem:[%s4590_s3 + $0x158] sm:$0xff]  }
  0x41   : > { %3187 = vmatmul.mubr.bf16.vlgmr.msra.gmra.mrb[0].mxu0 %v1468_v56  ;;  %v616_v51 = vsel %vm3882_vm8, %v607_v25, %v615_v31  ;;  %v617_v15 = vrot.slane %v615_v31, 4  ;;  %3067 = vmatpush3.bf16.msra.mxu1 %v3572_v52  ;;  %vm365_vm4 = vcmp.ne.s32.totalorder %v333_v7, 0  ;;  %v454_v16 = vmul.f32 %v2875_v21, %v3761_v26  ;;  %v3581_v31 = vld [vmem:[%s4590_s3 + $0x28] sm:$0xff]  }
  0x42   : > { %3207 = vmatpush3.bf16.msra.mxu0 %v3564_v58  ;;  %v4034_v19 = vrot.slane %v778_v3, 1  ;;  %3190 = vmatprep.mubr.msk.bf16.mxu0 %vm4596_vm0, %v3647_v1  ;;  %679 = vst [vmem:[#allocation2 + $0x18] sm:$0xf] %v616_v51  ;;  %v621_v22 = vrot.slane %v619_v13, 6  ;;  %v624_v28 = vrot.slane %v622_v14, 7  ;;  %vm375_vm9 = vcmp.lt.s32.totalorder %v333_v7, 0 }
  0x43   : > { %3208 = vmatprep.subr.bf16.mxu0 %v3647_v1  ;;  %vm4039_vm11 = vmand %vm375_vm9, %vm365_vm4  ;;  %v395_v34 = vadd.s32 10, %v333_v7  ;;  %3068 = vmatprep.subr.bf16.mxu1 %v3647_v1  ;;  %vm366_vm2 = vcmp.ne.s32.totalorder %v344_v10, 0  ;;  %vm376_vm10 = vcmp.lt.s32.totalorder %v344_v10, 0  ;;  %v396_v26 = vadd.s32 10, %v344_v10 }
  0x44   : > { %v781_v21 = vsel %vm4594_vm13, %v3980_v36, %v4034_v19  ;;  %v4050_v39 = vor.u32 %v624_v28, %v621_v22  ;;  %vm386_vm4 = vmand %vm376_vm10, %vm366_vm2  ;;  %v480_v42 = vmax.f32 %v470_v11, 0.0  ;;  %v782_v50 = vshrl.u32 %v4012_v47, 16 }
  0x45   : > { %3047 = vmatmul.mubr.bf16.gmra.mrb[4].mxu1 %v781_v21  ;;  %v405_v37 = vsel %vm4039_vm11, %v395_v34, %v333_v7  ;;  %v406_v44 = vsel %vm386_vm4, %v396_v26, %v344_v10  ;;  %v4055_v45 = vmul.u32.u64.low 3435973837, %v4020_v12  ;;  %v4056_v46 = vmul.u32.u64.high 3435973837, %v4020_v12, %v4055_v45  ;;  %v3576_v21 = vld [vmem:[%s4590_s3 + $0x160] sm:$0xff]  }
  0x46   : > { %3209 = vmatpush3.bf16.msra.mxu0 %v3565_v41  ;;  %3050 = vmatprep.mubr.msk.bf16.mxu1 %vm4596_vm0, %v3647_v1  ;;  %v626_v36 = vsel %vm3882_vm8, %v617_v15, %v4050_v39  ;;  %vm4063_vm9 = vcmp.lt.s32.totalorder %v405_v37, 8  ;;  %vm4067_vm10 = vcmp.lt.s32.totalorder %v406_v44, 8  ;;  %v471_v54 = vadd.f32 %v3769_v29, %v454_v16  ;;  %v3584_v37 = vld [vmem:[%s4590_s3 + $0x30] sm:$0xff]  }
  0x47   : > { %3210 = vmatprep.subr.bf16.mxu0 %v3647_v1  ;;  %680 = vst [vmem:[#allocation2 + $0x1c] sm:$0xf] %v626_v36  ;;  %v509_v32 = vsel %vm4063_vm9, %v479_v9, 0.0  ;;  %3069 = vmatpush3.bf16.msra.mxu1 %v3575_v8  ;;  %v510_v52 = vsel %vm4067_vm10, %v480_v42, 0.0  ;;  %v627_v58 = vrot.slane %v4050_v39, 4  ;;  %vm4595_vm11 = vcmask 1045504  }
  0x48   : > { %v2843_v57 = vpack.c.bf16 %v509_v32, %v509_v32  ;;  %v2844_v27 = vpack.c.bf16 %v510_v52, %v510_v52  ;;  %3070 = vmatprep.subr.bf16.mxu1 %v3647_v1  ;;  %v353_v62 = vshrl.u32 %v4056_v46, 3  ;;  %v2735_v0 = vcombine.low %v1641_v49, %v3949_v59  ;;  %v3580_v32 = vld [vmem:[%s4590_s3 + $0x168] sm:$0xff]  }
  0x49   : > { %v4083_v61 = vld [vmem:[#allocation2 + $0x14] sm:$0xff]   ;;  %v481_v56 = vmax.f32 %v471_v54, 0.0  ;;  %v784_v28 = vor.u32 %v782_v50, %v4034_v19  ;;  %v1664_v34 = vrot.slane %v3978_v33, 2 }
  0x4a   : > { %3211 = vmatpush3.bf16.msra.mxu0 %v3569_v38  ;;  %v629_v6 = vshrl.u32 %v2843_v57, 16  ;;  %v632_v29 = vshll.u32 %v2843_v57, 16  ;;  %v639_v7 = vshrl.u32 %v2844_v27, 16  ;;  %v642_v9 = vshll.u32 %v2844_v27, 16  ;;  %v3586_v54 = vld [vmem:[%s4590_s3 + $0x38] sm:$0xff]   ;;  %v3583_v57 = vld [vmem:[%s4590_s3 + $0x170] sm:$0xff]  }
  0x4b   : > { %v1470_v10 = vshrl.u32 %v4083_v61, 16  ;;  %v1473_v11 = vshll.u32 %v4083_v61, 16  ;;  %3212 = vmatprep.subr.bf16.mxu0 %v3647_v1  ;;  %3071 = vmatpush3.bf16.msra.mxu1 %v3578_v53  ;;  %v354_v59 = vmul.u32 10, %v353_v62  ;;  %v1663_v16 = vrot.slane %v2735_v0, 2 }
  0x4c   : > { %v631_v3 = vrot.slane %v629_v6, 6  ;;  %v634_v13 = vrot.slane %v632_v29, 7  ;;  %v641_v14 = vrot.slane %v639_v7, 6  ;;  %v644_v41 = vrot.slane %v642_v9, 7  ;;  %3072 = vmatprep.subr.bf16.mxu1 %v3647_v1 }
  0x4d   : > { %v1472_v51 = vrot.slane %v1470_v10, 1  ;;  %v1475_v15 = vrot.slane %v1473_v11, 2  ;;  %v355_v8 = vsub.s32 %v4020_v12, %v354_v59  ;;  %v4121_v46 = vsel %vm4595_vm11, %v1663_v16, %v1664_v34  ;;  %v686_v10 = vld [vmem:[#allocation2 + $0x2c] sm:$0x3]  ;;  %v3587_v11 = vld [vmem:[%s4590_s3 + $0x178] sm:$0xff]  }
  0x4e   : > { %v4098_v22 = vld [vmem:[#allocation2 + $0x18] sm:$0xff]   ;;  %3213 = vmatpush3.bf16.msra.mxu0 %v3573_v2  ;;  %v635_v25 = vor.u32 %v634_v13, %v631_v3  ;;  %v645_v42 = vor.u32 %v644_v41, %v641_v14 }
  0x4f   : > { %v4102_v26 = vor.u32 %v1475_v15, %v1472_v51  ;;  %3214 = vmatprep.subr.bf16.mxu0 %v3647_v1  ;;  %vm367_vm2 = vcmp.ne.s32.totalorder %v355_v8, 0  ;;  %vm377_vm4 = vcmp.lt.s32.totalorder %v355_v8, 0  ;;  %v397_v12 = vadd.s32 10, %v355_v8  ;;  %3073 = vmatpush3.bf16.msra.mxu1 %v3581_v31 }
  0x50   : > { %v786_v38 = vshll.u32 %v4098_v22, 16  ;;  %v636_v19 = vsel %vm3882_vm8, %v627_v58, %v635_v25  ;;  %v637_v39 = vrot.slane %v635_v25, 4  ;;  %vm387_vm13 = vmand %vm377_vm4, %vm367_vm2  ;;  %3074 = vmatprep.subr.bf16.mxu1 %v3647_v1  ;;  %v790_v62 = vshrl.u32 %v4098_v22, 16 }
  0x51   : > { %v1477_v44 = vsel %vm1451_vm7, %v4010_v4, %v4102_v26  ;;  %681 = vst [vmem:[#allocation2 + $0x20] sm:$0xf] %v636_v19  ;;  %v407_v45 = vsel %vm387_vm13, %v397_v12, %v355_v8  ;;  %vm4626_vm13 = vsmask.f32 7424  ;;  %vm684_vm4 = vcmask 1041408  }
  0x52   : > { %3191 = vmatmul.mubr.bf16.gmra.mrb[4].mxu0 %v1477_v44  ;;  %v788_v36 = vrot.slane %v786_v38, 1  ;;  %v646_v49 = vsel %vm3882_vm8, %v637_v39, %v645_v42  ;;  %vm4125_vm2 = vcmp.lt.s32.totalorder %v407_v45, 8  ;;  %v647_v6 = vrot.slane %v645_v42, 4 }
  0x53   : > { %3194 = vmatprep.mubr.msk.bf16.mxu0 %vm4596_vm0, %v3647_v1  ;;  %3215 = vmatpush3.bf16.msra.mxu0 %v3576_v21  ;;  %682 = vst [vmem:[#allocation2 + $0x24] sm:$0xf] %v646_v49  ;;  %v511_v4 = vsel %vm4125_vm2, %v481_v56, 0.0  ;;  %v1085_v21 = vrot.slane %v4098_v22, 1  ;;  %v1284_v38 = vrot.slane %v3978_v33, 1  ;;  %v3595_v33 = vld [vmem:[%s4590_s3 + $0x198] sm:$0xff]  }
  0x54   : > { %v789_v52 = vsel %vm4626_vm13, %v784_v28, %v788_v36  ;;  %v2845_v53 = vpack.c.bf16 %v511_v4, %v511_v4  ;;  %3216 = vmatprep.subr.bf16.mxu0 %v3647_v1  ;;  %3075 = vmatpush3.bf16.msra.mxu1 %v3584_v37  ;;  %v792_v13 = vor.u32 %v790_v62, %v788_v36  ;;  %vm4627_vm13 = vsmask.f32 1280 }
  0x55   : > { %3051 = vmatmul.mubr.bf16.gmra.mrb[8].mxu1 %v789_v52  ;;  %3076 = vmatprep.subr.bf16.mxu1 %v3647_v1  ;;  %vm685_vm11 = vmand %vm684_vm4, %vm4627_vm13  ;;  %vm4630_vm4 = vcmask 1045504  }
  0x56   : > { %3054 = vmatprep.mubr.msk.bf16.mxu1 %vm4596_vm0, %v3647_v1  ;;  %v649_v58 = vshrl.u32 %v2845_v53, 16  ;;  %v652_v27 = vshll.u32 %v2845_v53, 16  ;;  %vm4628_vm0 = vsmask.f32 7424  ;;  %vm4631_vm13 = vmmov %vm4630_vm4 }
  0x57   : > { %3217 = vmatpush3.bf16.msra.mxu0 %v3580_v32 }
  0x58   : > { %v4148_v0 = vld [vmem:[#allocation2 + $0x1c] sm:$0xff]   ;;  %v651_v2 = vrot.slane %v649_v58, 6  ;;  %3218 = vmatprep.subr.bf16.mxu0 %v3647_v1  ;;  %3077 = vmatpush3.bf16.msra.mxu1 %v3586_v54  ;;  %v654_v29 = vrot.slane %v652_v27, 7 }
  0x59   : > { %3098 = vmatprep.subr.bf16.mxu1 %v3647_v1  ;;  %v1479_v7 = vshrl.u32 %v4148_v0, 16  ;;  %v1482_v9 = vshll.u32 %v4148_v0, 16 }
  0x5a   : > { %v4154_v31 = vld [vmem:[#allocation2 + $0x20] sm:$0xff]   ;;  %v655_v59 = vor.u32 %v654_v29, %v651_v2 }
  0x5b   : > { %3219 = vmatpush3.bf16.msra.mxu0 %v3583_v57  ;;  %v1481_v56 = vrot.slane %v1479_v7, 1  ;;  %v1484_v3 = vrot.slane %v1482_v9, 2  ;;  %v794_v14 = vshll.u32 %v4154_v31, 16  ;;  %v1087_v55 = vrot.slane %v4154_v31, 1 }
  0x5c   : > { %3220 = vmatprep.subr.bf16.mxu0 %v3647_v1  ;;  %v656_v41 = vsel %vm3882_vm8, %v647_v6, %v655_v59  ;;  %v657_v51 = vrot.slane %v655_v59, 4  ;;  %vm4629_vm8 = vmmov 0   ;;  %v798_v19 = vshrl.u32 %v4154_v31, 16  ;;  %v3591_v59 = vld [vmem:[%s4590_s3 + $0x80] sm:$0xff]  }
  0x5d   : > { %v1485_v15 = vor.u32 %v1484_v3, %v1481_v56  ;;  %v796_v8 = vrot.slane %v794_v14, 1  ;;  %683 = vst [vmem:[#allocation2 + $0x28] sm:$0xf] %v656_v41  ;;  %v1286_v9 = vrot.slane %v4083_v61, 1  ;;  %v3593_v14 = vld [vmem:[%s4590_s3 + $0x88] sm:$0xff]  }
  0x5e   : > { %v687_v16 = vsel %vm685_vm11, %v657_v51, %v686_v10  ;;  %vm1079_vm11 = vcmask 1046528   ;;  %v1288_v10 = vrot.slane %v4148_v0, 1 }
  0x5f   : > { %3221 = vmatpush3.bf16.msra.mxu0 %v3587_v11  ;;  %v1486_v28 = vsel %vm1451_vm7, %v4102_v26, %v1485_v15  ;;  %v797_v25 = vsel %vm4628_vm0, %v792_v13, %v796_v8  ;;  %688 = vst [vmem:[#allocation2 + $0x2c] sm:$0x3] %v687_v16  ;;  %v1283_v26 = vrot.slane %v3955_v63, 1  ;;  %v4179_v12 = vsel %vm1079_vm11, %v1085_v21, %v1087_v55  ;;  %v4233_v16 = vld [vmem:[#allocation2 + $0xc] sm:$0xf] }
  0x60   : > { %3242 = vmatprep.subr.bf16.mxu0 %v3647_v1  ;;  %3195 = vmatmul.mubr.bf16.gmra.mrb[8].mxu0 %v1486_v28  ;;  %v800_v63 = vor.u32 %v798_v19, %v796_v8  ;;  %v4210_v56 = vsel %vm1079_vm11, %v1284_v38, %v1286_v9  ;;  %v4213_v3 = vsel %vm1079_vm11, %v1286_v9, %v1288_v10  ;;  %v4231_v8 = vld [vmem:[#allocation2 + $0x10] sm:$0xff]   ;;  %v4235_v28 = vld [vmem:[#allocation2 + $0x18] sm:$0xff]  }
  0x61   : > { %3055 = vmatmul.mubr.bf16.gmra.mrb[12].mxu1 %v797_v25  ;;  %3198 = vmatprep.mubr.msk.bf16.mxu0 %vm4629_vm8, %v3647_v1  ;;  %v4186_v42 = vsel %vm1079_vm11, %v1283_v26, %v1284_v38  ;;  %v3594_v26 = vld [vmem:[%s4590_s3 + $0x90] sm:$0xff]   ;;  %v2247_v19 = vrot.slane %v4231_v8, 3 }
  0x62   : > { %3058 = vmatprep.mubr.msk.bf16.mxu1 %vm4629_vm8, %v3647_v1 }
  0x64   : > { %v4183_v39 = vld [vmem:[#allocation2 + $0x24] sm:$0xff]  }
  0x65   : > { %v3582_v37 = vld [vmem:[#allocation2 + $0x28] ss:$0 sps:$4 sm:$0x11]   ;;  %v1488_v44 = vshrl.u32 %v4183_v39, 16  ;;  %v1491_v45 = vshll.u32 %v4183_v39, 16  ;;  %v1290_v13 = vrot.slane %v4183_v39, 1 }
  0x66   : > { %v802_v36 = vshll.u32 %v3582_v37, 16  ;;  %v4190_v49 = vld [vmem:[#allocation2 + $0x2c] ss:$0 sps:$4 sm:$0x33]   ;;  %v1089_v58 = vrot.slane %v3582_v37, 1  ;;  %v2249_v37 = vrot.slane %v4235_v28, 3 }
  0x67   : > { %v1490_v4 = vrot.slane %v1488_v44, 1  ;;  %v1493_v32 = vrot.slane %v1491_v45, 2  ;;  %v1497_v53 = vshrl.u32 %v4190_v49, 16  ;;  %v1500_v54 = vshll.u32 %v4190_v49, 16  ;;  %v3590_v45 = vld [vmem:[%s4590_s3 + $0x188] sm:$0xff]  }
  0x68   : > { %v804_v52 = vrot.slane %v802_v36, 1  ;;  %v4197_v29 = vsel %vm1079_vm11, %v1087_v55, %v1089_v58  ;;  %v4225_v41 = vsel %vm1079_vm11, %v1288_v10, %v1290_v13  ;;  %v3634_v51 = vld [vmem:[#allocation2 + $0x2c] ss:$0 sps:$4 sm:$0x11]   ;;  %v2224_v55 = vld [vmem:[#allocation2 + $0x8] sm:$0x8] }
  0x69   : > { %v1494_v57 = vor.u32 %v1493_v32, %v1490_v4  ;;  %v1499_v62 = vrot.slane %v1497_v53, 1  ;;  %v1502_v2 = vrot.slane %v1500_v54, 2  ;;  %v2815_v38 = vcombine.low %v2224_v55, %v4233_v16  ;;  %v3592_v32 = vld [vmem:[%s4590_s3 + $0x190] sm:$0xff]   ;;  %v3600_v53 = vld [vmem:[%s4590_s3 + $0xa8] sm:$0xff]  }
  0x6a   : > { %v805_v27 = vsel %vm4628_vm0, %v800_v63, %v804_v52  ;;  %v1666_v63 = vrot.slane %v4083_v61, 2  ;;  %v3598_v52 = vld [vmem:[%s4590_s3 + $0xa0] sm:$0xff]   ;;  %v1670_v58 = vrot.slane %v4183_v39, 2  ;;  %vm4632_vm0 = vmmov %vm4630_vm4  ;;  %v3601_v39 = vld [vmem:[%s4590_s3 + $0x1b0] sm:$0xff]   ;;  %v1672_v10 = vrot.slane %v4190_v49, 2 }
  0x6b   : > { %v1495_v6 = vsel %vm1451_vm7, %v1485_v15, %v1494_v57  ;;  %3059 = vmatmul.mubr.bf16.gmra.mrb[16].mxu1 %v805_v27  ;;  %v1503_v7 = vor.u32 %v1502_v2, %v1499_v62  ;;  %v1292_v15 = vrot.slane %v3634_v51, 1  ;;  %v2246_v44 = vrot.slane %v2815_v38, 3  ;;  %v3599_v27 = vld [vmem:[%s4590_s3 + $0x1a8] sm:$0xff]   ;;  %v1058_v62 = vld [vmem:[#allocation2] sm:$0xe]  ;;  %v3603_v2 = vld [vmem:[%s4590_s3 + $0xb8] sm:$0xff]  }
  0x6c   : > { %3199 = vmatmul.mubr.bf16.gmra.mrb[12].mxu0 %v1495_v6  ;;  %3078 = vmatprep.mubr.msk.bf16.mxu1 %vm4629_vm8, %v3647_v1  ;;  %v1667_v61 = vsel %vm4630_vm4, %v1664_v34, %v1666_v63  ;;  %v1668_v34 = vrot.slane %v4148_v0, 2  ;;  %v3602_v0 = vld [vmem:[%s4590_s3 + $0xb0] sm:$0xff]   ;;  %v2655_v6 = vcombine.low %v1058_v62, %v3927_v43  ;;  %v1081_v43 = vrot.slane %v3940_v30, 1  ;;  %vm4633_vm4 = vmmov %vm4632_vm0  ;;  %v3609_v38 = vld [vmem:[%s4590_s3 + $0x1c8] sm:$0xff]  }
  0x6d   : > { %3202 = vmatprep.mubr.msk.bf16.mxu0 %vm4629_vm8, %v3647_v1  ;;  %v1504_v11 = vsel %vm1451_vm7, %v1494_v57, %v1503_v7  ;;  %v4238_v25 = vsel %vm1079_vm11, %v1290_v13, %v1292_v15  ;;  %vm2245_vm7 = vcmask 1044480   ;;  %v3597_v57 = vld [vmem:[%s4590_s3 + $0x1a0] sm:$0xff]   ;;  %v1673_v13 = vsel %vm4633_vm4, %v1670_v58, %v1672_v10  ;;  %v3613_v15 = vld [vmem:[%s4590_s3 + $0xc8] sm:$0xff]   ;;  %vm4636_vm4 = vmmov %vm4632_vm0 }
  0x6e   : > { %v4260_v36 = vsel %vm2245_vm7, %v2247_v19, %v2249_v37  ;;  %v4267_v4 = vsel %vm2245_vm7, %v2246_v44, %v2247_v19  ;;  %v1669_v54 = vsel %vm4631_vm13, %v1666_v63, %v1668_v34  ;;  %v1671_v7 = vsel %vm4632_vm0, %v1668_v34, %v1670_v58  ;;  %vm4634_vm13 = vmmov %vm4632_vm0  ;;  %v3617_v44 = vld [vmem:[%s4590_s3 + $0xd8] sm:$0xff]   ;;  %v3618_v34 = vld [vmem:[%s4590_s3 + $0x1e0] sm:$0xff]  }
  0x6f   : > { %v1080_v9 = vrot.slane %v2655_v6, 1  ;;  %v1083_v49 = vrot.slane %v4012_v47, 1  ;;  %v1869_v19 = vrot.slane %v4235_v28, 2  ;;  %v3625_v62 = vld [vmem:[#allocation2 + $0x30] ss:$0 sps:$4 sm:$0x33]  }
  0x70   : > { %v1875_v6 = vrot.slane %v3625_v62, 2 }
  0x73   : > { %3079 = vmatmul.mubr.bf16.vlgmr.msra.gmra.mrb[0].mxu1 %v3938_v35  ;;  %v3589_v35 = vld [vmem:[%s4590_s3 + $0x180] sm:$0xff]  }
  0x74   : > { %3203 = vmatmul.mubr.bf16.gmra.mrb[16].mxu0 %v1504_v11  ;;  %3082 = vmatprep.mubr.msk.bf16.mxu1 %vm4629_vm8, %v3647_v1  ;;  %v3604_v11 = vld [vmem:[%s4590_s3 + $0x1b8] sm:$0xff]  }
  0x75   : > { %3222 = vmatprep.mubr.msk.bf16.mxu0 %vm4629_vm8, %v3647_v1  ;;  %3099 = vmatpush3.bf16.msra.mxu1 %v3591_v59  ;;  %v1082_v59 = vsel %vm1079_vm11, %v1080_v9, %v1081_v43  ;;  %v2047_v9 = vshll.u32 %v4231_v8, 16 }
  0x76   : > { %3100 = vmatprep.subr.bf16.mxu1 %v3647_v1 }
  0x79   : > { %3101 = vmatpush3.bf16.msra.mxu1 %v3593_v14  ;;  %v3610_v14 = vld [vmem:[%s4590_s3 + $0xc0] sm:$0xff]  }
  0x7a   : > { %3102 = vmatprep.subr.bf16.mxu1 %v3647_v1 }
  0x7b   : > { %3083 = vmatmul.mubr.bf16.gmra.mrb[4].mxu1 %v3940_v30 }
  0x7c   : > { %3223 = vmatmul.mubr.bf16.vlgmr.msra.gmra.mrb[0].mxu0 %v4121_v46  ;;  %3086 = vmatprep.mubr.msk.bf16.mxu1 %vm4629_vm8, %v3647_v1  ;;  %v3596_v46 = vld [vmem:[%s4590_s3 + $0x98] sm:$0xff]  }
  0x7d   : > { %3243 = vmatpush3.bf16.msra.mxu0 %v3589_v35  ;;  %3226 = vmatprep.mubr.msk.bf16.mxu0 %vm4629_vm8, %v3647_v1  ;;  %v1867_v35 = vrot.slane %v4231_v8, 2 }
  0x7e   : > { %3244 = vmatprep.subr.bf16.mxu0 %v3647_v1  ;;  %3103 = vmatpush3.bf16.msra.mxu1 %v3594_v26  ;;  %v3614_v26 = vld [vmem:[%s4590_s3 + $0xd0] sm:$0xff]  }
  0x7f   : > { %3104 = vmatprep.subr.bf16.mxu1 %v3647_v1  ;;  %v1870_v63 = vsel %vm4632_vm0, %v1867_v35, %v1869_v19 }
  0x81   : > { %3245 = vmatpush3.bf16.msra.mxu0 %v3590_v45  ;;  %v1086_v45 = vsel %vm1079_vm11, %v1083_v49, %v1085_v21 }
  0x82   : > { %3246 = vmatprep.subr.bf16.mxu0 %v3647_v1  ;;  %3105 = vmatpush3.bf16.msra.mxu1 %v3596_v46  ;;  %v3612_v46 = vld [vmem:[%s4590_s3 + $0x1d0] sm:$0xff]  }
  0x83   : > { %3087 = vmatmul.mubr.bf16.gmra.mrb[8].mxu1 %v4012_v47  ;;  %3106 = vmatprep.subr.bf16.mxu1 %v3647_v1  ;;  %v3608_v47 = vld [vmem:[%s4590_s3 + $0x1c0] sm:$0xff]  }
  0x84   : > { %3227 = vmatmul.mubr.bf16.gmra.mrb[4].mxu0 %v1667_v61  ;;  %3090 = vmatprep.mubr.msk.bf16.mxu1 %vm4629_vm8, %v3647_v1  ;;  %v4385_v61 = vld [vmem:[#allocation2 + $0x20] sm:$0xff]  }
  0x85   : > { %3247 = vmatpush3.bf16.msra.mxu0 %v3592_v32  ;;  %3230 = vmatprep.mubr.msk.bf16.mxu0 %vm4629_vm8, %v3647_v1  ;;  %v3619_v32 = vld [vmem:[%s4590_s3 + $0xe0] sm:$0xff]   ;;  %v1871_v21 = vrot.slane %v4385_v61, 2  ;;  %v2251_v62 = vrot.slane %v4385_v61, 3 }
  0x86   : > { %3248 = vmatprep.subr.bf16.mxu0 %v3647_v1  ;;  %3107 = vmatpush3.bf16.msra.mxu1 %v3598_v52  ;;  %v3622_v52 = vld [vmem:[%s4590_s3 + $0xe8] sm:$0xff]  }
  0x87   : > { %3108 = vmatprep.subr.bf16.mxu1 %v3647_v1 }
  0x89   : > { %3249 = vmatpush3.bf16.msra.mxu0 %v3595_v33 }
  0x8a   : > { %3250 = vmatprep.subr.bf16.mxu0 %v3647_v1  ;;  %3109 = vmatpush3.bf16.msra.mxu1 %v3600_v53  ;;  %v4409_v53 = vld [vmem:[#allocation2 + $0x28] sm:$0xff]  }
  0x8b   : > { %3091 = vmatmul.mubr.bf16.gmra.mrb[12].mxu1 %v4098_v22  ;;  %3110 = vmatprep.subr.bf16.mxu1 %v3647_v1  ;;  %v3615_v22 = vld [vmem:[%s4590_s3 + $0x1d8] sm:$0xff]  }
  0x8c   : > { %3231 = vmatmul.mubr.bf16.gmra.mrb[8].mxu0 %v1669_v54  ;;  %3094 = vmatprep.mubr.msk.bf16.mxu1 %vm4629_vm8, %v3647_v1  ;;  %v3624_v54 = vld [vmem:[%s4590_s3 + $0xf0] sm:$0xff]  }
  0x8d   : > { %3251 = vmatpush3.bf16.msra.mxu0 %v3597_v57  ;;  %3234 = vmatprep.mubr.msk.bf16.mxu0 %vm4629_vm8, %v3647_v1  ;;  %v1873_v57 = vrot.slane %v4409_v53, 2 }
  0x8e   : > { %3252 = vmatprep.subr.bf16.mxu0 %v3647_v1  ;;  %3111 = vmatpush3.bf16.msra.mxu1 %v3602_v0  ;;  %v3621_v0 = vld [vmem:[%s4590_s3 + $0x1e8] sm:$0xff]  }
  0x8f   : > { %3112 = vmatprep.subr.bf16.mxu1 %v3647_v1  ;;  %v1874_v58 = vsel %vm4636_vm4, %v1871_v21, %v1873_v57 }
  0x91   : > { %3253 = vmatpush3.bf16.msra.mxu0 %v3599_v27  ;;  %v3623_v27 = vld [vmem:[%s4590_s3 + $0x1f0] sm:$0xff]  }
  0x92   : > { %3254 = vmatprep.subr.bf16.mxu0 %v3647_v1  ;;  %3113 = vmatpush3.bf16.msra.mxu1 %v3603_v2 }
  0x93   : > { %3095 = vmatmul.mubr.bf16.gmra.mrb[16].mxu1 %v4154_v31  ;;  %3134 = vmatprep.subr.bf16.mxu1 %v3647_v1  ;;  %v1810_v31 = vld [vmem:[#allocation2 + $0x8] sm:$0xc] }
  0x94   : > { %3235 = vmatmul.mubr.bf16.gmra.mrb[12].mxu0 %v1671_v7  ;;  %3114 = vmatprep.mubr.msk.bf16.mxu1 %vm4629_vm8, %v3647_v1  ;;  %v4339_v30 = vcombine.low %v1810_v31, %v4233_v16  ;;  %v1084_v16 = vsel %vm1079_vm11, %v1081_v43, %v1083_v49  ;;  %vm4635_vm11 = vmmov %vm4632_vm0  ;;  %v3627_v7 = vld [vmem:[%s4590_s3 + $0x1f8] sm:$0xff]   ;;  %v2053_v49 = vshrl.u32 %v4235_v28, 16 }
  0x95   : > { %3255 = vmatpush3.bf16.msra.mxu0 %v3601_v39  ;;  %3238 = vmatprep.mubr.msk.bf16.mxu0 %vm4629_vm8, %v3647_v1  ;;  %v1872_v33 = vsel %vm4635_vm11, %v1869_v19, %v1871_v21 }
  0x96   : > { %3256 = vmatprep.subr.bf16.mxu0 %v3647_v1  ;;  %v1866_v51 = vrot.slane %v4339_v30, 2  ;;  %v2036_v2 = vshrl.u32 %v4339_v30, 16  ;;  %v2039_v39 = vshll.u32 %v4339_v30, 16 }
  0x98   : > { %v1868_v55 = vsel %vm4634_vm13, %v1866_v51, %v1867_v35  ;;  %v2038_v43 = vrot.slane %v2036_v2, 2  ;;  %vm4637_vm13 = vmmov %vm4632_vm0  ;;  %v2056_v51 = vshll.u32 %v4235_v28, 16  ;;  %vm2034_vm0 = vsmask.f32 5376 }
  0x99   : > { %3257 = vmatpush3.bf16.msra.mxu0 %v3604_v11  ;;  %v1876_v10 = vsel %vm4637_vm13, %v1873_v57, %v1875_v6  ;;  %v2041_v11 = vrot.slane %v2039_v39, 3  ;;  %v2055_v35 = vrot.slane %v2053_v49, 2  ;;  %v2253_v2 = vrot.slane %v4409_v53, 3 }
  0x9a   : > { %3278 = vmatprep.subr.bf16.mxu0 %v3647_v1 }
  0x9b   : > { %3115 = vmatmul.mubr.bf16.vlgmr.msra.gmra.mrb[0].mxu1 %v1082_v59  ;;  %v2049_v59 = vrot.slane %v2047_v9, 3 }
  0x9c   : > { %3239 = vmatmul.mubr.bf16.gmra.mrb[16].mxu0 %v1673_v13  ;;  %3118 = vmatprep.mubr.msk.bf16.mxu1 %vm4629_vm8, %v3647_v1  ;;  %v3628_v13 = vld [vmem:[%s4590_s3 + $0x200] sm:$0xff]  }
  0x9d   : > { %3258 = vmatprep.mubr.msk.bf16.mxu0 %vm4629_vm8, %v3647_v1  ;;  %3135 = vmatpush3.bf16.msra.mxu1 %v3610_v14  ;;  %v3629_v14 = vld [vmem:[%s4590_s3 + $0x208] sm:$0xff]  }
  0x9e   : > { %3136 = vmatprep.subr.bf16.mxu1 %v3647_v1 }
  0xa1   : > { %3137 = vmatpush3.bf16.msra.mxu1 %v3613_v15  ;;  %v2058_v15 = vrot.slane %v2056_v51, 3 }
  0xa2   : > { %3138 = vmatprep.subr.bf16.mxu1 %v3647_v1 }
  0xa3   : > { %3119 = vmatmul.mubr.bf16.gmra.mrb[4].mxu1 %v1084_v16  ;;  %v3630_v16 = vld [vmem:[%s4590_s3 + $0x210] sm:$0xff]  }
  0xa4   : > { %3259 = vmatmul.mubr.bf16.vlgmr.msra.gmra.mrb[0].mxu0 %v1868_v55  ;;  %3122 = vmatprep.mubr.msk.bf16.mxu1 %vm4629_vm8, %v3647_v1  ;;  %v2059_v55 = vor.u32 %v2058_v15, %v2055_v35 }
  0xa5   : > { %3279 = vmatpush3.bf16.msra.mxu0 %v3608_v47  ;;  %3262 = vmatprep.mubr.msk.bf16.mxu0 %vm4629_vm8, %v3647_v1  ;;  %v2062_v47 = vshrl.u32 %v4385_v61, 16 }
  0xa6   : > { %3280 = vmatprep.subr.bf16.mxu0 %v3647_v1  ;;  %3139 = vmatpush3.bf16.msra.mxu1 %v3614_v26  ;;  %v2065_v26 = vshll.u32 %v4385_v61, 16 }
  0xa7   : > { %3140 = vmatprep.subr.bf16.mxu1 %v3647_v1  ;;  %v2064_v19 = vrot.slane %v2062_v47, 2 }
  0xa9   : > { %3281 = vmatpush3.bf16.msra.mxu0 %v3609_v38 }
  0xaa   : > { %3282 = vmatprep.subr.bf16.mxu0 %v3647_v1  ;;  %3141 = vmatpush3.bf16.msra.mxu1 %v3617_v44  ;;  %v2067_v44 = vrot.slane %v2065_v26, 3 }
  0xab   : > { %3123 = vmatmul.mubr.bf16.gmra.mrb[8].mxu1 %v1086_v45  ;;  %3142 = vmatprep.subr.bf16.mxu1 %v3647_v1  ;;  %v3632_v45 = vld [vmem:[%s4590_s3 + $0x220] sm:$0xff]  }
  0xac   : > { %3263 = vmatmul.mubr.bf16.gmra.mrb[4].mxu0 %v1870_v63  ;;  %3126 = vmatprep.mubr.msk.bf16.mxu1 %vm4629_vm8, %v3647_v1  ;;  %v2068_v63 = vor.u32 %v2067_v44, %v2064_v19 }
  0xad   : > { %3283 = vmatpush3.bf16.msra.mxu0 %v3612_v46  ;;  %3266 = vmatprep.mubr.msk.bf16.mxu0 %vm4629_vm8, %v3647_v1  ;;  %v2071_v46 = vshrl.u32 %v4409_v53, 16 }
  0xae   : > { %3284 = vmatprep.subr.bf16.mxu0 %v3647_v1  ;;  %3143 = vmatpush3.bf16.msra.mxu1 %v3619_v32  ;;  %v2074_v32 = vshll.u32 %v4409_v53, 16  ;;  %v2252_v53 = vsel %vm2245_vm7, %v2249_v37, %v2251_v62 }
  0xaf   : > { %3144 = vmatprep.subr.bf16.mxu1 %v3647_v1  ;;  %v2073_v21 = vrot.slane %v2071_v46, 2 }
  0xb1   : > { %3285 = vmatpush3.bf16.msra.mxu0 %v3615_v22  ;;  %v2069_v22 = vsel %vm2034_vm0, %v2059_v55, %v2068_v63 }
  0xb2   : > { %3286 = vmatprep.subr.bf16.mxu0 %v3647_v1  ;;  %3145 = vmatpush3.bf16.msra.mxu1 %v3622_v52  ;;  %v2076_v52 = vrot.slane %v2074_v32, 3 }
  0xb3   : > { %3127 = vmatmul.mubr.bf16.gmra.mrb[12].mxu1 %v4179_v12  ;;  %3146 = vmatprep.subr.bf16.mxu1 %v3647_v1  ;;  %v3626_v12 = vld [vmem:[%s4590_s3 + $0xf8] sm:$0xff]  }
  0xb4   : > { %3267 = vmatmul.mubr.bf16.gmra.mrb[8].mxu0 %v1872_v33  ;;  %3130 = vmatprep.mubr.msk.bf16.mxu1 %vm4629_vm8, %v3647_v1  ;;  %v3636_v33 = vld [vmem:[#allocation2 + $0x30] ss:$0 sps:$4 sm:$0x77]  }
  0xb5   : > { %3287 = vmatpush3.bf16.msra.mxu0 %v3618_v34  ;;  %3270 = vmatprep.mubr.msk.bf16.mxu0 %vm4629_vm8, %v3647_v1  ;;  %v3635_v34 = vld [vmem:[%s4590_s3 + $0x230] sm:$0xff]   ;;  %v2080_v57 = vshrl.u32 %v3636_v33, 16 }
  0xb6   : > { %3288 = vmatprep.subr.bf16.mxu0 %v3647_v1  ;;  %3147 = vmatpush3.bf16.msra.mxu1 %v3624_v54  ;;  %v2077_v54 = vor.u32 %v2076_v52, %v2073_v21 }
  0xb7   : > { %3148 = vmatprep.subr.bf16.mxu1 %v3647_v1 }
  0xb9   : > { %3289 = vmatpush3.bf16.msra.mxu0 %v3621_v0  ;;  %v2083_v0 = vshll.u32 %v3636_v33, 16 }
  0xba   : > { %3290 = vmatprep.subr.bf16.mxu0 %v3647_v1  ;;  %3149 = vmatpush3.bf16.msra.mxu1 %v3626_v12  ;;  %v2078_v12 = vsel %vm2034_vm0, %v2068_v63, %v2077_v54 }
  0xbb   : > { %3131 = vmatmul.mubr.bf16.gmra.mrb[16].mxu1 %v4197_v29  ;;  %3350 = vmatprep.subr.bf16.mxu1 %v3647_v1  ;;  %v2044_v29 = vshrl.u32 %v4231_v8, 16  ;;  %v2042_v8 = vor.u32 %v2041_v11, %v2038_v43 }
  0xbc   : > { %3271 = vmatmul.mubr.bf16.gmra.mrb[12].mxu0 %v1874_v58  ;;  %3150 = vmatprep.mubr.msk.bf16.mxu1 %vm4629_vm8, %v3647_v1  ;;  %v2082_v58 = vrot.slane %v2080_v57, 2 }
  0xbd   : > { %3291 = vmatpush3.bf16.msra.mxu0 %v3623_v27  ;;  %3274 = vmatprep.mubr.msk.bf16.mxu0 %vm4629_vm8, %v3647_v1  ;;  %v2046_v31 = vrot.slane %v2044_v29, 2  ;;  %v2085_v27 = vrot.slane %v2083_v0, 3 }
  0xbe   : > { %3292 = vmatprep.subr.bf16.mxu0 %v3647_v1 }
  0xbf   : > { %v2050_v30 = vor.u32 %v2049_v59, %v2046_v31  ;;  %v2086_v6 = vor.u32 %v2085_v27, %v2082_v58 }
  0xc1   : > { %3293 = vmatpush3.bf16.msra.mxu0 %v3627_v7  ;;  %v2060_v38 = vsel %vm2034_vm0, %v2050_v30, %v2059_v55  ;;  %v2254_v7 = vsel %vm2245_vm7, %v2251_v62, %v2253_v2  ;;  %v2087_v39 = vsel %vm2034_vm0, %v2077_v54, %v2086_v6 }
  0xc2   : > { %3314 = vmatprep.subr.bf16.mxu0 %v3647_v1 }
  0xc3   : > { %3151 = vmatmul.mubr.bf16.vlgmr.msra.gmra.mrb[0].mxu1 %v4186_v42  ;;  %v2051_v42 = vsel %vm2034_vm0, %v2042_v8, %v2050_v30 }
  0xc4   : > { %3275 = vmatmul.mubr.bf16.gmra.mrb[16].mxu0 %v1876_v10  ;;  %3154 = vmatprep.mubr.msk.bf16.mxu1 %vm4629_vm8, %v3647_v1 }
  0xc5   : > { %3294 = vmatprep.mubr.msk.bf16.mxu0 %vm4629_vm8, %v3647_v1  ;;  %3358 = vmatpush3.bf16.msra.mxu1 %v3628_v13 }
  0xc6   : > { %3351 = vmatprep.subr.bf16.mxu1 %v3647_v1 }
  0xc9   : > { %3359 = vmatpush3.bf16.msra.mxu1 %v3629_v14 }
  0xca   : > { %3352 = vmatprep.subr.bf16.mxu1 %v3647_v1 }
  0xcb   : > { %3155 = vmatmul.mubr.bf16.gmra.mrb[4].mxu1 %v4210_v56  ;;  %v3631_v56 = vld [vmem:[%s4590_s3 + $0x218] sm:$0xff]  }
  0xcc   : > { %3295 = vmatmul.mubr.bf16.vlgmr.msra.gmra.mrb[0].mxu0 %v2051_v42  ;;  %3158 = vmatprep.mubr.msk.bf16.mxu1 %vm4629_vm8, %v3647_v1 }
  0xcd   : > { %3315 = vmatpush3.bf16.msra.mxu0 %v3628_v13  ;;  %3298 = vmatprep.mubr.msk.bf16.mxu0 %vm4629_vm8, %v3647_v1 }
  0xce   : > { %3316 = vmatprep.subr.bf16.mxu0 %v3647_v1  ;;  %3360 = vmatpush3.bf16.msra.mxu1 %v3630_v16 }
  0xcf   : > { %3353 = vmatprep.subr.bf16.mxu1 %v3647_v1 }
  0xd1   : > { %3317 = vmatpush3.bf16.msra.mxu0 %v3629_v14 }
  0xd2   : > { %3318 = vmatprep.subr.bf16.mxu0 %v3647_v1  ;;  %3361 = vmatpush3.bf16.msra.mxu1 %v3631_v56 }
  0xd3   : > { %3159 = vmatmul.mubr.bf16.gmra.mrb[8].mxu1 %v4213_v3  ;;  %3354 = vmatprep.subr.bf16.mxu1 %v3647_v1  ;;  %v3633_v3 = vld [vmem:[%s4590_s3 + $0x228] sm:$0xff]  }
  0xd4   : > { %3299 = vmatmul.mubr.bf16.gmra.mrb[4].mxu0 %v2060_v38  ;;  %3162 = vmatprep.mubr.msk.bf16.mxu1 %vm4629_vm8, %v3647_v1 }
  0xd5   : > { %3319 = vmatpush3.bf16.msra.mxu0 %v3630_v16  ;;  %3302 = vmatprep.mubr.msk.bf16.mxu0 %vm4629_vm8, %v3647_v1 }
  0xd6   : > { %3320 = vmatprep.subr.bf16.mxu0 %v3647_v1  ;;  %3362 = vmatpush3.bf16.msra.mxu1 %v3632_v45 }
  0xd7   : > { %3355 = vmatprep.subr.bf16.mxu1 %v3647_v1 }
  0xd9   : > { %3321 = vmatpush3.bf16.msra.mxu0 %v3631_v56 }
  0xda   : > { %3322 = vmatprep.subr.bf16.mxu0 %v3647_v1  ;;  %3363 = vmatpush3.bf16.msra.mxu1 %v3633_v3 }
  0xdb   : > { %3163 = vmatmul.mubr.bf16.gmra.mrb[12].mxu1 %v4225_v41  ;;  %3356 = vmatprep.subr.bf16.mxu1 %v3647_v1  ;;  %v3637_v41 = vld [vmem:[%s4590_s3 + $0x238] sm:$0xff]  }
  0xdc   : > { %3303 = vmatmul.mubr.bf16.gmra.mrb[8].mxu0 %v2069_v22  ;;  %3166 = vmatprep.mubr.msk.bf16.mxu1 %vm4629_vm8, %v3647_v1 }
  0xdd   : > { %3323 = vmatpush3.bf16.msra.mxu0 %v3632_v45  ;;  %3306 = vmatprep.mubr.msk.bf16.mxu0 %vm4629_vm8, %v3647_v1 }
  0xde   : > { %3324 = vmatprep.subr.bf16.mxu0 %v3647_v1  ;;  %3364 = vmatpush3.bf16.msra.mxu1 %v3635_v34 }
  0xdf   : > { %3357 = vmatprep.subr.bf16.mxu1 %v3647_v1 }
  0xe1   : > { %3325 = vmatpush3.bf16.msra.mxu0 %v3633_v3 }
  0xe2   : > { %3326 = vmatprep.subr.bf16.mxu0 %v3647_v1  ;;  %3365 = vmatpush3.bf16.msra.mxu1 %v3637_v41 }
  0xe3   : > { %3167 = vmatmul.mubr.bf16.gmra.mrb[16].mxu1 %v4238_v25  ;;  %v2255_v25 = vrot.slane %v3636_v33, 3 }
  0xe4   : > { %3307 = vmatmul.mubr.bf16.gmra.mrb[12].mxu0 %v2078_v12  ;;  %3342 = vmatprep.mubr.msk.bf16.mxu1 %vm4629_vm8, %v3647_v1 }
  0xe5   : > { %3327 = vmatpush3.bf16.msra.mxu0 %v3635_v34  ;;  %3310 = vmatprep.mubr.msk.bf16.mxu0 %vm4629_vm8, %v3647_v1  ;;  %v2256_v61 = vsel %vm2245_vm7, %v2253_v2, %v2255_v25 }
  0xe6   : > { %3328 = vmatprep.subr.bf16.mxu0 %v3647_v1 }
  0xe9   : > { %3329 = vmatpush3.bf16.msra.mxu0 %v3637_v41 }
  0xeb   : > { %3343 = vmatmul.mubr.bf16.vlgmr.msra.gmra.mrb[20].mxu1 %v2254_v7 }
  0xec   : > { %3311 = vmatmul.mubr.bf16.gmra.mrb[16].mxu0 %v2087_v39  ;;  %3346 = vmatprep.mubr.msk.bf16.mxu1 %vm4629_vm8, %v3647_v1 }
  0xed   : > { %3330 = vmatprep.mubr.msk.bf16.mxu0 %vm4629_vm8, %v3647_v1 }
  0xf3   : > { %3347 = vmatmul.mubr.bf16.gmra.mrb[24].mxu1 %v2256_v61 }
  0xf4   : > { %3331 = vmatmul.mubr.bf16.vlgmr.msra.gmra.mrb[0].mxu0 %v4267_v4 }
  0xf5   : > { %3334 = vmatprep.mubr.msk.bf16.mxu0 %vm4629_vm8, %v3647_v1 }
  0xfc   : > { %3335 = vmatmul.mubr.bf16.gmra.mrb[4].mxu0 %v4260_v36 }
  0xfd   : > { %3338 = vmatprep.mubr.msk.bf16.mxu0 %vm4629_vm8, %v3647_v1 }
 0x104   : > { %3339 = vmatmul.mubr.bf16.gmra.mrb[8].mxu0 %v2252_v53 }
 0x196   : > { %v1381_v29 = vpop.f32.mrb[0].mxu1 }
 0x197   : > { %v3152_v9 = vpop.f32.mrb[1].mxu1 }
 0x198   : > { %v1384_v43 = vpop.f32.mrb[2].mxu1 }
 0x199   : > { %v3153_v10 = vpop.f32.mrb[3].mxu1 }
 0x19e   : > { %v1389_v11 = vpop.f32.mrb[4].mxu1 }
 0x19f   : > { %v3156_v31 = vpop.f32.mrb[5].mxu1 }
 0x1a0   : > { %v1392_v4 = vpop.f32.mrb[6].mxu1 }
 0x1a1   : > { %v3157_v59 = vpop.f32.mrb[7].mxu1 }
 0x1a6   : > { %v4542_v13 = vpop.f32.mrb[8].mxu1 }
 0x1a7   : > { %v3160_v8 = vpop.f32.mrb[9].mxu1 }
 0x1a8   : > { %v4544_v36 = vpop.f32.mrb[10].mxu1 }
 0x1a9   : > { %v3161_v30 = vpop.f32.mrb[11].mxu1 }
 0x1ae   : > { %v1405_v1 = vpop.f32.mrb[12].mxu1 }
 0x1af   : > { %v3164_v14 = vpop.f32.mrb[13].mxu1 }
 0x1b0   : > { %v1408_v28 = vpop.f32.mrb[14].mxu1 }
 0x1b1   : > { %v3165_v49 = vpop.f32.mrb[15].mxu1 }
 0x1b6   : > { %v1413_v37 = vpop.f32.mrb[16].mxu1 }
 0x1b7   : > { %v2199_v51 = vpop.f32.mrb[12].mxu0  ;;  %v3168_v42 = vpop.f32.mrb[17].mxu1 }
 0x1b8   : > { %v3372_v35 = vadd.f32 %v2199_v51, %v1405_v1  ;;  %v3308_v15 = vpop.f32.mrb[13].mxu0  ;;  %v1416_v16 = vpop.f32.mrb[18].mxu1 }
 0x1b9   : > { %v2202_v55 = vpop.f32.mrb[14].mxu0  ;;  %v3169_v47 = vpop.f32.mrb[19].mxu1 }
 0x1ba   : > { %v3374_v26 = vadd.f32 %v2202_v55, %v1408_v28  ;;  %v3309_v56 = vpop.f32.mrb[15].mxu0 }
 0x1be   : > { %v2368_v38 = vpop.f32.mrb[20].mxu1 }
 0x1bf   : > { %v2207_v19 = vpop.f32.mrb[16].mxu0  ;;  %v3373_v44 = vadd.f32 %v3372_v35, %v2368_v38  ;;  %v3344_v45 = vpop.f32.mrb[21].mxu1 }
 0x1c0   : > { %v3376_v63 = vadd.f32 %v2207_v19, %v1413_v37  ;;  %v3312_v46 = vpop.f32.mrb[17].mxu0  ;;  %v2371_v32 = vpop.f32.mrb[22].mxu1 }
 0x1c1   : > { %v2210_v3 = vpop.f32.mrb[18].mxu0  ;;  %v3375_v22 = vadd.f32 %v3374_v26, %v2371_v32  ;;  %v3345_v21 = vpop.f32.mrb[23].mxu1  ;;  %v2449_v19 = vsel %vm4004_vm3, %v3373_v44, 0.0 }
 0x1c2   : > { %v3378_v52 = vadd.f32 %v2210_v3, %v1416_v16  ;;  %v3313_v33 = vpop.f32.mrb[19].mxu0  ;;  %v2475_v23 = vmul.f32 %v2449_v19, %v2449_v19 }
 0x1c3   : > { %v2894_v34 = vpack.c.bf16 %v3375_v22, %v3373_v44  ;;  %v2450_v3 = vsel %vm4063_vm9, %v3375_v22, 0.0 }
 0x1c4   : > { %v2476_v33 = vmul.f32 %v2450_v3, %v2450_v3 }
 0x1c5   : > { %2907 = vst [vmem:[%s4551_s17 + $0x18] sm:$0xff] %v2894_v34  }
 0x1c6   : > { %v2376_v54 = vpop.f32.mrb[24].mxu1 }
 0x1c7   : > { %v2344_v57 = vpop.f32.mrb[0].mxu0  ;;  %v3377_v0 = vadd.f32 %v3376_v63, %v2376_v54  ;;  %v3348_v41 = vpop.f32.mrb[25].mxu1 }
 0x1c8   : > { %v3366_v12 = vadd.f32 %v2344_v57, %v1381_v29  ;;  %v3332_v58 = vpop.f32.mrb[1].mxu0  ;;  %v2379_v27 = vpop.f32.mrb[26].mxu1 }
 0x1c9   : > { %v2347_v62 = vpop.f32.mrb[2].mxu0  ;;  %v3379_v2 = vadd.f32 %v3378_v52, %v2379_v27  ;;  %v3349_v6 = vpop.f32.mrb[27].mxu1  ;;  %v2451_v52 = vsel %vm4067_vm10, %v3377_v0, 0.0 }
 0x1ca   : > { %v2443_v7 = vsel %vm3847_vm14, %v3366_v12, 0.0  ;;  %v3367_v39 = vadd.f32 %v2347_v62, %v1384_v43  ;;  %v3333_v25 = vpop.f32.mrb[3].mxu0  ;;  %v2477_v34 = vmul.f32 %v2451_v52, %v2451_v52 }
 0x1cb   : > { %v2899_v61 = vpack.c.bf16 %v3379_v2, %v3377_v0  ;;  %v2469_v10 = vmul.f32 %v2443_v7, %v2443_v7  ;;  %v2452_v24 = vsel %vm4125_vm2, %v3379_v2, 0.0 }
 0x1cc   : > { %v2879_v53 = vpack.c.bf16 %v3367_v39, %v3366_v12  ;;  %v2444_v9 = vsel %vm3851_vm15, %v3367_v39, 0.0  ;;  %v2478_v41 = vmul.f32 %v2452_v24, %v2452_v24 }
 0x1cd   : > { %v2453_v31 = vadd.f32 %v2444_v9, %v2443_v7  ;;  %v2470_v59 = vmul.f32 %v2444_v9, %v2444_v9  ;;  %2908 = vst [vmem:[%s4551_s17 + $0x20] sm:$0xff] %v2899_v61  }
 0x1ce   : > { %2880 = vst [vmem:[%s4551_s17] sm:$0xff] %v2879_v53  }
 0x1cf   : > { %v2479_v29 = vadd.f32 %v2470_v59, %v2469_v10  ;;  %v2352_v8 = vpop.f32.mrb[4].mxu0 }
 0x1d0   : > { %v3368_v30 = vadd.f32 %v2352_v8, %v1389_v11  ;;  %v3336_v1 = vpop.f32.mrb[5].mxu0 }
 0x1d1   : > { %v2355_v14 = vpop.f32.mrb[6].mxu0 }
 0x1d2   : > { %v2445_v17 = vsel %vm3858_vm1, %v3368_v30, 0.0  ;;  %v3369_v43 = vadd.f32 %v2355_v14, %v1392_v4  ;;  %v3337_v28 = vpop.f32.mrb[7].mxu0 }
 0x1d3   : > { %v2454_v49 = vadd.f32 %v2453_v31, %v2445_v17  ;;  %v2471_v37 = vmul.f32 %v2445_v17, %v2445_v17 }
 0x1d4   : > { %v2884_v18 = vpack.c.bf16 %v3369_v43, %v3368_v30  ;;  %v2446_v51 = vsel %vm3893_vm5, %v3369_v43, 0.0 }
 0x1d5   : > { %v2480_v42 = vadd.f32 %v2479_v29, %v2471_v37  ;;  %v2455_v35 = vadd.f32 %v2454_v49, %v2446_v51  ;;  %v2472_v15 = vmul.f32 %v2446_v51, %v2446_v51 }
 0x1d6   : > { %2905 = vst [vmem:[%s4551_s17 + $0x8] sm:$0xff] %v2884_v18  }
 0x1d7   : > { %v2481_v16 = vadd.f32 %v2480_v42, %v2472_v15  ;;  %v2360_v55 = vpop.f32.mrb[8].mxu0 }
 0x1d8   : > { %v3370_v11 = vadd.f32 %v2360_v55, %v4542_v13  ;;  %v3340_v47 = vpop.f32.mrb[9].mxu0 }
 0x1d9   : > { %v2363_v20 = vpop.f32.mrb[10].mxu0 }
 0x1da   : > { %v2447_v4 = vsel %vm3914_vm12, %v3370_v11, 0.0  ;;  %v3371_v26 = vadd.f32 %v2363_v20, %v4544_v36  ;;  %v3341_v56 = vpop.f32.mrb[11].mxu0 }
 0x1db   : > { %v2456_v38 = vadd.f32 %v2455_v35, %v2447_v4  ;;  %v2473_v5 = vmul.f32 %v2447_v4, %v2447_v4 }
 0x1dc   : > { %v2889_v45 = vpack.c.bf16 %v3371_v26, %v3370_v11  ;;  %v2448_v63 = vsel %vm3972_vm6, %v3371_v26, 0.0 }
 0x1dd   : > { %v2482_v46 = vadd.f32 %v2481_v16, %v2473_v5  ;;  %v2457_v32 = vadd.f32 %v2456_v38, %v2448_v63  ;;  %v2474_v13 = vmul.f32 %v2448_v63, %v2448_v63 }
 0x1de   : > { %2906 = vst [vmem:[%s4551_s17 + $0x10] sm:$0xff] %v2889_v45  }
 0x1df   : > { %v2458_v21 = vadd.f32 %v2457_v32, %v2449_v19  ;;  %v2483_v36 = vadd.f32 %v2482_v46, %v2474_v13 }
 0x1e1   : > { %v2459_v60 = vadd.f32 %v2458_v21, %v2450_v3  ;;  %v2484_v44 = vadd.f32 %v2483_v36, %v2475_v23 }
 0x1e3   : > { %v2460_v54 = vadd.f32 %v2459_v60, %v2451_v52  ;;  %v2485_v57 = vadd.f32 %v2484_v44, %v2476_v33 }
 0x1e5   : > { %v2461_v40 = vadd.f32 %v2460_v54, %v2452_v24  ;;  %v2486_v22 = vadd.f32 %v2485_v57, %v2477_v34 }
 0x1e7   : > { %v2462_v12 = vrot.slane %v2461_v40, 4  ;;  %v2487_v58 = vadd.f32 %v2486_v22, %v2478_v41 }
 0x1e9   : > { %v2463_v27 = vadd.f32 %v2462_v12, %v2461_v40  ;;  %v2488_v62 = vrot.slane %v2487_v58, 4 }
 0x1eb   : > { %v2464_v6 = vrot.slane %v2463_v27, 2  ;;  %v2489_v48 = vadd.f32 %v2488_v62, %v2487_v58 }
 0x1ed   : > { %v2465_v0 = vadd.f32 %v2464_v6, %v2463_v27  ;;  %v2490_v7 = vrot.slane %v2489_v48, 2 }
 0x1ef   : > { %v2466_v39 = vrot.slane %v2465_v0, 1  ;;  %v2491_v25 = vadd.f32 %v2490_v7, %v2489_v48 }
 0x1f1   : > { %v2467_v50 = vadd.f32 %v2466_v39, %v2465_v0  ;;  %v2492_v2 = vrot.slane %v2491_v25, 1 }
 0x1f3   : > { %2468 = vst [vmem:[%s235_s22] sm:$0x1] %v2467_v50  ;;  %v2493_v61 = vadd.f32 %v2492_v2, %v2491_v25 }
 0x1f5   : > { %2494 = vst [vmem:[%s235_s22 + $0x1] sm:$0x1] %v2493_v61 }
 0x1f6 PF: > { %s16_s18 = sadd.s32 1, %s3645_s18  }
 0x1f7   : > { %p13_p4 = scmp.ge.s32.totalorder %s16_s18, 4  }
 0x1f9   :  { %15 = sbr.rel (!%p13_p4) target bundleno = 1 (0x1), region = 86 }

</bundles_post_ra>
